<compile_context>
chip_gen: v7x
topology: tpu7x:2x2x1
jax: 0.10.0
libtpu: 0.0.40
codegen_flags: <defaults>
</compile_context>

<pallas_src>
import jax
import jax.numpy as jnp
import numpy as np
from jax.experimental import pallas as pl
from jax.experimental.pallas import tpu as pltpu

# ---- static geometry (from the PyTorch module; input is (N, 1, 101, 4)) ----
H_IN, W_IN = 101, 4
K1H, K1W, C1 = 22, 4, 8
K2H, C2 = 15, 32
K3H, C3 = 15, 128
H1 = H_IN - K1H + 1            # 80 valid conv1 rows
H2 = H1 - K2H + 1              # 66 valid conv2 rows
H3 = H2 - K3H + 1              # 52 valid conv3 rows
FLAT = C3 * H3                 # 6656
XF = H_IN * W_IN               # 404 = flattened raw input per sample

# Row grouping so every matmul is lane-dense and every slice is lane-aligned.
G2, NG2 = 16, 5                # conv2: 5 groups x 16 rows = 80 computed (66 valid)
K2 = 256                       # conv2 K window: 32 h1 rows x 8 ch (30 used, rest 0)
N2 = G2 * C2                   # 512
H1P = (NG2 - 1) * G2 + K2 // C1    # 96 h1 rows produced by conv1 (80 valid + 16 pad)
G3, NG3 = 2, 26                # conv3: 26 groups x 2 rows = 52 rows (all valid)
K3 = (G3 + K3H - 1) * C2       # 512 exactly
N3 = G3 * C3                   # 256

TB_MAX = 64                    # batch tile per grid step (sweep 128-256 on v5e/v6e)


def convnet_kernel(x_ref, w1_ref, b1_ref, w2_ref, b2_ref, w3_ref, b3_ref,
                   wl_ref, bl_ref, o_ref):
    tb = x_ref.shape[0]

    # ---- Conv2d(1, 8, (22, 4)) + ReLU : one block-Toeplitz matmul ----
    a1 = jnp.dot(x_ref[...], w1_ref[...], preferred_element_type=jnp.float32)
    h1 = jnp.maximum(a1 + b1_ref[...], 0.0).astype(jnp.bfloat16)      # (tb, 768)

    # ---- Conv2d(8, 32, (15, 1)) + ReLU : 5 groups of 16 output rows ----
    # Group g's K window = h1 lanes [128g, 128g+256) -> 128-lane aligned slices.
    lhs2 = jnp.concatenate(
        [h1[:, 128 * g: 128 * g + K2] for g in range(NG2)], axis=0)   # (5*tb, 256)
    a2 = jnp.dot(lhs2, w2_ref[...], preferred_element_type=jnp.float32)
    h2g = jnp.maximum(a2 + b2_ref[...], 0.0).astype(jnp.bfloat16)     # (5*tb, 512)
    # grouped-M -> row-major flat h2: aligned sublane slices concatenated along
    # lanes at multiples of 512 (pure vreg copies, overlaps the MXU).
    h2 = jnp.concatenate(
        [h2g[g * tb:(g + 1) * tb, :] for g in range(NG2)], axis=1)    # (tb, 2560)

    # ---- Conv2d(32, 128, (15, 1)) + ReLU : 26 groups of 2 output rows ----
    # Group g's K window = h2 lanes [64g, 64g+512).
    lhs3 = jnp.concatenate(
        [h2[:, G3 * C2 * g: G3 * C2 * g + K3] for g in range(NG3)], axis=0)
    a3 = jnp.dot(lhs3, w3_ref[...], preferred_element_type=jnp.float32)  # (26*tb, 256) f32

    # ---- Flatten + Linear(6656, 1) fused per group (VPU accumulate) ----
    b3 = jnp.broadcast_to(b3_ref[...], (tb, N3))                      # hoisted once
    wl = wl_ref[...]                                                  # (26, 256) f32
    acc = jnp.zeros((tb, N3), jnp.float32)
    for g in range(NG3):
        h3g = jnp.maximum(a3[g * tb:(g + 1) * tb, :] + b3, 0.0)
        acc = acc + h3g * wl[g:g + 1, :]
    logits = jnp.sum(acc, axis=1, keepdims=True) + bl_ref[...]        # (tb, 1)

    out = 1.0 / (1.0 + jnp.exp(-logits))                              # sigmoid (single branch)
    # TODO(synk): nn.Dropout(p=0.9) reproduced as inference-mode identity
    # (train-mode stochastic dropout not replicated).
    o_ref[...] = jnp.broadcast_to(out, (tb, 128))                     # lane-dense store


def _pick_tb(n):
    # >= 2 grid steps when the batch allows (v7x dual TC); tb multiple of 16.
    half = -(-n // 2)
    tb = -(-half // 16) * 16
    return max(16, min(TB_MAX, tb))


def convnet_forward(x_nchw, params):
    """x_nchw: (N, 1, 101, 4) float32 -> (N, 1) float32."""
    w1, b1, w2, b2, w3, b3, wl, bl = params
    n = x_nchw.shape[0]
    xf = x_nchw.reshape(n, XF).astype(jnp.bfloat16)       # raw flattened input

    tb = _pick_tb(n)
    n_pad = -(-n // tb) * tb
    if n_pad != n:
        xf = jnp.pad(xf, ((0, n_pad - n), (0, 0)))
    grid = (n_pad // tb,)

    def full(a):
        return pl.BlockSpec(a.shape, lambda i, nd=a.ndim: (0,) * nd)

    out = pl.pallas_call(
        convnet_kernel,
        out_shape=jax.ShapeDtypeStruct((n_pad, 128), jnp.float32),
        grid=grid,
        in_specs=[
            pl.BlockSpec((tb, XF), lambda i: (i, 0)),      # batch tile of raw input
            full(w1), full(b1), full(w2), full(b2),
            full(w3), full(b3), full(wl), full(bl),
        ],
        out_specs=pl.BlockSpec((tb, 128), lambda i: (i, 0)),
        compiler_params=pltpu.CompilerParams(
            dimension_semantics=("parallel",),
            vmem_limit_bytes=48 * 1024 * 1024),
    )(xf, w1, b1, w2, b2, w3, b3, wl, bl)

    return out[:n, 0:1]


def pack_params(torch_params):
    """PyTorch-layout params -> kernel Toeplitz/grouped layouts (host-side)."""
    w1_t, b1_t, w2_t, b2_t, w3_t, b3_t, wl_t, bl_t = (
        np.asarray(p, np.float32) for p in torch_params)

    # conv1 block-Toeplitz (404, 768): W[4*(h+kh)+kw, 8*h+c] = w1[c,0,kh,kw].
    w1 = np.zeros((XF, H1P * C1), np.float32)
    hh = np.arange(H1)
    for kh in range(K1H):
        for kw in range(K1W):
            rows = (K1W * (hh + kh) + kw)[:, None]             # (80, 1)
            cols = (C1 * hh)[:, None] + np.arange(C1)          # (80, 8)
            w1[rows, cols] = w1_t[:, 0, kh, kw][None, :]
    b1 = np.zeros((1, H1P * C1), np.float32)
    b1[0, :H1 * C1] = np.tile(b1_t, H1)                        # pad rows -> relu(0) == 0

    # conv2 grouped Toeplitz (256, 512): W[8*(r+kh)+c1, 32*r+c2] = w2[c2,c1,kh,0].
    w2 = np.zeros((K2, N2), np.float32)
    rr = np.arange(G2)
    for kh in range(K2H):
        rows = (C1 * (rr + kh))[:, None, None] + np.arange(C1)[None, :, None]
        cols = (C2 * rr)[:, None, None] + np.arange(C2)[None, None, :]
        w2[rows, cols] = w2_t[:, :, kh, 0].T[None, :, :]
    b2 = np.tile(b2_t, G2)[None, :]                            # (1, 512)

    # conv3 grouped Toeplitz (512, 256): W[32*(r+kh)+c1, 128*r+c3] = w3[c3,c1,kh,0].
    w3 = np.zeros((K3, N3), np.float32)
    rr = np.arange(G3)
    for kh in range(K3H):
        rows = (C2 * (rr + kh))[:, None, None] + np.arange(C2)[None, :, None]
        cols = (C3 * rr)[:, None, None] + np.arange(C3)[None, None, :]
        w3[rows, cols] = w3_t[:, :, kh, 0].T[None, :, :]
    b3 = np.tile(b3_t, G3)[None, :]                            # (1, 256)

    # Linear weight in conv3-group layout: wl[g, 128*r + c] = WL[0, c*52 + 2g + r]
    # (PyTorch flatten of (C=128, H=52, W=1)).
    wl = wl_t.reshape(C3, H3).T.reshape(NG3, G3 * C3)          # (26, 256)
    bl = bl_t.reshape(1, 1)

    return (jnp.asarray(w1, jnp.bfloat16), jnp.asarray(b1),
            jnp.asarray(w2, jnp.bfloat16), jnp.asarray(b2),
            jnp.asarray(w3, jnp.bfloat16), jnp.asarray(b3),
            jnp.asarray(wl), jnp.asarray(bl))


def init_params(key):
    """Deterministic PyTorch-shaped params (+ packed kernel layouts)."""
    ks = jax.random.split(key, 8)

    def u(k, shape, fan_in):
        bound = 1.0 / np.sqrt(np.float32(fan_in))
        return jax.random.uniform(k, shape, jnp.float32, -bound, bound)

    torch_params = (
        u(ks[0], (C1, 1, K1H, K1W), 1 * K1H * K1W), u(ks[1], (C1,), 1 * K1H * K1W),
        u(ks[2], (C2, C1, K2H, 1), C1 * K2H),        u(ks[3], (C2,), C1 * K2H),
        u(ks[4], (C3, C2, K3H, 1), C2 * K3H),        u(ks[5], (C3,), C2 * K3H),
        u(ks[6], (1, FLAT), FLAT),                   u(ks[7], (1,), FLAT),
    )
    return pack_params(torch_params), torch_params


def reference_forward(x, torch_params):
    """Pure-JAX reference mirroring the PyTorch module (bf16 matmul inputs)."""
    w1, b1, w2, b2, w3, b3, wl, bl = torch_params

    def conv_relu(h, w, b):
        y = jax.lax.conv_general_dilated(
            h.astype(jnp.bfloat16), w.astype(jnp.bfloat16),
            window_strides=(1, 1), padding="VALID",
            dimension_numbers=("NCHW", "OIHW", "NCHW"),
            preferred_element_type=jnp.float32)
        return jnp.maximum(y + b[None, :, None, None], 0.0)

    h = conv_relu(x, w1, b1)
    h = conv_relu(h, w2, b2)
    h = conv_relu(h, w3, b3)                                   # (N, 128, 52, 1) f32
    logits = jnp.dot(h.reshape(h.shape[0], -1), wl.T,
                     precision=jax.lax.Precision.HIGHEST) + bl[None, :]
    return 1.0 / (1.0 + jnp.exp(-logits))


if __name__ == "__main__":
    key = jax.random.PRNGKey(0)
    k_x, k_p = jax.random.split(key)
    x = jax.random.normal(k_x, (2, 1, H_IN, W_IN), dtype=jnp.float32)
    kernel_params, torch_params = init_params(k_p)

    fwd = jax.jit(convnet_forward)
    out = jax.block_until_ready(fwd(x, kernel_params))
    assert out.shape == (2, 1) and out.dtype == jnp.float32
    assert bool(jnp.all(jnp.isfinite(out)))

    ref = jax.block_until_ready(reference_forward(x, torch_params))
    max_diff = float(jnp.max(jnp.abs(out - ref)))
    assert max_diff < 1e-2, f"mismatch vs reference: {max_diff}"

    print("KERNEL_OK")
</pallas_src>

<mosaic_0001>
module attributes {stable_mosaic.version = 11 : i64} {
  func.func @convnet_kernel(%arg0: i32, %arg1: memref<16x404xbf16, #tpu.memory_space<vmem>>, %arg2: memref<404x768xbf16, #tpu.memory_space<vmem>>, %arg3: memref<1x768xf32, #tpu.memory_space<vmem>>, %arg4: memref<256x512xbf16, #tpu.memory_space<vmem>>, %arg5: memref<1x512xf32, #tpu.memory_space<vmem>>, %arg6: memref<512x256xbf16, #tpu.memory_space<vmem>>, %arg7: memref<1x256xf32, #tpu.memory_space<vmem>>, %arg8: memref<26x256xf32, #tpu.memory_space<vmem>>, %arg9: memref<1x1xf32, #tpu.memory_space<vmem>>, %arg10: memref<16x128xf32, #tpu.memory_space<vmem>>) attributes {dimension_semantics = [#tpu.dimension_semantics<parallel>], iteration_bounds = array<i64: 1>, scalar_prefetch = 0 : i64, scratch_operands = 0 : i64, tpu.core_type = #tpu.core_type<tc>, window_params = [{transform_indices = @transform_0, window_bounds = array<i64: 16, 404>}, {pipeline_mode = #tpu.pipeline_mode<synchronous>, transform_indices = @transform_1, window_bounds = array<i64: 404, 768>}, {pipeline_mode = #tpu.pipeline_mode<synchronous>, transform_indices = @transform_2, window_bounds = array<i64: 1, 768>}, {pipeline_mode = #tpu.pipeline_mode<synchronous>, transform_indices = @transform_3, window_bounds = array<i64: 256, 512>}, {pipeline_mode = #tpu.pipeline_mode<synchronous>, transform_indices = @transform_4, window_bounds = array<i64: 1, 512>}, {pipeline_mode = #tpu.pipeline_mode<synchronous>, transform_indices = @transform_5, window_bounds = array<i64: 512, 256>}, {pipeline_mode = #tpu.pipeline_mode<synchronous>, transform_indices = @transform_6, window_bounds = array<i64: 1, 256>}, {pipeline_mode = #tpu.pipeline_mode<synchronous>, transform_indices = @transform_7, window_bounds = array<i64: 26, 256>}, {pipeline_mode = #tpu.pipeline_mode<synchronous>, transform_indices = @transform_8, window_bounds = array<i64: 1, 1>}, {transform_indices = @transform_9, window_bounds = array<i64: 16, 128>}]} {
    %c0 = arith.constant 0 : index
    %c0_0 = arith.constant 0 : index
    %0 = vector.load %arg1[%c0, %c0_0] : memref<16x404xbf16, #tpu.memory_space<vmem>>, vector<16x404xbf16>
    %c0_1 = arith.constant 0 : index
    %c0_2 = arith.constant 0 : index
    %1 = vector.load %arg2[%c0_1, %c0_2] : memref<404x768xbf16, #tpu.memory_space<vmem>>, vector<404x768xbf16>
    %cst = arith.constant dense<0.000000e+00> : vector<16x768xf32>
    %2 = tpu.matmul %0, %1, %cst {dimension_numbers = #tpu.dot_dimension_numbers<[1], [0], [0], [1], [0, 0, 1, 1], [], []>} : vector<16x404xbf16>, vector<404x768xbf16>, vector<16x768xf32> -> vector<16x768xf32>
    %c0_3 = arith.constant 0 : index
    %c0_4 = arith.constant 0 : index
    %3 = vector.load %arg3[%c0_3, %c0_4] : memref<1x768xf32, #tpu.memory_space<vmem>>, vector<1x768xf32>
    %4 = vector.broadcast %3 : vector<1x768xf32> to vector<16x768xf32>
    %5 = arith.addf %2, %4 : vector<16x768xf32>
    %cst_5 = arith.constant 0.000000e+00 : f32
    %6 = vector.broadcast %cst_5 : f32 to vector<16x768xf32>
    %7 = arith.maximumf %5, %6 : vector<16x768xf32>
    %8 = arith.truncf %7 : vector<16x768xf32> to vector<16x768xbf16>
    %9 = vector.extract_strided_slice %8 {offsets = [0, 0], sizes = [16, 256], strides = [1, 1]} : vector<16x768xbf16> to vector<16x256xbf16>
    %10 = vector.extract_strided_slice %8 {offsets = [0, 128], sizes = [16, 256], strides = [1, 1]} : vector<16x768xbf16> to vector<16x256xbf16>
    %11 = vector.extract_strided_slice %8 {offsets = [0, 256], sizes = [16, 256], strides = [1, 1]} : vector<16x768xbf16> to vector<16x256xbf16>
    %12 = vector.extract_strided_slice %8 {offsets = [0, 384], sizes = [16, 256], strides = [1, 1]} : vector<16x768xbf16> to vector<16x256xbf16>
    %13 = vector.extract_strided_slice %8 {offsets = [0, 512], sizes = [16, 256], strides = [1, 1]} : vector<16x768xbf16> to vector<16x256xbf16>
    %14 = tpu.concatenate %9, %10, %11, %12, %13 in 0 : vector<16x256xbf16>, vector<16x256xbf16>, vector<16x256xbf16>, vector<16x256xbf16>, vector<16x256xbf16> -> vector<80x256xbf16>
    %c0_6 = arith.constant 0 : index
    %c0_7 = arith.constant 0 : index
    %15 = vector.load %arg4[%c0_6, %c0_7] : memref<256x512xbf16, #tpu.memory_space<vmem>>, vector<256x512xbf16>
    %cst_8 = arith.constant dense<0.000000e+00> : vector<80x512xf32>
    %16 = tpu.matmul %14, %15, %cst_8 {dimension_numbers = #tpu.dot_dimension_numbers<[1], [0], [0], [1], [0, 0, 1, 1], [], []>} : vector<80x256xbf16>, vector<256x512xbf16>, vector<80x512xf32> -> vector<80x512xf32>
    %c0_9 = arith.constant 0 : index
    %c0_10 = arith.constant 0 : index
    %17 = vector.load %arg5[%c0_9, %c0_10] : memref<1x512xf32, #tpu.memory_space<vmem>>, vector<1x512xf32>
    %18 = vector.broadcast %17 : vector<1x512xf32> to vector<80x512xf32>
    %19 = arith.addf %16, %18 : vector<80x512xf32>
    %cst_11 = arith.constant 0.000000e+00 : f32
    %20 = vector.broadcast %cst_11 : f32 to vector<80x512xf32>
    %21 = arith.maximumf %19, %20 : vector<80x512xf32>
    %22 = arith.truncf %21 : vector<80x512xf32> to vector<80x512xbf16>
    %23 = vector.extract_strided_slice %22 {offsets = [0, 0], sizes = [16, 512], strides = [1, 1]} : vector<80x512xbf16> to vector<16x512xbf16>
    %24 = vector.extract_strided_slice %22 {offsets = [16, 0], sizes = [16, 512], strides = [1, 1]} : vector<80x512xbf16> to vector<16x512xbf16>
    %25 = vector.extract_strided_slice %22 {offsets = [32, 0], sizes = [16, 512], strides = [1, 1]} : vector<80x512xbf16> to vector<16x512xbf16>
    %26 = vector.extract_strided_slice %22 {offsets = [48, 0], sizes = [16, 512], strides = [1, 1]} : vector<80x512xbf16> to vector<16x512xbf16>
    %27 = vector.extract_strided_slice %22 {offsets = [64, 0], sizes = [16, 512], strides = [1, 1]} : vector<80x512xbf16> to vector<16x512xbf16>
    %28 = tpu.concatenate %23, %24, %25, %26, %27 in 1 : vector<16x512xbf16>, vector<16x512xbf16>, vector<16x512xbf16>, vector<16x512xbf16>, vector<16x512xbf16> -> vector<16x2560xbf16>
    %29 = vector.extract_strided_slice %28 {offsets = [0, 0], sizes = [16, 512], strides = [1, 1]} : vector<16x2560xbf16> to vector<16x512xbf16>
    %30 = vector.extract_strided_slice %28 {offsets = [0, 64], sizes = [16, 512], strides = [1, 1]} : vector<16x2560xbf16> to vector<16x512xbf16>
    %31 = vector.extract_strided_slice %28 {offsets = [0, 128], sizes = [16, 512], strides = [1, 1]} : vector<16x2560xbf16> to vector<16x512xbf16>
    %32 = vector.extract_strided_slice %28 {offsets = [0, 192], sizes = [16, 512], strides = [1, 1]} : vector<16x2560xbf16> to vector<16x512xbf16>
    %33 = vector.extract_strided_slice %28 {offsets = [0, 256], sizes = [16, 512], strides = [1, 1]} : vector<16x2560xbf16> to vector<16x512xbf16>
    %34 = vector.extract_strided_slice %28 {offsets = [0, 320], sizes = [16, 512], strides = [1, 1]} : vector<16x2560xbf16> to vector<16x512xbf16>
    %35 = vector.extract_strided_slice %28 {offsets = [0, 384], sizes = [16, 512], strides = [1, 1]} : vector<16x2560xbf16> to vector<16x512xbf16>
    %36 = vector.extract_strided_slice %28 {offsets = [0, 448], sizes = [16, 512], strides = [1, 1]} : vector<16x2560xbf16> to vector<16x512xbf16>
    %37 = vector.extract_strided_slice %28 {offsets = [0, 512], sizes = [16, 512], strides = [1, 1]} : vector<16x2560xbf16> to vector<16x512xbf16>
    %38 = vector.extract_strided_slice %28 {offsets = [0, 576], sizes = [16, 512], strides = [1, 1]} : vector<16x2560xbf16> to vector<16x512xbf16>
    %39 = vector.extract_strided_slice %28 {offsets = [0, 640], sizes = [16, 512], strides = [1, 1]} : vector<16x2560xbf16> to vector<16x512xbf16>
    %40 = vector.extract_strided_slice %28 {offsets = [0, 704], sizes = [16, 512], strides = [1, 1]} : vector<16x2560xbf16> to vector<16x512xbf16>
    %41 = vector.extract_strided_slice %28 {offsets = [0, 768], sizes = [16, 512], strides = [1, 1]} : vector<16x2560xbf16> to vector<16x512xbf16>
    %42 = vector.extract_strided_slice %28 {offsets = [0, 832], sizes = [16, 512], strides = [1, 1]} : vector<16x2560xbf16> to vector<16x512xbf16>
    %43 = vector.extract_strided_slice %28 {offsets = [0, 896], sizes = [16, 512], strides = [1, 1]} : vector<16x2560xbf16> to vector<16x512xbf16>
    %44 = vector.extract_strided_slice %28 {offsets = [0, 960], sizes = [16, 512], strides = [1, 1]} : vector<16x2560xbf16> to vector<16x512xbf16>
    %45 = vector.extract_strided_slice %28 {offsets = [0, 1024], sizes = [16, 512], strides = [1, 1]} : vector<16x2560xbf16> to vector<16x512xbf16>
    %46 = vector.extract_strided_slice %28 {offsets = [0, 1088], sizes = [16, 512], strides = [1, 1]} : vector<16x2560xbf16> to vector<16x512xbf16>
    %47 = vector.extract_strided_slice %28 {offsets = [0, 1152], sizes = [16, 512], strides = [1, 1]} : vector<16x2560xbf16> to vector<16x512xbf16>
    %48 = vector.extract_strided_slice %28 {offsets = [0, 1216], sizes = [16, 512], strides = [1, 1]} : vector<16x2560xbf16> to vector<16x512xbf16>
    %49 = vector.extract_strided_slice %28 {offsets = [0, 1280], sizes = [16, 512], strides = [1, 1]} : vector<16x2560xbf16> to vector<16x512xbf16>
    %50 = vector.extract_strided_slice %28 {offsets = [0, 1344], sizes = [16, 512], strides = [1, 1]} : vector<16x2560xbf16> to vector<16x512xbf16>
    %51 = vector.extract_strided_slice %28 {offsets = [0, 1408], sizes = [16, 512], strides = [1, 1]} : vector<16x2560xbf16> to vector<16x512xbf16>
    %52 = vector.extract_strided_slice %28 {offsets = [0, 1472], sizes = [16, 512], strides = [1, 1]} : vector<16x2560xbf16> to vector<16x512xbf16>
    %53 = vector.extract_strided_slice %28 {offsets = [0, 1536], sizes = [16, 512], strides = [1, 1]} : vector<16x2560xbf16> to vector<16x512xbf16>
    %54 = vector.extract_strided_slice %28 {offsets = [0, 1600], sizes = [16, 512], strides = [1, 1]} : vector<16x2560xbf16> to vector<16x512xbf16>
    %55 = tpu.concatenate %29, %30, %31, %32, %33, %34, %35, %36, %37, %38, %39, %40, %41, %42, %43, %44 in 0 : vector<16x512xbf16>, vector<16x512xbf16>, vector<16x512xbf16>, vector<16x512xbf16>, vector<16x512xbf16>, vector<16x512xbf16>, vector<16x512xbf16>, vector<16x512xbf16>, vector<16x512xbf16>, vector<16x512xbf16>, vector<16x512xbf16>, vector<16x512xbf16>, vector<16x512xbf16>, vector<16x512xbf16>, vector<16x512xbf16>, vector<16x512xbf16> -> vector<256x512xbf16>
    %56 = tpu.concatenate %45, %46, %47, %48, %49, %50, %51, %52, %53, %54 in 0 : vector<16x512xbf16>, vector<16x512xbf16>, vector<16x512xbf16>, vector<16x512xbf16>, vector<16x512xbf16>, vector<16x512xbf16>, vector<16x512xbf16>, vector<16x512xbf16>, vector<16x512xbf16>, vector<16x512xbf16> -> vector<160x512xbf16>
    %57 = tpu.concatenate %55, %56 in 0 : vector<256x512xbf16>, vector<160x512xbf16> -> vector<416x512xbf16>
    %c0_12 = arith.constant 0 : index
    %c0_13 = arith.constant 0 : index
    %58 = vector.load %arg6[%c0_12, %c0_13] : memref<512x256xbf16, #tpu.memory_space<vmem>>, vector<512x256xbf16>
    %cst_14 = arith.constant dense<0.000000e+00> : vector<416x256xf32>
    %59 = tpu.matmul %57, %58, %cst_14 {dimension_numbers = #tpu.dot_dimension_numbers<[1], [0], [0], [1], [0, 0, 1, 1], [], []>} : vector<416x512xbf16>, vector<512x256xbf16>, vector<416x256xf32> -> vector<416x256xf32>
    %c0_15 = arith.constant 0 : index
    %c0_16 = arith.constant 0 : index
    %60 = vector.load %arg7[%c0_15, %c0_16] : memref<1x256xf32, #tpu.memory_space<vmem>>, vector<1x256xf32>
    %61 = vector.shape_cast %60 : vector<1x256xf32> to vector<1x256xf32>
    %62 = vector.broadcast %61 : vector<1x256xf32> to vector<16x256xf32>
    %c0_17 = arith.constant 0 : index
    %c0_18 = arith.constant 0 : index
    %63 = vector.load %arg8[%c0_17, %c0_18] : memref<26x256xf32, #tpu.memory_space<vmem>>, vector<26x256xf32>
    %cst_19 = arith.constant 0.000000e+00 : f32
    %64 = vector.broadcast %cst_19 : f32 to vector<16x256xf32>
    %65 = vector.extract_strided_slice %59 {offsets = [0, 0], sizes = [16, 256], strides = [1, 1]} : vector<416x256xf32> to vector<16x256xf32>
    %66 = arith.addf %65, %62 : vector<16x256xf32>
    %cst_20 = arith.constant 0.000000e+00 : f32
    %67 = vector.broadcast %cst_20 : f32 to vector<16x256xf32>
    %68 = arith.maximumf %66, %67 : vector<16x256xf32>
    %69 = vector.extract_strided_slice %63 {offsets = [0, 0], sizes = [1, 256], strides = [1, 1]} : vector<26x256xf32> to vector<1x256xf32>
    %70 = vector.broadcast %69 : vector<1x256xf32> to vector<16x256xf32>
    %71 = arith.mulf %68, %70 : vector<16x256xf32>
    %72 = arith.addf %64, %71 : vector<16x256xf32>
    %73 = vector.extract_strided_slice %59 {offsets = [16, 0], sizes = [16, 256], strides = [1, 1]} : vector<416x256xf32> to vector<16x256xf32>
    %74 = arith.addf %73, %62 : vector<16x256xf32>
    %cst_21 = arith.constant 0.000000e+00 : f32
    %75 = vector.broadcast %cst_21 : f32 to vector<16x256xf32>
    %76 = arith.maximumf %74, %75 : vector<16x256xf32>
    %77 = vector.extract_strided_slice %63 {offsets = [1, 0], sizes = [1, 256], strides = [1, 1]} : vector<26x256xf32> to vector<1x256xf32>
    %78 = vector.broadcast %77 : vector<1x256xf32> to vector<16x256xf32>
    %79 = arith.mulf %76, %78 : vector<16x256xf32>
    %80 = arith.addf %72, %79 : vector<16x256xf32>
    %81 = vector.extract_strided_slice %59 {offsets = [32, 0], sizes = [16, 256], strides = [1, 1]} : vector<416x256xf32> to vector<16x256xf32>
    %82 = arith.addf %81, %62 : vector<16x256xf32>
    %cst_22 = arith.constant 0.000000e+00 : f32
    %83 = vector.broadcast %cst_22 : f32 to vector<16x256xf32>
    %84 = arith.maximumf %82, %83 : vector<16x256xf32>
    %85 = vector.extract_strided_slice %63 {offsets = [2, 0], sizes = [1, 256], strides = [1, 1]} : vector<26x256xf32> to vector<1x256xf32>
    %86 = vector.broadcast %85 : vector<1x256xf32> to vector<16x256xf32>
    %87 = arith.mulf %84, %86 : vector<16x256xf32>
    %88 = arith.addf %80, %87 : vector<16x256xf32>
    %89 = vector.extract_strided_slice %59 {offsets = [48, 0], sizes = [16, 256], strides = [1, 1]} : vector<416x256xf32> to vector<16x256xf32>
    %90 = arith.addf %89, %62 : vector<16x256xf32>
    %cst_23 = arith.constant 0.000000e+00 : f32
    %91 = vector.broadcast %cst_23 : f32 to vector<16x256xf32>
    %92 = arith.maximumf %90, %91 : vector<16x256xf32>
    %93 = vector.extract_strided_slice %63 {offsets = [3, 0], sizes = [1, 256], strides = [1, 1]} : vector<26x256xf32> to vector<1x256xf32>
    %94 = vector.broadcast %93 : vector<1x256xf32> to vector<16x256xf32>
    %95 = arith.mulf %92, %94 : vector<16x256xf32>
    %96 = arith.addf %88, %95 : vector<16x256xf32>
    %97 = vector.extract_strided_slice %59 {offsets = [64, 0], sizes = [16, 256], strides = [1, 1]} : vector<416x256xf32> to vector<16x256xf32>
    %98 = arith.addf %97, %62 : vector<16x256xf32>
    %cst_24 = arith.constant 0.000000e+00 : f32
    %99 = vector.broadcast %cst_24 : f32 to vector<16x256xf32>
    %100 = arith.maximumf %98, %99 : vector<16x256xf32>
    %101 = vector.extract_strided_slice %63 {offsets = [4, 0], sizes = [1, 256], strides = [1, 1]} : vector<26x256xf32> to vector<1x256xf32>
    %102 = vector.broadcast %101 : vector<1x256xf32> to vector<16x256xf32>
    %103 = arith.mulf %100, %102 : vector<16x256xf32>
    %104 = arith.addf %96, %103 : vector<16x256xf32>
    %105 = vector.extract_strided_slice %59 {offsets = [80, 0], sizes = [16, 256], strides = [1, 1]} : vector<416x256xf32> to vector<16x256xf32>
    %106 = arith.addf %105, %62 : vector<16x256xf32>
    %cst_25 = arith.constant 0.000000e+00 : f32
    %107 = vector.broadcast %cst_25 : f32 to vector<16x256xf32>
    %108 = arith.maximumf %106, %107 : vector<16x256xf32>
    %109 = vector.extract_strided_slice %63 {offsets = [5, 0], sizes = [1, 256], strides = [1, 1]} : vector<26x256xf32> to vector<1x256xf32>
    %110 = vector.broadcast %109 : vector<1x256xf32> to vector<16x256xf32>
    %111 = arith.mulf %108, %110 : vector<16x256xf32>
    %112 = arith.addf %104, %111 : vector<16x256xf32>
    %113 = vector.extract_strided_slice %59 {offsets = [96, 0], sizes = [16, 256], strides = [1, 1]} : vector<416x256xf32> to vector<16x256xf32>
    %114 = arith.addf %113, %62 : vector<16x256xf32>
    %cst_26 = arith.constant 0.000000e+00 : f32
    %115 = vector.broadcast %cst_26 : f32 to vector<16x256xf32>
    %116 = arith.maximumf %114, %115 : vector<16x256xf32>
    %117 = vector.extract_strided_slice %63 {offsets = [6, 0], sizes = [1, 256], strides = [1, 1]} : vector<26x256xf32> to vector<1x256xf32>
    %118 = vector.broadcast %117 : vector<1x256xf32> to vector<16x256xf32>
    %119 = arith.mulf %116, %118 : vector<16x256xf32>
    %120 = arith.addf %112, %119 : vector<16x256xf32>
    %121 = vector.extract_strided_slice %59 {offsets = [112, 0], sizes = [16, 256], strides = [1, 1]} : vector<416x256xf32> to vector<16x256xf32>
    %122 = arith.addf %121, %62 : vector<16x256xf32>
    %cst_27 = arith.constant 0.000000e+00 : f32
    %123 = vector.broadcast %cst_27 : f32 to vector<16x256xf32>
    %124 = arith.maximumf %122, %123 : vector<16x256xf32>
    %125 = vector.extract_strided_slice %63 {offsets = [7, 0], sizes = [1, 256], strides = [1, 1]} : vector<26x256xf32> to vector<1x256xf32>
    %126 = vector.broadcast %125 : vector<1x256xf32> to vector<16x256xf32>
    %127 = arith.mulf %124, %126 : vector<16x256xf32>
    %128 = arith.addf %120, %127 : vector<16x256xf32>
    %129 = vector.extract_strided_slice %59 {offsets = [128, 0], sizes = [16, 256], strides = [1, 1]} : vector<416x256xf32> to vector<16x256xf32>
    %130 = arith.addf %129, %62 : vector<16x256xf32>
    %cst_28 = arith.constant 0.000000e+00 : f32
    %131 = vector.broadcast %cst_28 : f32 to vector<16x256xf32>
    %132 = arith.maximumf %130, %131 : vector<16x256xf32>
    %133 = vector.extract_strided_slice %63 {offsets = [8, 0], sizes = [1, 256], strides = [1, 1]} : vector<26x256xf32> to vector<1x256xf32>
    %134 = vector.broadcast %133 : vector<1x256xf32> to vector<16x256xf32>
    %135 = arith.mulf %132, %134 : vector<16x256xf32>
    %136 = arith.addf %128, %135 : vector<16x256xf32>
    %137 = vector.extract_strided_slice %59 {offsets = [144, 0], sizes = [16, 256], strides = [1, 1]} : vector<416x256xf32> to vector<16x256xf32>
    %138 = arith.addf %137, %62 : vector<16x256xf32>
    %cst_29 = arith.constant 0.000000e+00 : f32
    %139 = vector.broadcast %cst_29 : f32 to vector<16x256xf32>
    %140 = arith.maximumf %138, %139 : vector<16x256xf32>
    %141 = vector.extract_strided_slice %63 {offsets = [9, 0], sizes = [1, 256], strides = [1, 1]} : vector<26x256xf32> to vector<1x256xf32>
    %142 = vector.broadcast %141 : vector<1x256xf32> to vector<16x256xf32>
    %143 = arith.mulf %140, %142 : vector<16x256xf32>
    %144 = arith.addf %136, %143 : vector<16x256xf32>
    %145 = vector.extract_strided_slice %59 {offsets = [160, 0], sizes = [16, 256], strides = [1, 1]} : vector<416x256xf32> to vector<16x256xf32>
    %146 = arith.addf %145, %62 : vector<16x256xf32>
    %cst_30 = arith.constant 0.000000e+00 : f32
    %147 = vector.broadcast %cst_30 : f32 to vector<16x256xf32>
    %148 = arith.maximumf %146, %147 : vector<16x256xf32>
    %149 = vector.extract_strided_slice %63 {offsets = [10, 0], sizes = [1, 256], strides = [1, 1]} : vector<26x256xf32> to vector<1x256xf32>
    %150 = vector.broadcast %149 : vector<1x256xf32> to vector<16x256xf32>
    %151 = arith.mulf %148, %150 : vector<16x256xf32>
    %152 = arith.addf %144, %151 : vector<16x256xf32>
    %153 = vector.extract_strided_slice %59 {offsets = [176, 0], sizes = [16, 256], strides = [1, 1]} : vector<416x256xf32> to vector<16x256xf32>
    %154 = arith.addf %153, %62 : vector<16x256xf32>
    %cst_31 = arith.constant 0.000000e+00 : f32
    %155 = vector.broadcast %cst_31 : f32 to vector<16x256xf32>
    %156 = arith.maximumf %154, %155 : vector<16x256xf32>
    %157 = vector.extract_strided_slice %63 {offsets = [11, 0], sizes = [1, 256], strides = [1, 1]} : vector<26x256xf32> to vector<1x256xf32>
    %158 = vector.broadcast %157 : vector<1x256xf32> to vector<16x256xf32>
    %159 = arith.mulf %156, %158 : vector<16x256xf32>
    %160 = arith.addf %152, %159 : vector<16x256xf32>
    %161 = vector.extract_strided_slice %59 {offsets = [192, 0], sizes = [16, 256], strides = [1, 1]} : vector<416x256xf32> to vector<16x256xf32>
    %162 = arith.addf %161, %62 : vector<16x256xf32>
    %cst_32 = arith.constant 0.000000e+00 : f32
    %163 = vector.broadcast %cst_32 : f32 to vector<16x256xf32>
    %164 = arith.maximumf %162, %163 : vector<16x256xf32>
    %165 = vector.extract_strided_slice %63 {offsets = [12, 0], sizes = [1, 256], strides = [1, 1]} : vector<26x256xf32> to vector<1x256xf32>
    %166 = vector.broadcast %165 : vector<1x256xf32> to vector<16x256xf32>
    %167 = arith.mulf %164, %166 : vector<16x256xf32>
    %168 = arith.addf %160, %167 : vector<16x256xf32>
    %169 = vector.extract_strided_slice %59 {offsets = [208, 0], sizes = [16, 256], strides = [1, 1]} : vector<416x256xf32> to vector<16x256xf32>
    %170 = arith.addf %169, %62 : vector<16x256xf32>
    %cst_33 = arith.constant 0.000000e+00 : f32
    %171 = vector.broadcast %cst_33 : f32 to vector<16x256xf32>
    %172 = arith.maximumf %170, %171 : vector<16x256xf32>
    %173 = vector.extract_strided_slice %63 {offsets = [13, 0], sizes = [1, 256], strides = [1, 1]} : vector<26x256xf32> to vector<1x256xf32>
    %174 = vector.broadcast %173 : vector<1x256xf32> to vector<16x256xf32>
    %175 = arith.mulf %172, %174 : vector<16x256xf32>
    %176 = arith.addf %168, %175 : vector<16x256xf32>
    %177 = vector.extract_strided_slice %59 {offsets = [224, 0], sizes = [16, 256], strides = [1, 1]} : vector<416x256xf32> to vector<16x256xf32>
    %178 = arith.addf %177, %62 : vector<16x256xf32>
    %cst_34 = arith.constant 0.000000e+00 : f32
    %179 = vector.broadcast %cst_34 : f32 to vector<16x256xf32>
    %180 = arith.maximumf %178, %179 : vector<16x256xf32>
    %181 = vector.extract_strided_slice %63 {offsets = [14, 0], sizes = [1, 256], strides = [1, 1]} : vector<26x256xf32> to vector<1x256xf32>
    %182 = vector.broadcast %181 : vector<1x256xf32> to vector<16x256xf32>
    %183 = arith.mulf %180, %182 : vector<16x256xf32>
    %184 = arith.addf %176, %183 : vector<16x256xf32>
    %185 = vector.extract_strided_slice %59 {offsets = [240, 0], sizes = [16, 256], strides = [1, 1]} : vector<416x256xf32> to vector<16x256xf32>
    %186 = arith.addf %185, %62 : vector<16x256xf32>
    %cst_35 = arith.constant 0.000000e+00 : f32
    %187 = vector.broadcast %cst_35 : f32 to vector<16x256xf32>
    %188 = arith.maximumf %186, %187 : vector<16x256xf32>
    %189 = vector.extract_strided_slice %63 {offsets = [15, 0], sizes = [1, 256], strides = [1, 1]} : vector<26x256xf32> to vector<1x256xf32>
    %190 = vector.broadcast %189 : vector<1x256xf32> to vector<16x256xf32>
    %191 = arith.mulf %188, %190 : vector<16x256xf32>
    %192 = arith.addf %184, %191 : vector<16x256xf32>
    %193 = vector.extract_strided_slice %59 {offsets = [256, 0], sizes = [16, 256], strides = [1, 1]} : vector<416x256xf32> to vector<16x256xf32>
    %194 = arith.addf %193, %62 : vector<16x256xf32>
    %cst_36 = arith.constant 0.000000e+00 : f32
    %195 = vector.broadcast %cst_36 : f32 to vector<16x256xf32>
    %196 = arith.maximumf %194, %195 : vector<16x256xf32>
    %197 = vector.extract_strided_slice %63 {offsets = [16, 0], sizes = [1, 256], strides = [1, 1]} : vector<26x256xf32> to vector<1x256xf32>
    %198 = vector.broadcast %197 : vector<1x256xf32> to vector<16x256xf32>
    %199 = arith.mulf %196, %198 : vector<16x256xf32>
    %200 = arith.addf %192, %199 : vector<16x256xf32>
    %201 = vector.extract_strided_slice %59 {offsets = [272, 0], sizes = [16, 256], strides = [1, 1]} : vector<416x256xf32> to vector<16x256xf32>
    %202 = arith.addf %201, %62 : vector<16x256xf32>
    %cst_37 = arith.constant 0.000000e+00 : f32
    %203 = vector.broadcast %cst_37 : f32 to vector<16x256xf32>
    %204 = arith.maximumf %202, %203 : vector<16x256xf32>
    %205 = vector.extract_strided_slice %63 {offsets = [17, 0], sizes = [1, 256], strides = [1, 1]} : vector<26x256xf32> to vector<1x256xf32>
    %206 = vector.broadcast %205 : vector<1x256xf32> to vector<16x256xf32>
    %207 = arith.mulf %204, %206 : vector<16x256xf32>
    %208 = arith.addf %200, %207 : vector<16x256xf32>
    %209 = vector.extract_strided_slice %59 {offsets = [288, 0], sizes = [16, 256], strides = [1, 1]} : vector<416x256xf32> to vector<16x256xf32>
    %210 = arith.addf %209, %62 : vector<16x256xf32>
    %cst_38 = arith.constant 0.000000e+00 : f32
    %211 = vector.broadcast %cst_38 : f32 to vector<16x256xf32>
    %212 = arith.maximumf %210, %211 : vector<16x256xf32>
    %213 = vector.extract_strided_slice %63 {offsets = [18, 0], sizes = [1, 256], strides = [1, 1]} : vector<26x256xf32> to vector<1x256xf32>
    %214 = vector.broadcast %213 : vector<1x256xf32> to vector<16x256xf32>
    %215 = arith.mulf %212, %214 : vector<16x256xf32>
    %216 = arith.addf %208, %215 : vector<16x256xf32>
    %217 = vector.extract_strided_slice %59 {offsets = [304, 0], sizes = [16, 256], strides = [1, 1]} : vector<416x256xf32> to vector<16x256xf32>
    %218 = arith.addf %217, %62 : vector<16x256xf32>
    %cst_39 = arith.constant 0.000000e+00 : f32
    %219 = vector.broadcast %cst_39 : f32 to vector<16x256xf32>
    %220 = arith.maximumf %218, %219 : vector<16x256xf32>
    %221 = vector.extract_strided_slice %63 {offsets = [19, 0], sizes = [1, 256], strides = [1, 1]} : vector<26x256xf32> to vector<1x256xf32>
    %222 = vector.broadcast %221 : vector<1x256xf32> to vector<16x256xf32>
    %223 = arith.mulf %220, %222 : vector<16x256xf32>
    %224 = arith.addf %216, %223 : vector<16x256xf32>
    %225 = vector.extract_strided_slice %59 {offsets = [320, 0], sizes = [16, 256], strides = [1, 1]} : vector<416x256xf32> to vector<16x256xf32>
    %226 = arith.addf %225, %62 : vector<16x256xf32>
    %cst_40 = arith.constant 0.000000e+00 : f32
    %227 = vector.broadcast %cst_40 : f32 to vector<16x256xf32>
    %228 = arith.maximumf %226, %227 : vector<16x256xf32>
    %229 = vector.extract_strided_slice %63 {offsets = [20, 0], sizes = [1, 256], strides = [1, 1]} : vector<26x256xf32> to vector<1x256xf32>
    %230 = vector.broadcast %229 : vector<1x256xf32> to vector<16x256xf32>
    %231 = arith.mulf %228, %230 : vector<16x256xf32>
    %232 = arith.addf %224, %231 : vector<16x256xf32>
    %233 = vector.extract_strided_slice %59 {offsets = [336, 0], sizes = [16, 256], strides = [1, 1]} : vector<416x256xf32> to vector<16x256xf32>
    %234 = arith.addf %233, %62 : vector<16x256xf32>
    %cst_41 = arith.constant 0.000000e+00 : f32
    %235 = vector.broadcast %cst_41 : f32 to vector<16x256xf32>
    %236 = arith.maximumf %234, %235 : vector<16x256xf32>
    %237 = vector.extract_strided_slice %63 {offsets = [21, 0], sizes = [1, 256], strides = [1, 1]} : vector<26x256xf32> to vector<1x256xf32>
    %238 = vector.broadcast %237 : vector<1x256xf32> to vector<16x256xf32>
    %239 = arith.mulf %236, %238 : vector<16x256xf32>
    %240 = arith.addf %232, %239 : vector<16x256xf32>
    %241 = vector.extract_strided_slice %59 {offsets = [352, 0], sizes = [16, 256], strides = [1, 1]} : vector<416x256xf32> to vector<16x256xf32>
    %242 = arith.addf %241, %62 : vector<16x256xf32>
    %cst_42 = arith.constant 0.000000e+00 : f32
    %243 = vector.broadcast %cst_42 : f32 to vector<16x256xf32>
    %244 = arith.maximumf %242, %243 : vector<16x256xf32>
    %245 = vector.extract_strided_slice %63 {offsets = [22, 0], sizes = [1, 256], strides = [1, 1]} : vector<26x256xf32> to vector<1x256xf32>
    %246 = vector.broadcast %245 : vector<1x256xf32> to vector<16x256xf32>
    %247 = arith.mulf %244, %246 : vector<16x256xf32>
    %248 = arith.addf %240, %247 : vector<16x256xf32>
    %249 = vector.extract_strided_slice %59 {offsets = [368, 0], sizes = [16, 256], strides = [1, 1]} : vector<416x256xf32> to vector<16x256xf32>
    %250 = arith.addf %249, %62 : vector<16x256xf32>
    %cst_43 = arith.constant 0.000000e+00 : f32
    %251 = vector.broadcast %cst_43 : f32 to vector<16x256xf32>
    %252 = arith.maximumf %250, %251 : vector<16x256xf32>
    %253 = vector.extract_strided_slice %63 {offsets = [23, 0], sizes = [1, 256], strides = [1, 1]} : vector<26x256xf32> to vector<1x256xf32>
    %254 = vector.broadcast %253 : vector<1x256xf32> to vector<16x256xf32>
    %255 = arith.mulf %252, %254 : vector<16x256xf32>
    %256 = arith.addf %248, %255 : vector<16x256xf32>
    %257 = vector.extract_strided_slice %59 {offsets = [384, 0], sizes = [16, 256], strides = [1, 1]} : vector<416x256xf32> to vector<16x256xf32>
    %258 = arith.addf %257, %62 : vector<16x256xf32>
    %cst_44 = arith.constant 0.000000e+00 : f32
    %259 = vector.broadcast %cst_44 : f32 to vector<16x256xf32>
    %260 = arith.maximumf %258, %259 : vector<16x256xf32>
    %261 = vector.extract_strided_slice %63 {offsets = [24, 0], sizes = [1, 256], strides = [1, 1]} : vector<26x256xf32> to vector<1x256xf32>
    %262 = vector.broadcast %261 : vector<1x256xf32> to vector<16x256xf32>
    %263 = arith.mulf %260, %262 : vector<16x256xf32>
    %264 = arith.addf %256, %263 : vector<16x256xf32>
    %265 = vector.extract_strided_slice %59 {offsets = [400, 0], sizes = [16, 256], strides = [1, 1]} : vector<416x256xf32> to vector<16x256xf32>
    %266 = arith.addf %265, %62 : vector<16x256xf32>
    %cst_45 = arith.constant 0.000000e+00 : f32
    %267 = vector.broadcast %cst_45 : f32 to vector<16x256xf32>
    %268 = arith.maximumf %266, %267 : vector<16x256xf32>
    %269 = vector.extract_strided_slice %63 {offsets = [25, 0], sizes = [1, 256], strides = [1, 1]} : vector<26x256xf32> to vector<1x256xf32>
    %270 = vector.broadcast %269 : vector<1x256xf32> to vector<16x256xf32>
    %271 = arith.mulf %268, %270 : vector<16x256xf32>
    %272 = arith.addf %264, %271 : vector<16x256xf32>
    %cst_46 = arith.constant dense<0.000000e+00> : vector<16xf32>
    %273 = vector.multi_reduction <add>, %272, %cst_46 [1] : vector<16x256xf32> to vector<16xf32>
    %274 = vector.shape_cast %273 : vector<16xf32> to vector<16x1xf32>
    %c0_47 = arith.constant 0 : index
    %c0_48 = arith.constant 0 : index
    %275 = vector.load %arg9[%c0_47, %c0_48] : memref<1x1xf32, #tpu.memory_space<vmem>>, vector<1x1xf32>
    %276 = vector.broadcast %275 : vector<1x1xf32> to vector<16x1xf32>
    %277 = arith.addf %274, %276 : vector<16x1xf32>
    %cst_49 = arith.constant 0.000000e+00 : f32
    %278 = vector.broadcast %cst_49 : f32 to vector<16x1xf32>
    %279 = arith.subf %278, %277 : vector<16x1xf32>
    %280 = math.exp %279 : vector<16x1xf32>
    %cst_50 = arith.constant 1.000000e+00 : f32
    %281 = vector.broadcast %cst_50 : f32 to vector<16x1xf32>
    %282 = arith.addf %281, %280 : vector<16x1xf32>
    %cst_51 = arith.constant 1.000000e+00 : f32
    %283 = vector.broadcast %cst_51 : f32 to vector<16x1xf32>
    %284 = arith.divf %283, %282 : vector<16x1xf32>
    %285 = vector.shape_cast %284 : vector<16x1xf32> to vector<16x1xf32>
    %286 = vector.broadcast %285 : vector<16x1xf32> to vector<16x128xf32>
    %c0_52 = arith.constant 0 : index
    %c0_53 = arith.constant 0 : index
    %287 = vector.load %arg10[%c0_52, %c0_53] : memref<16x128xf32, #tpu.memory_space<vmem>>, vector<16x128xf32>
    tpu.vector_store %arg10[%c0_52, %c0_53], %286 {strides = array<i32>} : memref<16x128xf32, #tpu.memory_space<vmem>>, vector<16x128xf32>,
    return
  }
  func.func @transform_0(%arg0: i32) -> (i32, i32) {
    %c0_i32 = arith.constant 0 : i32
    %c0_i32_0 = arith.constant 0 : i32
    return %arg0, %c0_i32 : i32, i32
  }
  func.func @transform_1(%arg0: i32) -> (i32, i32) {
    %c0_i32 = arith.constant 0 : i32
    %c0_i32_0 = arith.constant 0 : i32
    %c0_i32_1 = arith.constant 0 : i32
    return %c0_i32, %c0_i32_0 : i32, i32
  }
  func.func @transform_2(%arg0: i32) -> (i32, i32) {
    %c0_i32 = arith.constant 0 : i32
    %c0_i32_0 = arith.constant 0 : i32
    %c0_i32_1 = arith.constant 0 : i32
    return %c0_i32, %c0_i32_0 : i32, i32
  }
  func.func @transform_3(%arg0: i32) -> (i32, i32) {
    %c0_i32 = arith.constant 0 : i32
    %c0_i32_0 = arith.constant 0 : i32
    %c0_i32_1 = arith.constant 0 : i32
    return %c0_i32, %c0_i32_0 : i32, i32
  }
  func.func @transform_4(%arg0: i32) -> (i32, i32) {
    %c0_i32 = arith.constant 0 : i32
    %c0_i32_0 = arith.constant 0 : i32
    %c0_i32_1 = arith.constant 0 : i32
    return %c0_i32, %c0_i32_0 : i32, i32
  }
  func.func @transform_5(%arg0: i32) -> (i32, i32) {
    %c0_i32 = arith.constant 0 : i32
    %c0_i32_0 = arith.constant 0 : i32
    %c0_i32_1 = arith.constant 0 : i32
    return %c0_i32, %c0_i32_0 : i32, i32
  }
  func.func @transform_6(%arg0: i32) -> (i32, i32) {
    %c0_i32 = arith.constant 0 : i32
    %c0_i32_0 = arith.constant 0 : i32
    %c0_i32_1 = arith.constant 0 : i32
    return %c0_i32, %c0_i32_0 : i32, i32
  }
  func.func @transform_7(%arg0: i32) -> (i32, i32) {
    %c0_i32 = arith.constant 0 : i32
    %c0_i32_0 = arith.constant 0 : i32
    %c0_i32_1 = arith.constant 0 : i32
    return %c0_i32, %c0_i32_0 : i32, i32
  }
  func.func @transform_8(%arg0: i32) -> (i32, i32) {
    %c0_i32 = arith.constant 0 : i32
    %c0_i32_0 = arith.constant 0 : i32
    %c0_i32_1 = arith.constant 0 : i32
    return %c0_i32, %c0_i32_0 : i32, i32
  }
  func.func @transform_9(%arg0: i32) -> (i32, i32) {
    %c0_i32 = arith.constant 0 : i32
    %c0_i32_0 = arith.constant 0 : i32
    return %arg0, %c0_i32 : i32, i32
  }
}

</mosaic_0001>

<bundles_post_ra>
// kernel: convnet_forward.1
= control target key start
LH: loop header
LB: loop body
LE: loop exit
PB: predicated region body
PF: predicated region fallthrough
CT: control target
= control target key end

     0   :  { %s6071_s0 = inlined_call_operand.vmem [shape: bf16[16,404], index: 0, kind: input, shape index: {}]   ;;  %s6072_s1 = inlined_call_operand.hbm [shape: bf16[404,768], index: 1, kind: input, shape index: {}]   ;;  %s6073_s2 = inlined_call_operand.vmem [shape: f32[1,768], index: 2, kind: input, shape index: {}]   ;;  %s6074_s3 = inlined_call_operand.hbm [shape: bf16[256,512], index: 3, kind: input, shape index: {}]   ;;  %s6075_s4 = inlined_call_operand.vmem [shape: f32[1,512], index: 4, kind: input, shape index: {}]   ;;  %s6076_s5 = inlined_call_operand.hbm [shape: bf16[512,256], index: 5, kind: input, shape index: {}]   ;;  %s6077_s6 = inlined_call_operand.vmem [shape: f32[1,256], index: 6, kind: input, shape index: {}]   ;;  %s6078_s7 = inlined_call_operand.vmem [shape: f32[26,256], index: 7, kind: input, shape index: {}]   ;;  %s6079_s8 = inlined_call_operand.<no memory space> [shape: f32[1,1], index: 8, kind: input, shape index: {}]   ;;  %s6080_s9 = inlined_call_operand.vmem [shape: f32[16,128], index: 9, kind: output, shape index: {}]  }
   0x1   :  { %v14_v0 = vstv %s6079_s8 }
   0x2   :  { %15 = vst [vmem:[#allocation2] sm:$0x1] %v14_v0 }
   0x3   :  { %16 = vsyncpa [#allocation4], 0 }
   0x4   :  { %17 = vsyncpa [#allocation6], 0  ;;  %s4683_s11 = smov [#allocation5]   ;;  %s4613_s15 = scalar_lea.hbm %s6074_s3, 8192 }
   0x5   :  { %s39_s12 = sshll.u32 %s4683_s11, 4  ;;  %p4614_p0 = scmp.ne.s32.totalorder %s6074_s3, %s4613_s15  ;;  %s40_s12 = int_to_ptr.vmem [resolvable:$true] %s39_s12 }
   0x6   :  { %p4617_p1 = scmp.lt.u32.totalorder %s4613_s15, %s6074_s3 }
   0x8   :  { %p4619_p2 = pnand %p4617_p1, %p4614_p0 }
   0xa   :  { %4622 = shalt.err (!%p4619_p2)
}
   0xb   :  { %s4623_s8 = scalar_lea.vmem %s40_s12, 8192  ;;  %p4628_p4 = scmp.lt.s32.totalorder %s40_s12, %s40_s12 }
   0xc   :  { %p4624_p3 = scmp.ne.s32.totalorder %s40_s12, %s4623_s8  ;;  %p4629_p5 = scmp.lt.s32.totalorder %s4623_s8, %s4623_s8 }
   0xe   :  { %p4630_p6 = por %p4629_p5, %p4628_p4 }
  0x10   :  { %p4631_p7 = pnand %p4630_p6, %p4624_p3 }
  0x12   :  { %4634 = shalt.err (!%p4631_p7)
}
  0x13   :  { %s4684_s20 = smov 256   ;;  %s4685_s21 = smov 16  }
  0x14   :  { %45 = dma.hbm_to_vmem [thread:$0]  %s6074_s3, 8192, %s40_s12, [#allocation6], %s4684_s20, %s4684_s20, %s4685_s21  }
  0x15   :  { %s4686_s24 = smov [#allocation3]   ;;  %s4635_s28 = scalar_lea.hbm %s6072_s1, 19584 }
  0x16   :  { %s25_s25 = sshll.u32 %s4686_s24, 4  ;;  %p4636_p8 = scmp.ne.s32.totalorder %s6072_s1, %s4635_s28  ;;  %s26_s25 = int_to_ptr.vmem [resolvable:$true] %s25_s25 }
  0x17   :  { %p4639_p9 = scmp.lt.u32.totalorder %s4635_s28, %s6072_s1 }
  0x19   :  { %p4641_p10 = pnand %p4639_p9, %p4636_p8 }
  0x1b   :  { %4644 = shalt.err (!%p4641_p10)
}
  0x1c   :  { %s4645_s13 = scalar_lea.vmem %s26_s25, 19584  ;;  %p4650_p12 = scmp.lt.s32.totalorder %s26_s25, %s26_s25 }
  0x1d   :  { %p4646_p11 = scmp.ne.s32.totalorder %s26_s25, %s4645_s13  ;;  %p4651_p13 = scmp.lt.s32.totalorder %s4645_s13, %s4645_s13 }
  0x1f   :  { %p4652_p0 = por %p4651_p13, %p4650_p12 }
  0x21   :  { %p4653_p1 = pnand %p4652_p0, %p4646_p11 }
  0x23   :  { %4656 = shalt.err (!%p4653_p1)
}
  0x24   :  { %s4687_s3 = smov 384   ;;  %s4688_s12 = smov 24  }
  0x25   :  { %31 = dma.hbm_to_vmem [thread:$0]  %s6072_s1, 19584, %s26_s25, [#allocation4], %s4687_s3, %s4687_s3, %s4688_s12  }
  0x26   :  { %s4689_s16 = smov [#allocation7]   ;;  %s4657_s8 = scalar_lea.hbm %s6076_s5, 8192 }
  0x27   :  { %s53_s17 = sshll.u32 %s4689_s16, 4  ;;  %p4658_p2 = scmp.ne.s32.totalorder %s6076_s5, %s4657_s8  ;;  %s54_s17 = int_to_ptr.vmem [resolvable:$true] %s53_s17 }
  0x28   :  { %p4661_p3 = scmp.lt.u32.totalorder %s4657_s8, %s6076_s5 }
  0x2a   :  { %p4663_p4 = pnand %p4661_p3, %p4658_p2 }
  0x2c   :  { %4666 = shalt.err (!%p4663_p4)
}
  0x2d   :  { %s4667_s24 = scalar_lea.vmem %s54_s17, 8192  ;;  %p4672_p6 = scmp.lt.s32.totalorder %s54_s17, %s54_s17 }
  0x2e   :  { %p4668_p5 = scmp.ne.s32.totalorder %s54_s17, %s4667_s24  ;;  %p4673_p7 = scmp.lt.s32.totalorder %s4667_s24, %s4667_s24 }
  0x30   :  { %p4674_p8 = por %p4673_p7, %p4672_p6 }
  0x32   :  { %p4675_p9 = pnand %p4674_p8, %p4668_p5 }
  0x34   :  { %4678 = shalt.err (!%p4675_p9)
}
  0x35   :  { %s4690_s1 = smov 128   ;;  %s4691_s25 = smov 8  }
  0x36   :  { %59 = dma.hbm_to_vmem [thread:$0]  %s6076_s5, 8192, %s54_s17, [#allocation6], %s4690_s1, %s4690_s1, %s4691_s25  }
  0x37   :  { %4679 = dma.done.wait [#allocation4], 19584  }
  0x38   :  { %4680 = vsyncadd [#allocation4], 4294947712 }
  0x39   :  { %4681 = dma.done.wait [#allocation6], 16384  }
  0x3a   :  { %4682 = vsyncadd [#allocation6], 4294950912  ;;  %v4176_v1 = vld [vmem:[#allocation3 + $0x4] ss:$24 sps:$4 sm:$0xff]   ;;  %v4178_v2 = vld [vmem:[#allocation3] ss:$24 sps:$4 sm:$0xff]  }
  0x3b   :  { %1072 = vmatprep.subr.bf16.mxu0 %v4176_v1  ;;  %v4179_v3 = vld [vmem:[#allocation3 + $0x34] ss:$24 sps:$4 sm:$0xff]   ;;  %v4181_v4 = vld [vmem:[#allocation3 + $0x30] ss:$24 sps:$4 sm:$0xff]   ;;  %v4182_v5 = vld [vmem:[#allocation3 + $0x64] ss:$24 sps:$4 sm:$0xff]  }
  0x3c   :  { %1073 = vmatpush1.bf16.msra.mxu0 %v4178_v2  ;;  %v4185_v6 = vld [vmem:[#allocation3 + $0xc] ss:$24 sps:$4 sm:$0xff]   ;;  %v4187_v7 = vld [vmem:[#allocation3 + $0x8] ss:$24 sps:$4 sm:$0xff]   ;;  %v4191_v9 = vld [vmem:[#allocation3 + $0x3c] ss:$24 sps:$4 sm:$0xff]  }
  0x3d   :  { %1074 = vmatprep.subr.bf16.mxu0 %v4179_v3  ;;  %v4184_v8 = vld [vmem:[#allocation3 + $0x60] ss:$24 sps:$4 sm:$0xff]   ;;  %1158 = vmatprep.subr.bf16.mxu1 %v4185_v6  ;;  %v4188_v11 = vld [vmem:[#allocation3 + $0x94] ss:$24 sps:$4 sm:$0xff]   ;;  %v4190_v12 = vld [vmem:[#allocation3 + $0x90] ss:$24 sps:$4 sm:$0xff]  }
  0x3e   :  { %1159 = vmatpush1.bf16.msra.mxu1 %v4187_v7  ;;  %v4193_v10 = vld [vmem:[#allocation3 + $0x38] ss:$24 sps:$4 sm:$0xff]   ;;  %v4197_v13 = vld [vmem:[#allocation3 + $0x6c] ss:$24 sps:$4 sm:$0xff]   ;;  %v4199_v15 = vld [vmem:[#allocation3 + $0x68] ss:$24 sps:$4 sm:$0xff]  }
  0x3f   :  { %1160 = vmatprep.subr.bf16.mxu1 %v4191_v9  ;;  %v4194_v14 = vld [vmem:[#allocation3 + $0xc4] ss:$24 sps:$4 sm:$0xff]   ;;  %v4196_v17 = vld [vmem:[#allocation3 + $0xc0] ss:$24 sps:$4 sm:$0xff]   ;;  %v4200_v18 = vld [vmem:[#allocation3 + $0xf4] ss:$24 sps:$4 sm:$0xff]  }
  0x40   :  { %1075 = vmatpush1.bf16.msra.mxu0 %v4181_v4  ;;  %v4203_v16 = vld [vmem:[#allocation3 + $0x9c] ss:$24 sps:$4 sm:$0xff]   ;;  %v4205_v19 = vld [vmem:[#allocation3 + $0x98] ss:$24 sps:$4 sm:$0xff]   ;;  %v4209_v20 = vld [vmem:[#allocation3 + $0xcc] ss:$24 sps:$4 sm:$0xff]  }
  0x41   :  { %1076 = vmatprep.subr.bf16.mxu0 %v4182_v5  ;;  %v4202_v21 = vld [vmem:[#allocation3 + $0xf0] ss:$24 sps:$4 sm:$0xff]   ;;  %v4206_v22 = vld [vmem:[#allocation3 + $0x124] ss:$24 sps:$4 sm:$0xff]   ;;  %v4208_v25 = vld [vmem:[#allocation3 + $0x120] ss:$24 sps:$4 sm:$0xff]  }
  0x42   :  { %1161 = vmatpush1.bf16.msra.mxu1 %v4193_v10  ;;  %v4211_v23 = vld [vmem:[#allocation3 + $0xc8] ss:$24 sps:$4 sm:$0xff]   ;;  %v4215_v24 = vld [vmem:[#allocation3 + $0xfc] ss:$24 sps:$4 sm:$0xff]   ;;  %v4217_v27 = vld [vmem:[#allocation3 + $0xf8] ss:$24 sps:$4 sm:$0xff]  }
  0x43   :  { %1162 = vmatprep.subr.bf16.mxu1 %v4197_v13  ;;  %v4212_v26 = vld [vmem:[#allocation3 + $0x154] ss:$24 sps:$4 sm:$0xff]   ;;  %v4214_v29 = vld [vmem:[#allocation3 + $0x150] ss:$24 sps:$4 sm:$0xff]   ;;  %v4218_v30 = vld [vmem:[#allocation3 + $0x184] ss:$24 sps:$4 sm:$0xff]  }
  0x44   :  { %1077 = vmatpush1.bf16.msra.mxu0 %v4184_v8  ;;  %v4221_v28 = vld [vmem:[#allocation3 + $0x12c] ss:$24 sps:$4 sm:$0xff]   ;;  %v4223_v31 = vld [vmem:[#allocation3 + $0x128] ss:$24 sps:$4 sm:$0xff]   ;;  %v4227_v32 = vld [vmem:[#allocation3 + $0x15c] ss:$24 sps:$4 sm:$0xff]  }
  0x45   :  { %1078 = vmatprep.subr.bf16.mxu0 %v4188_v11  ;;  %v4220_v33 = vld [vmem:[#allocation3 + $0x180] ss:$24 sps:$4 sm:$0xff]   ;;  %v4224_v34 = vld [vmem:[#allocation3 + $0x1b4] ss:$24 sps:$4 sm:$0xff]   ;;  %v4226_v37 = vld [vmem:[#allocation3 + $0x1b0] ss:$24 sps:$4 sm:$0xff]  }
  0x46   :  { %1163 = vmatpush1.bf16.msra.mxu1 %v4199_v15  ;;  %v4229_v35 = vld [vmem:[#allocation3 + $0x158] ss:$24 sps:$4 sm:$0xff]   ;;  %v4233_v36 = vld [vmem:[#allocation3 + $0x18c] ss:$24 sps:$4 sm:$0xff]   ;;  %v4235_v39 = vld [vmem:[#allocation3 + $0x188] ss:$24 sps:$4 sm:$0xff]  }
  0x47   :  { %1164 = vmatprep.subr.bf16.mxu1 %v4203_v16  ;;  %v4230_v38 = vld [vmem:[#allocation3 + $0x1e4] ss:$24 sps:$4 sm:$0xff]   ;;  %v4232_v41 = vld [vmem:[#allocation3 + $0x1e0] ss:$24 sps:$4 sm:$0xff]   ;;  %v4236_v42 = vld [vmem:[#allocation3 + $0x214] ss:$24 sps:$4 sm:$0xff]  }
  0x48   :  { %1079 = vmatpush1.bf16.msra.mxu0 %v4190_v12  ;;  %v4239_v40 = vld [vmem:[#allocation3 + $0x1bc] ss:$24 sps:$4 sm:$0xff]   ;;  %v4241_v43 = vld [vmem:[#allocation3 + $0x1b8] ss:$24 sps:$4 sm:$0xff]   ;;  %v4245_v44 = vld [vmem:[#allocation3 + $0x1ec] ss:$24 sps:$4 sm:$0xff]  }
  0x49   :  { %1080 = vmatprep.subr.bf16.mxu0 %v4194_v14  ;;  %v4786_v45 = vld [vmem:[%s6071_s0 + $0x4] ss:$16 sps:$4 sm:$0xff]   ;;  %v4793_v3 = vld [vmem:[%s6071_s0] ss:$16 sps:$4 sm:$0xff]   ;;  %vm1049_vm0 = vcmask 162816   ;;  %vm1053_vm1 = vcmask 1041408  }
  0x4a   :  { %1165 = vmatpush1.bf16.msra.mxu1 %v4205_v19  ;;  %v4238_v46 = vld [vmem:[#allocation3 + $0x210] ss:$24 sps:$4 sm:$0xff]   ;;  %1104 = vmatprep.mubr.bf16.mxu0 %v4786_v45  ;;  %v4242_v47 = vld [vmem:[#allocation3 + $0x244] ss:$24 sps:$4 sm:$0xff]   ;;  %v4244_v50 = vld [vmem:[#allocation3 + $0x240] ss:$24 sps:$4 sm:$0xff]  }
  0x4b   :  { %1166 = vmatprep.subr.bf16.mxu1 %v4209_v20  ;;  %1190 = vmatprep.mubr.bf16.mxu1 %v4786_v45  ;;  %v4247_v48 = vld [vmem:[#allocation3 + $0x1e8] ss:$24 sps:$4 sm:$0xff]   ;;  %v4251_v49 = vld [vmem:[#allocation3 + $0x21c] ss:$24 sps:$4 sm:$0xff]   ;;  %v4253_v52 = vld [vmem:[#allocation3 + $0x218] ss:$24 sps:$4 sm:$0xff]  }
  0x4c   :  { %1081 = vmatpush1.bf16.msra.mxu0 %v4196_v17  ;;  %v4248_v51 = vld [vmem:[#allocation3 + $0x274] ss:$24 sps:$4 sm:$0xff]   ;;  %v4250_v54 = vld [vmem:[#allocation3 + $0x270] ss:$24 sps:$4 sm:$0xff]   ;;  %v4254_v55 = vld [vmem:[#allocation3 + $0x2a4] ss:$24 sps:$4 sm:$0xff]  }
  0x4d   :  { %1082 = vmatprep.subr.bf16.mxu0 %v4200_v18  ;;  %v4257_v53 = vld [vmem:[#allocation3 + $0x24c] ss:$24 sps:$4 sm:$0xff]   ;;  %v4259_v56 = vld [vmem:[#allocation3 + $0x248] ss:$24 sps:$4 sm:$0xff]   ;;  %v4263_v57 = vld [vmem:[#allocation3 + $0x27c] ss:$24 sps:$4 sm:$0xff]  }
  0x4e   :  { %1167 = vmatpush1.bf16.msra.mxu1 %v4211_v23  ;;  %v4256_v58 = vld [vmem:[#allocation3 + $0x2a0] ss:$24 sps:$4 sm:$0xff]   ;;  %v4260_v59 = vld [vmem:[#allocation3 + $0x2d4] ss:$24 sps:$4 sm:$0xff]   ;;  %v4262_v62 = vld [vmem:[#allocation3 + $0x2d0] ss:$24 sps:$4 sm:$0xff]  }
  0x4f   :  { %1168 = vmatprep.subr.bf16.mxu1 %v4215_v24  ;;  %v4265_v60 = vld [vmem:[#allocation3 + $0x278] ss:$24 sps:$4 sm:$0xff]   ;;  %v4272_v61 = vld [vmem:[#allocation3 + $0x2ac] ss:$24 sps:$4 sm:$0xff]   ;;  %v4274_v0 = vld [vmem:[#allocation3 + $0x2a8] ss:$24 sps:$4 sm:$0xff]  }
  0x50   :  { %1083 = vmatpush1.bf16.msra.mxu0 %v4202_v21  ;;  %v4270_v63 = vld [vmem:[#allocation3 + $0x304] ss:$24 sps:$4 sm:$0xff]   ;;  %v4268_v2 = vld [vmem:[#allocation3 + $0x300] ss:$24 sps:$4 sm:$0xff]   ;;  %v4277_v4 = vld [vmem:[#allocation3 + $0x334] ss:$24 sps:$4 sm:$0xff]  }
  0x51   :  { %1084 = vmatprep.subr.bf16.mxu0 %v4206_v22  ;;  %v4278_v1 = vld [vmem:[#allocation3 + $0x2dc] ss:$24 sps:$4 sm:$0xff]   ;;  %v4280_v5 = vld [vmem:[#allocation3 + $0x2d8] ss:$24 sps:$4 sm:$0xff]   ;;  %v4286_v6 = vld [vmem:[#allocation3 + $0x30c] ss:$24 sps:$4 sm:$0xff]  }
  0x52   :  { %1169 = vmatpush1.bf16.msra.mxu1 %v4217_v27  ;;  %v4275_v7 = vld [vmem:[#allocation3 + $0x330] ss:$24 sps:$4 sm:$0xff]   ;;  %v4283_v8 = vld [vmem:[#allocation3 + $0x364] ss:$24 sps:$4 sm:$0xff]   ;;  %v4281_v12 = vld [vmem:[#allocation3 + $0x360] ss:$24 sps:$4 sm:$0xff]  }
  0x53   :  { %1170 = vmatprep.subr.bf16.mxu1 %v4221_v28  ;;  %v4284_v9 = vld [vmem:[#allocation3 + $0x308] ss:$24 sps:$4 sm:$0xff]   ;;  %v4292_v11 = vld [vmem:[#allocation3 + $0x33c] ss:$24 sps:$4 sm:$0xff]   ;;  %v4290_v13 = vld [vmem:[#allocation3 + $0x338] ss:$24 sps:$4 sm:$0xff]  }
  0x54   :  { %1085 = vmatpush1.bf16.msra.mxu0 %v4208_v25  ;;  %v4799_v10 = vld [vmem:[%s6071_s0 + $0xc] ss:$16 sps:$4 sm:$0xff]   ;;  %vm1980_vm2 = vcmask 523264  }
  0x55   :  { %1086 = vmatprep.subr.bf16.mxu0 %v4212_v26  ;;  %v4289_v14 = vld [vmem:[#allocation3 + $0x394] ss:$24 sps:$4 sm:$0xff]   ;;  %v4287_v16 = vld [vmem:[#allocation3 + $0x390] ss:$24 sps:$4 sm:$0xff]   ;;  %v4295_v18 = vld [vmem:[#allocation3 + $0x3c4] ss:$24 sps:$4 sm:$0xff]  }
  0x56   :  { %1171 = vmatpush1.bf16.msra.mxu1 %v4223_v31  ;;  %v4298_v15 = vld [vmem:[#allocation3 + $0x36c] ss:$24 sps:$4 sm:$0xff]   ;;  %v4296_v17 = vld [vmem:[#allocation3 + $0x368] ss:$24 sps:$4 sm:$0xff]   ;;  %v4304_v19 = vld [vmem:[#allocation3 + $0x39c] ss:$24 sps:$4 sm:$0xff]  }
  0x57   :  { %1172 = vmatprep.subr.bf16.mxu1 %v4227_v32  ;;  %v4293_v20 = vld [vmem:[#allocation3 + $0x3c0] ss:$24 sps:$4 sm:$0xff]   ;;  %v4301_v22 = vld [vmem:[#allocation3 + $0x3f4] ss:$24 sps:$4 sm:$0xff]   ;;  %v4299_v24 = vld [vmem:[#allocation3 + $0x3f0] ss:$24 sps:$4 sm:$0xff]  }
  0x58   :  { %1087 = vmatpush1.bf16.msra.mxu0 %v4214_v29  ;;  %v4302_v21 = vld [vmem:[#allocation3 + $0x398] ss:$24 sps:$4 sm:$0xff]   ;;  %v4310_v23 = vld [vmem:[#allocation3 + $0x3cc] ss:$24 sps:$4 sm:$0xff]   ;;  %v4308_v25 = vld [vmem:[#allocation3 + $0x3c8] ss:$24 sps:$4 sm:$0xff]  }
  0x59   :  { %1088 = vmatprep.subr.bf16.mxu0 %v4218_v30  ;;  %v4307_v26 = vld [vmem:[#allocation3 + $0x424] ss:$24 sps:$4 sm:$0xff]   ;;  %v4305_v28 = vld [vmem:[#allocation3 + $0x420] ss:$24 sps:$4 sm:$0xff]   ;;  %v4313_v30 = vld [vmem:[#allocation3 + $0x454] ss:$24 sps:$4 sm:$0xff]  }
  0x5a   :  { %1173 = vmatpush1.bf16.msra.mxu1 %v4229_v35  ;;  %v4316_v27 = vld [vmem:[#allocation3 + $0x3fc] ss:$24 sps:$4 sm:$0xff]   ;;  %v4314_v29 = vld [vmem:[#allocation3 + $0x3f8] ss:$24 sps:$4 sm:$0xff]   ;;  %v4322_v31 = vld [vmem:[#allocation3 + $0x42c] ss:$24 sps:$4 sm:$0xff]  }
  0x5b   :  { %1174 = vmatprep.subr.bf16.mxu1 %v4233_v36  ;;  %v4311_v32 = vld [vmem:[#allocation3 + $0x450] ss:$24 sps:$4 sm:$0xff]   ;;  %v4327_v35 = vld [vmem:[#allocation3 + $0x45c] ss:$24 sps:$4 sm:$0xff]  }
  0x5c   :  { %1089 = vmatpush1.bf16.msra.mxu0 %v4220_v33  ;;  %v4320_v33 = vld [vmem:[#allocation3 + $0x428] ss:$24 sps:$4 sm:$0xff]   ;;  %v230_v36 = vld [vmem:[#allocation3 + $0x4b0] sm:$0x33] }
  0x5d   :  { %1090 = vmatprep.subr.bf16.mxu0 %v4224_v34  ;;  %v4319_v34 = vld [vmem:[#allocation3 + $0x484] ss:$24 sps:$4 sm:$0xff]  }
  0x5e   :  { %1175 = vmatpush1.bf16.msra.mxu1 %v4235_v39  ;;  %v3863_v39 = vcombine.high %v230_v36, %v230_v36 }
  0x5f   :  { %1176 = vmatprep.subr.bf16.mxu1 %v4239_v40  ;;  %v3862_v40 = vcombine.low %v230_v36, %v230_v36  ;;  %v4446_v36 = vld [vmem:[#allocation5 + $0x160] ss:$16 sps:$4 sm:$0xff]  }
  0x60   :  { %1091 = vmatpush1.bf16.msra.mxu0 %v4226_v37  ;;  %v4317_v37 = vld [vmem:[#allocation3 + $0x480] ss:$24 sps:$4 sm:$0xff]  }
  0x61   :  { %1092 = vmatprep.subr.bf16.mxu0 %v4230_v38  ;;  %v4325_v38 = vld [vmem:[#allocation3 + $0x458] ss:$24 sps:$4 sm:$0xff]  }
  0x62   :  { %1177 = vmatpush1.bf16.msra.mxu1 %v4241_v43  ;;  %v4334_v43 = vld [vmem:[#allocation3 + $0x488] ss:$24 sps:$4 sm:$0xff]  }
  0x63   :  { %1178 = vmatprep.subr.bf16.mxu1 %v4245_v44  ;;  %v1055_v44 = vsel %vm1053_vm1, %v3862_v40, 0  ;;  %v4449_v40 = vld [vmem:[#allocation5 + $0x180] ss:$16 sps:$4 sm:$0xff]  }
  0x64   :  { %1093 = vmatpush1.bf16.msra.mxu0 %v4232_v41  ;;  %v4336_v41 = vld [vmem:[#allocation3 + $0x48c] ss:$24 sps:$4 sm:$0xff]  }
  0x65   :  { %1094 = vmatprep.subr.bf16.mxu0 %v4236_v42  ;;  %v231_v42 = vld [vmem:[#allocation3 + $0x4b8] sm:$0x33] }
  0x66   :  { %1179 = vmatpush1.bf16.msra.mxu1 %v4247_v48  ;;  %v3864_v48 = vcombine.low %v231_v42, %v231_v42 }
  0x67   :  { %1180 = vmatprep.subr.bf16.mxu1 %v4251_v49  ;;  %v4811_v49 = vld [vmem:[%s6071_s0 + $0x8] ss:$16 sps:$4 sm:$0xff]  }
  0x68   :  { %1095 = vmatpush1.bf16.msra.mxu0 %v4238_v46  ;;  %v4333_v46 = vld [vmem:[#allocation3 + $0x14] ss:$24 sps:$4 sm:$0xff]  }
  0x69   :  { %1096 = vmatprep.subr.bf16.mxu0 %v4242_v47  ;;  %v3865_v47 = vcombine.high %v231_v42, %v231_v42  ;;  %v4454_v42 = vld [vmem:[#allocation5 + $0x1a4] ss:$16 sps:$4 sm:$0xff]  }
  0x6a   :  { %1181 = vmatpush1.bf16.msra.mxu1 %v4253_v52  ;;  %v1061_v52 = vsel %vm1053_vm1, %v3864_v48, 0  ;;  %v4386_v48 = vld [vmem:[#allocation3 + $0x314] ss:$24 sps:$4 sm:$0xff]  }
  0x6b   :  { %1182 = vmatprep.subr.bf16.mxu1 %v4257_v53  ;;  %v4415_v53 = vld [vmem:[#allocation5 + $0x4] ss:$16 sps:$4 sm:$0xff]  }
  0x6c   :  { %1097 = vmatpush1.bf16.msra.mxu0 %v4244_v50  ;;  %v4331_v50 = vld [vmem:[#allocation3 + $0x10] ss:$24 sps:$4 sm:$0xff]  }
  0x6d   :  { %1098 = vmatprep.subr.bf16.mxu0 %v4248_v51  ;;  %v4339_v51 = vld [vmem:[#allocation3 + $0x44] ss:$24 sps:$4 sm:$0xff]  }
  0x6e   :  { %1183 = vmatpush1.bf16.msra.mxu1 %v4259_v56  ;;  %v4344_v56 = vld [vmem:[#allocation3 + $0x74] ss:$24 sps:$4 sm:$0xff]  }
  0x6f   :  { %1184 = vmatprep.subr.bf16.mxu1 %v4263_v57  ;;  %v4418_v57 = vld [vmem:[#allocation5 + $0x24] ss:$16 sps:$4 sm:$0xff]  }
  0x70   :  { %1099 = vmatpush1.bf16.msra.mxu0 %v4250_v54  ;;  %v4337_v54 = vld [vmem:[#allocation3 + $0x40] ss:$24 sps:$4 sm:$0xff]  }
  0x71   :  { %1100 = vmatprep.subr.bf16.mxu0 %v4254_v55  ;;  %v4413_v55 = vld [vmem:[#allocation5] ss:$16 sps:$4 sm:$0xff]  }
  0x72   :  { %1185 = vmatpush1.bf16.msra.mxu1 %v4265_v60  ;;  %v4347_v60 = vld [vmem:[#allocation3 + $0xa4] ss:$24 sps:$4 sm:$0xff]  }
  0x73   :  { %1186 = vmatprep.subr.bf16.mxu1 %v4272_v61  ;;  %v4421_v61 = vld [vmem:[#allocation5 + $0x44] ss:$16 sps:$4 sm:$0xff]  }
  0x74   :  { %1101 = vmatpush1.bf16.msra.mxu0 %v4256_v58  ;;  %v4342_v58 = vld [vmem:[#allocation3 + $0x70] ss:$24 sps:$4 sm:$0xff]  }
  0x75   :  { %1102 = vmatprep.subr.bf16.mxu0 %v4260_v59  ;;  %v4416_v59 = vld [vmem:[#allocation5 + $0x20] ss:$16 sps:$4 sm:$0xff]  }
  0x76   :  { %1187 = vmatpush1.bf16.msra.mxu1 %v4274_v0  ;;  %v4350_v0 = vld [vmem:[#allocation3 + $0xd4] ss:$24 sps:$4 sm:$0xff]  }
  0x77   :  { %1188 = vmatprep.subr.bf16.mxu1 %v4278_v1  ;;  %v4348_v1 = vld [vmem:[#allocation3 + $0xd0] ss:$24 sps:$4 sm:$0xff]  }
  0x78   :  { %1103 = vmatpush1.bf16.msra.mxu0 %v4262_v62  ;;  %v4345_v62 = vld [vmem:[#allocation3 + $0xa0] ss:$24 sps:$4 sm:$0xff]  }
  0x79   :  { %1115 = vmatprep.subr.bf16.mxu0 %v4270_v63  ;;  %v4419_v63 = vld [vmem:[#allocation5 + $0x40] ss:$16 sps:$4 sm:$0xff]  }
  0x7a   :  { %1189 = vmatpush1.bf16.msra.mxu1 %v4280_v5  ;;  %v4427_v5 = vld [vmem:[#allocation5 + $0x84] ss:$16 sps:$4 sm:$0xff]  }
  0x7b   :  { %1105 = vmatmul.mubr.bf16.vlgmr.msra.gmra.mrb[0].mxu0 %v4793_v3  ;;  %1201 = vmatprep.subr.bf16.mxu1 %v4286_v6  ;;  %v4351_v6 = vld [vmem:[#allocation3 + $0x100] ss:$24 sps:$4 sm:$0xff]  }
  0x7c   :  { %1116 = vmatpush1.bf16.msra.mxu0 %v4268_v2  ;;  %3869 = vmatprep.mubr.msk.bf16.mxu0 %vm1049_vm0, %v4799_v10  ;;  %v4422_v2 = vld [vmem:[#allocation5 + $0x60] ss:$16 sps:$4 sm:$0xff]  }
  0x7d   :  { %1117 = vmatprep.subr.bf16.mxu0 %v4277_v4  ;;  %1191 = vmatmul.mubr.bf16.vlgmr.msra.gmra.mrb[0].mxu1 %v4793_v3  ;;  %v4353_v4 = vld [vmem:[#allocation3 + $0x104] ss:$24 sps:$4 sm:$0xff]  }
  0x7e   :  { %1202 = vmatpush1.bf16.msra.mxu1 %v4284_v9  ;;  %3871 = vmatprep.mubr.msk.bf16.mxu1 %vm1049_vm0, %v4799_v10  ;;  %v4430_v9 = vld [vmem:[#allocation5 + $0xa4] ss:$16 sps:$4 sm:$0xff]  }
  0x7f   :  { %1203 = vmatprep.subr.bf16.mxu1 %v4292_v11  ;;  %v4354_v11 = vld [vmem:[#allocation3 + $0x130] ss:$24 sps:$4 sm:$0xff]  }
  0x80   :  { %1118 = vmatpush1.bf16.msra.mxu0 %v4275_v7  ;;  %v4356_v7 = vld [vmem:[#allocation3 + $0x134] ss:$24 sps:$4 sm:$0xff]  }
  0x81   :  { %1119 = vmatprep.subr.bf16.mxu0 %v4283_v8  ;;  %v4425_v8 = vld [vmem:[#allocation5 + $0x80] ss:$16 sps:$4 sm:$0xff]  }
  0x82   :  { %1204 = vmatpush1.bf16.msra.mxu1 %v4290_v13  ;;  %v4359_v13 = vld [vmem:[#allocation3 + $0x164] ss:$24 sps:$4 sm:$0xff]  }
  0x83   :  { %1205 = vmatprep.subr.bf16.mxu1 %v4298_v15  ;;  %v4357_v15 = vld [vmem:[#allocation3 + $0x160] ss:$24 sps:$4 sm:$0xff]  }
  0x84   :  { %1120 = vmatpush1.bf16.msra.mxu0 %v4281_v12  ;;  %v4428_v12 = vld [vmem:[#allocation5 + $0xa0] ss:$16 sps:$4 sm:$0xff]  }
  0x85   :  { %1121 = vmatprep.subr.bf16.mxu0 %v4289_v14  ;;  %v4433_v14 = vld [vmem:[#allocation5 + $0xc4] ss:$16 sps:$4 sm:$0xff]  }
  0x86   :  { %1206 = vmatpush1.bf16.msra.mxu1 %v4296_v17  ;;  %v4362_v17 = vld [vmem:[#allocation3 + $0x194] ss:$24 sps:$4 sm:$0xff]  }
  0x87   :  { %1207 = vmatprep.subr.bf16.mxu1 %v4304_v19  ;;  %v4360_v19 = vld [vmem:[#allocation3 + $0x190] ss:$24 sps:$4 sm:$0xff]  }
  0x88   :  { %1122 = vmatpush1.bf16.msra.mxu0 %v4287_v16  ;;  %v4431_v16 = vld [vmem:[#allocation5 + $0xc0] ss:$16 sps:$4 sm:$0xff]  }
  0x89   :  { %1123 = vmatprep.subr.bf16.mxu0 %v4295_v18  ;;  %v4436_v18 = vld [vmem:[#allocation5 + $0xe4] ss:$16 sps:$4 sm:$0xff]  }
  0x8a   :  { %1208 = vmatpush1.bf16.msra.mxu1 %v4302_v21  ;;  %v4365_v21 = vld [vmem:[#allocation3 + $0x1c4] ss:$24 sps:$4 sm:$0xff]  }
  0x8b   :  { %1209 = vmatprep.subr.bf16.mxu1 %v4310_v23  ;;  %v4363_v23 = vld [vmem:[#allocation3 + $0x1c0] ss:$24 sps:$4 sm:$0xff]  }
  0x8c   :  { %1124 = vmatpush1.bf16.msra.mxu0 %v4293_v20  ;;  %v4434_v20 = vld [vmem:[#allocation5 + $0xe0] ss:$16 sps:$4 sm:$0xff]  }
  0x8d   :  { %1125 = vmatprep.subr.bf16.mxu0 %v4301_v22  ;;  %v4439_v22 = vld [vmem:[#allocation5 + $0x104] ss:$16 sps:$4 sm:$0xff]  }
  0x8e   :  { %1210 = vmatpush1.bf16.msra.mxu1 %v4308_v25  ;;  %v4368_v25 = vld [vmem:[#allocation3 + $0x1f4] ss:$24 sps:$4 sm:$0xff]  }
  0x8f   :  { %1211 = vmatprep.subr.bf16.mxu1 %v4316_v27  ;;  %v4366_v27 = vld [vmem:[#allocation3 + $0x1f0] ss:$24 sps:$4 sm:$0xff]  }
  0x90   :  { %1126 = vmatpush1.bf16.msra.mxu0 %v4299_v24  ;;  %v4437_v24 = vld [vmem:[#allocation5 + $0x100] ss:$16 sps:$4 sm:$0xff]  }
  0x91   :  { %1127 = vmatprep.subr.bf16.mxu0 %v4307_v26  ;;  %v4442_v26 = vld [vmem:[#allocation5 + $0x124] ss:$16 sps:$4 sm:$0xff]  }
  0x92   :  { %1212 = vmatpush1.bf16.msra.mxu1 %v4314_v29  ;;  %v4371_v29 = vld [vmem:[#allocation3 + $0x224] ss:$24 sps:$4 sm:$0xff]  }
  0x93   :  { %1213 = vmatprep.subr.bf16.mxu1 %v4322_v31  ;;  %v4369_v31 = vld [vmem:[#allocation3 + $0x220] ss:$24 sps:$4 sm:$0xff]  }
  0x94   :  { %1128 = vmatpush1.bf16.msra.mxu0 %v4305_v28  ;;  %v4440_v28 = vld [vmem:[#allocation5 + $0x120] ss:$16 sps:$4 sm:$0xff]  }
  0x95   :  { %1129 = vmatprep.subr.bf16.mxu0 %v4313_v30  ;;  %v4445_v30 = vld [vmem:[#allocation5 + $0x144] ss:$16 sps:$4 sm:$0xff]  }
  0x96   :  { %1214 = vmatpush1.bf16.msra.mxu1 %v4320_v33  ;;  %v4374_v33 = vld [vmem:[#allocation3 + $0x254] ss:$24 sps:$4 sm:$0xff]  }
  0x97   :  { %1215 = vmatprep.subr.bf16.mxu1 %v4327_v35  ;;  %v4372_v35 = vld [vmem:[#allocation3 + $0x250] ss:$24 sps:$4 sm:$0xff]  }
  0x98   :  { %1130 = vmatpush1.bf16.msra.mxu0 %v4311_v32  ;;  %v4443_v32 = vld [vmem:[#allocation5 + $0x140] ss:$16 sps:$4 sm:$0xff]  }
  0x99   :  { %1131 = vmatprep.subr.bf16.mxu0 %v4319_v34  ;;  %v4448_v34 = vld [vmem:[#allocation5 + $0x164] ss:$16 sps:$4 sm:$0xff]  }
  0x9a   :  { %1216 = vmatpush1.bf16.msra.mxu1 %v4325_v38  ;;  %v4451_v38 = vld [vmem:[#allocation5 + $0x184] ss:$16 sps:$4 sm:$0xff]  }
  0x9b   :  { %1217 = vmatprep.subr.bf16.mxu1 %v4336_v41  ;;  %v4380_v41 = vld [vmem:[#allocation3 + $0x2b4] ss:$24 sps:$4 sm:$0xff]  }
  0x9c   :  { %1132 = vmatpush1.bf16.msra.mxu0 %v4317_v37  ;;  %v4377_v37 = vld [vmem:[#allocation3 + $0x284] ss:$24 sps:$4 sm:$0xff]  }
  0x9d   :  { %3868 = vmatprep.subr.msk.bf16.mxu0 %vm1053_vm1, %v3863_v39  ;;  %v4375_v39 = vld [vmem:[#allocation3 + $0x280] ss:$24 sps:$4 sm:$0xff]  }
  0x9e   :  { %1218 = vmatpush1.bf16.msra.mxu1 %v4334_v43  ;;  %v4378_v43 = vld [vmem:[#allocation3 + $0x2b0] ss:$24 sps:$4 sm:$0xff]  }
  0x9f   :  { %3870 = vmatprep.subr.msk.bf16.mxu1 %vm1053_vm1, %v3865_v47  ;;  %v4381_v47 = vld [vmem:[#allocation3 + $0x2e0] ss:$24 sps:$4 sm:$0xff]  }
  0xa0   :  { %1134 = vmatpush1.bf16.msra.mxu0 %v1055_v44  ;;  %v4452_v44 = vld [vmem:[#allocation5 + $0x1a0] ss:$16 sps:$4 sm:$0xff]  }
  0xa1   :  { %1244 = vmatprep.subr.bf16.mxu0 %v4333_v46  ;;  %v4383_v46 = vld [vmem:[#allocation3 + $0x2e4] ss:$24 sps:$4 sm:$0xff]  }
  0xa2   :  { %1220 = vmatpush1.bf16.msra.mxu1 %v1061_v52  ;;  %v4387_v52 = vld [vmem:[#allocation3 + $0x340] ss:$24 sps:$4 sm:$0xff]  }
  0xa3   :  { %1148 = vmatmul.mubr.bf16.vlgmr.msra.gmra.mrb[0].mxu0 %v4811_v49  ;;  %1754 = vmatprep.subr.bf16.mxu1 %v4415_v53  ;;  %v4392_v53 = vld [vmem:[#allocation3 + $0x374] ss:$24 sps:$4 sm:$0xff]  }
  0xa4   :  { %1245 = vmatpush1.bf16.msra.mxu0 %v4331_v50  ;;  %1276 = vmatprep.mubr.bf16.mxu0 %v4786_v45  ;;  %v4424_v45 = vld [vmem:[#allocation5 + $0x64] ss:$16 sps:$4 sm:$0xff]   ;;  %v4384_v50 = vld [vmem:[#allocation3 + $0x310] ss:$24 sps:$4 sm:$0xff]  }
  0xa5   :  { %1246 = vmatprep.subr.bf16.mxu0 %v4339_v51  ;;  %1234 = vmatmul.mubr.bf16.vlgmr.msra.gmra.mrb[0].mxu1 %v4811_v49  ;;  %v4389_v51 = vld [vmem:[#allocation3 + $0x344] ss:$24 sps:$4 sm:$0xff]  }
  0xa6   :  { %1755 = vmatpush1.bf16.msra.mxu1 %v4413_v55  ;;  %v4395_v55 = vld [vmem:[#allocation3 + $0x3a4] ss:$24 sps:$4 sm:$0xff]  }
  0xa7   :  { %1756 = vmatprep.subr.bf16.mxu1 %v4418_v57  ;;  %v4398_v57 = vld [vmem:[#allocation3 + $0x3d4] ss:$24 sps:$4 sm:$0xff]  }
  0xa8   :  { %1247 = vmatpush1.bf16.msra.mxu0 %v4337_v54  ;;  %v4390_v54 = vld [vmem:[#allocation3 + $0x370] ss:$24 sps:$4 sm:$0xff]  }
  0xa9   :  { %1248 = vmatprep.subr.bf16.mxu0 %v4344_v56  ;;  %v4393_v56 = vld [vmem:[#allocation3 + $0x3a0] ss:$24 sps:$4 sm:$0xff]  }
  0xaa   :  { %1757 = vmatpush1.bf16.msra.mxu1 %v4416_v59  ;;  %v4401_v59 = vld [vmem:[#allocation3 + $0x404] ss:$24 sps:$4 sm:$0xff]  }
  0xab   :  { %1758 = vmatprep.subr.bf16.mxu1 %v4421_v61  ;;  %v4457_v61 = vld [vmem:[#allocation5 + $0x1c4] ss:$16 sps:$4 sm:$0xff]  }
  0xac   :  { %1249 = vmatpush1.bf16.msra.mxu0 %v4342_v58  ;;  %v4396_v58 = vld [vmem:[#allocation3 + $0x3d0] ss:$24 sps:$4 sm:$0xff]  }
  0xad   :  { %1250 = vmatprep.subr.bf16.mxu0 %v4347_v60  ;;  %v4404_v60 = vld [vmem:[#allocation3 + $0x434] ss:$24 sps:$4 sm:$0xff]  }
  0xae   :  { %1759 = vmatpush1.bf16.msra.mxu1 %v4419_v63  ;;  %v4407_v63 = vld [vmem:[#allocation3 + $0x464] ss:$24 sps:$4 sm:$0xff]  }
  0xaf   :  { %1760 = vmatprep.subr.bf16.mxu1 %v4424_v45  ;;  %v4405_v45 = vld [vmem:[#allocation3 + $0x460] ss:$24 sps:$4 sm:$0xff]  }
  0xb0   :  { %1251 = vmatpush1.bf16.msra.mxu0 %v4345_v62  ;;  %v4455_v62 = vld [vmem:[#allocation5 + $0x1c0] ss:$16 sps:$4 sm:$0xff]  }
  0xb1   :  { %1252 = vmatprep.subr.bf16.mxu0 %v4350_v0  ;;  %v4460_v0 = vld [vmem:[#allocation5 + $0x1e4] ss:$16 sps:$4 sm:$0xff]  }
  0xb2   :  { %1761 = vmatpush1.bf16.msra.mxu1 %v4422_v2  ;;  %v4410_v2 = vld [vmem:[#allocation3 + $0x494] ss:$24 sps:$4 sm:$0xff]  }
  0xb3   :  { %1762 = vmatprep.subr.bf16.mxu1 %v4427_v5  ;;  %v4408_v5 = vld [vmem:[#allocation3 + $0x490] ss:$24 sps:$4 sm:$0xff]  }
  0xb4   :  { %1253 = vmatpush1.bf16.msra.mxu0 %v4348_v1  ;;  %v4458_v1 = vld [vmem:[#allocation5 + $0x1e0] ss:$16 sps:$4 sm:$0xff]  }
  0xb5   :  { %1254 = vmatprep.subr.bf16.mxu0 %v4353_v4  ;;  %v232_v4 = vld [vmem:[#allocation3 + $0x4c0] sm:$0x33] }
  0xb6   :  { %1763 = vmatpush1.bf16.msra.mxu1 %v4425_v8 }
  0xb7   :  { %1764 = vmatprep.subr.bf16.mxu1 %v4430_v9  ;;  %v4463_v9 = vld [vmem:[#allocation5 + $0xc] ss:$16 sps:$4 sm:$0xff]  }
  0xb8   :  { %1255 = vmatpush1.bf16.msra.mxu0 %v4351_v6  ;;  %v3867_v6 = vcombine.high %v232_v4, %v232_v4 }
  0xb9   :  { %1256 = vmatprep.subr.bf16.mxu0 %v4356_v7  ;;  %v3866_v7 = vcombine.low %v232_v4, %v232_v4  ;;  %v4512_v4 = vld [vmem:[#allocation7 + $0x10] ss:$8 sps:$4 sm:$0xff]  }
  0xba   :  { %1765 = vmatpush1.bf16.msra.mxu1 %v4428_v12 }
  0xbb   :  { %1766 = vmatprep.subr.bf16.mxu1 %v4433_v14  ;;  %v1067_v8 = vsel %vm1053_vm1, %v3866_v7, 0  ;;  %v4832_v14 = vld [vmem:[%s6073_s2] sm:$0x3f] }
  0xbc   :  { %1257 = vmatpush1.bf16.msra.mxu0 %v4354_v11  ;;  %v235_v11 = vlaneseq  ;;  %v4490_v7 = vld [vmem:[#allocation5 + $0x12c] ss:$16 sps:$4 sm:$0xff]  }
  0xbd   :  { %1258 = vmatprep.subr.bf16.mxu0 %v4359_v13 }
  0xbe   :  { %1767 = vmatpush1.bf16.msra.mxu1 %v4431_v16  ;;  %v4824_v12 = vshrl.u32 %v235_v11, 7  ;;  %v4488_v11 = vld [vmem:[#allocation5 + $0x128] ss:$16 sps:$4 sm:$0xff]  }
  0xbf   :  { %1768 = vmatprep.subr.bf16.mxu1 %v4436_v18 }
  0xc0   :  { %1259 = vmatpush1.bf16.msra.mxu0 %v4357_v15  ;;  %v4827_v13 = vsub.s32 0, %v4824_v12  ;;  %v4835_v15 = vsub.s32 1, %v4824_v12  ;;  %v4845_v18 = vsub.s32 3, %v4824_v12 }
  0xc1   :  { %1260 = vmatprep.subr.bf16.mxu0 %v4362_v17 }
  0xc2   :  { %1769 = vmatpush1.bf16.msra.mxu1 %v4434_v20  ;;  %v238_v16 = vrot.slane %v4832_v14, %v4827_v13  ;;  %v242_v17 = vrot.slane %v4832_v14, %v4835_v15 }
  0xc3   :  { %1770 = vmatprep.subr.bf16.mxu1 %v4439_v22 }
  0xc4   :  { %1261 = vmatpush1.bf16.msra.mxu0 %v4360_v19 }
  0xc5   :  { %1262 = vmatprep.subr.bf16.mxu0 %v4365_v21 }
  0xc6   :  { %1771 = vmatpush1.bf16.msra.mxu1 %v4437_v24 }
  0xc7   :  { %1772 = vmatprep.subr.bf16.mxu1 %v4442_v26 }
  0xc8   :  { %1263 = vmatpush1.bf16.msra.mxu0 %v4363_v23 }
  0xc9   :  { %1264 = vmatprep.subr.bf16.mxu0 %v4368_v25  ;;  %v250_v25 = vrot.slane %v4832_v14, %v4845_v18 }
  0xca   :  { %1773 = vmatpush1.bf16.msra.mxu1 %v4440_v28 }
  0xcb   :  { %1774 = vmatprep.subr.bf16.mxu1 %v4445_v30 }
  0xcc   :  { %1265 = vmatpush1.bf16.msra.mxu0 %v4366_v27 }
  0xcd   :  { %1266 = vmatprep.subr.bf16.mxu0 %v4371_v29 }
  0xce   :  { %1775 = vmatpush1.bf16.msra.mxu1 %v4443_v32 }
  0xcf   :  { %1776 = vmatprep.subr.bf16.mxu1 %v4448_v34 }
  0xd0   :  { %1267 = vmatpush1.bf16.msra.mxu0 %v4369_v31 }
  0xd1   :  { %1268 = vmatprep.subr.bf16.mxu0 %v4374_v33 }
  0xd2   :  { %1777 = vmatpush1.bf16.msra.mxu1 %v4446_v36 }
  0xd3   :  { %1778 = vmatprep.subr.bf16.mxu1 %v4451_v38 }
  0xd4   :  { %1269 = vmatpush1.bf16.msra.mxu0 %v4372_v35 }
  0xd5   :  { %1270 = vmatprep.subr.bf16.mxu0 %v4377_v37 }
  0xd6   :  { %1779 = vmatpush1.bf16.msra.mxu1 %v4449_v40 }
  0xd7   :  { %1780 = vmatprep.subr.bf16.mxu1 %v4454_v42 }
  0xd8   :  { %1271 = vmatpush1.bf16.msra.mxu0 %v4375_v39 }
  0xd9   :  { %1272 = vmatprep.subr.bf16.mxu0 %v4380_v41 }
  0xda   :  { %1781 = vmatpush1.bf16.msra.mxu1 %v4452_v44 }
  0xdb   :  { %1782 = vmatprep.subr.bf16.mxu1 %v4457_v61  ;;  %v4481_v61 = vld [vmem:[#allocation5 + $0xcc] ss:$16 sps:$4 sm:$0xff]  }
  0xdc   :  { %1273 = vmatpush1.bf16.msra.mxu0 %v4378_v43 }
  0xdd   :  { %1274 = vmatprep.subr.bf16.mxu0 %v4383_v46  ;;  %v4461_v46 = vld [vmem:[#allocation5 + $0x8] ss:$16 sps:$4 sm:$0xff]  }
  0xde   :  { %1783 = vmatpush1.bf16.msra.mxu1 %v4455_v62  ;;  %v4484_v62 = vld [vmem:[#allocation5 + $0xec] ss:$16 sps:$4 sm:$0xff]  }
  0xdf   :  { %1784 = vmatprep.subr.bf16.mxu1 %v4460_v0  ;;  %v4511_v0 = vld [vmem:[#allocation7 + $0x4] ss:$8 sps:$4 sm:$0xff]  }
  0xe0   :  { %1275 = vmatpush1.bf16.msra.mxu0 %v4381_v47 }
  0xe1   :  { %1287 = vmatprep.subr.bf16.mxu0 %v4386_v48  ;;  %v4466_v48 = vld [vmem:[#allocation5 + $0x2c] ss:$16 sps:$4 sm:$0xff]  }
  0xe2   :  { %1785 = vmatpush1.bf16.msra.mxu1 %v4458_v1  ;;  %v4482_v1 = vld [vmem:[#allocation5 + $0xe8] ss:$16 sps:$4 sm:$0xff]  }
  0xe3   :  { %1277 = vmatmul.mubr.bf16.vlgmr.msra.gmra.mrb[4].mxu0 %v4793_v3  ;;  %v4399_v3 = vld [vmem:[#allocation3 + $0x400] ss:$24 sps:$4 sm:$0xff]   ;;  %1835 = vmatprep.subr.bf16.mxu1 %v4463_v9  ;;  %v4520_v9 = vld [vmem:[#allocation7 + $0x34] ss:$8 sps:$4 sm:$0xff]  }
  0xe4   :  { %1288 = vmatpush1.bf16.msra.mxu0 %v4384_v50  ;;  %3873 = vmatprep.mubr.msk.bf16.mxu0 %vm1049_vm0, %v4799_v10  ;;  %v4402_v10 = vld [vmem:[#allocation3 + $0x430] ss:$24 sps:$4 sm:$0xff]  }
  0xe5   :  { %1289 = vmatprep.subr.bf16.mxu0 %v4389_v51 }
  0xe8   :  { %1290 = vmatpush1.bf16.msra.mxu0 %v4387_v52 }
  0xe9   :  { %1291 = vmatprep.subr.bf16.mxu0 %v4392_v53  ;;  %v4464_v53 = vld [vmem:[#allocation5 + $0x28] ss:$16 sps:$4 sm:$0xff]  }
  0xec   :  { %1292 = vmatpush1.bf16.msra.mxu0 %v4390_v54  ;;  %v4469_v54 = vld [vmem:[#allocation5 + $0x4c] ss:$16 sps:$4 sm:$0xff]  }
  0xed   :  { %1293 = vmatprep.subr.bf16.mxu0 %v4395_v55  ;;  %v4467_v55 = vld [vmem:[#allocation5 + $0x48] ss:$16 sps:$4 sm:$0xff]  }
  0xf0   :  { %1294 = vmatpush1.bf16.msra.mxu0 %v4393_v56  ;;  %v4472_v56 = vld [vmem:[#allocation5 + $0x6c] ss:$16 sps:$4 sm:$0xff]  }
  0xf1   :  { %1295 = vmatprep.subr.bf16.mxu0 %v4398_v57  ;;  %v4470_v57 = vld [vmem:[#allocation5 + $0x68] ss:$16 sps:$4 sm:$0xff]  }
  0xf4   :  { %1296 = vmatpush1.bf16.msra.mxu0 %v4396_v58  ;;  %v4475_v58 = vld [vmem:[#allocation5 + $0x8c] ss:$16 sps:$4 sm:$0xff]  }
  0xf5   :  { %1297 = vmatprep.subr.bf16.mxu0 %v4401_v59  ;;  %v4473_v59 = vld [vmem:[#allocation5 + $0x88] ss:$16 sps:$4 sm:$0xff]  }
  0xf8   :  { %1298 = vmatpush1.bf16.msra.mxu0 %v4399_v3  ;;  %v4478_v3 = vld [vmem:[#allocation5 + $0xac] ss:$16 sps:$4 sm:$0xff]  }
  0xf9   :  { %1299 = vmatprep.subr.bf16.mxu0 %v4404_v60  ;;  %v4476_v60 = vld [vmem:[#allocation5 + $0xa8] ss:$16 sps:$4 sm:$0xff]  }
  0xfc   :  { %1300 = vmatpush1.bf16.msra.mxu0 %v4402_v10  ;;  %v4479_v10 = vld [vmem:[#allocation5 + $0xc8] ss:$16 sps:$4 sm:$0xff]  }
  0xfd   :  { %1301 = vmatprep.subr.bf16.mxu0 %v4407_v63  ;;  %v4509_v63 = vld [vmem:[#allocation7] ss:$8 sps:$4 sm:$0xff]  }
 0x100   :  { %1302 = vmatpush1.bf16.msra.mxu0 %v4405_v45  ;;  %v4514_v45 = vld [vmem:[#allocation7 + $0x14] ss:$8 sps:$4 sm:$0xff]  }
 0x101   :  { %1303 = vmatprep.subr.bf16.mxu0 %v4410_v2  ;;  %v4487_v2 = vld [vmem:[#allocation5 + $0x10c] ss:$16 sps:$4 sm:$0xff]  }
 0x104   :  { %1304 = vmatpush1.bf16.msra.mxu0 %v4408_v5  ;;  %v4517_v5 = vld [vmem:[#allocation7 + $0x24] ss:$8 sps:$4 sm:$0xff]  }
 0x105   :  { %3872 = vmatprep.subr.msk.bf16.mxu0 %vm1053_vm1, %v3867_v6  ;;  %v4485_v6 = vld [vmem:[#allocation5 + $0x108] ss:$16 sps:$4 sm:$0xff]  }
 0x108   :  { %1306 = vmatpush1.bf16.msra.mxu0 %v1067_v8  ;;  %v4515_v8 = vld [vmem:[#allocation7 + $0x20] ss:$8 sps:$4 sm:$0xff]  }
 0x109   :  { %2433 = vmatprep.subr.bf16.mxu0 %v4511_v0 }
 0x10b   :  { %1320 = vmatmul.mubr.bf16.vlgmr.msra.gmra.mrb[4].mxu0 %v4811_v49  ;;  %v4840_v49 = vsub.s32 2, %v4824_v12 }
 0x10c   :  { %2434 = vmatpush1.bf16.msra.mxu0 %v4509_v63 }
 0x10d   :  { %v246_v22 = vrot.slane %v4832_v14, %v4840_v49  ;;  %2435 = vmatprep.subr.bf16.mxu0 %v4514_v45 }
 0x110   :  { %2436 = vmatpush1.bf16.msra.mxu0 %v4512_v4 }
 0x111   :  { %2437 = vmatprep.subr.bf16.mxu0 %v4517_v5 }
 0x114   :  { %2438 = vmatpush1.bf16.msra.mxu0 %v4515_v8 }
 0x115   :  { %2439 = vmatprep.subr.bf16.mxu0 %v4520_v9 }
 0x176   :  { %v1149_v19 = vpop.f32.mrb[0].mxu0 }
 0x177   :  { %v4035_v20 = vadd.f32 %v1149_v19, %v238_v16  ;;  %v1151_v21 = vpop.f32.mrb[1].mxu0  ;;  %v4523_v19 = vld [vmem:[#allocation7 + $0x44] ss:$8 sps:$4 sm:$0xff]  }
 0x178   :  { %v4036_v23 = vadd.f32 %v1151_v21, %v242_v17  ;;  %v1153_v24 = vpop.f32.mrb[2].mxu0  ;;  %v1235_v29 = vpop.f32.mrb[0].mxu1  ;;  %v4496_v21 = vld [vmem:[#allocation5 + $0x16c] ss:$16 sps:$4 sm:$0xff]  }
 0x179   :  { %v4037_v26 = vadd.f32 %v1153_v24, %v238_v16  ;;  %v1155_v27 = vpop.f32.mrb[3].mxu0  ;;  %v1330_v30 = vmax.f32 %v4035_v20, 0.0  ;;  %v4039_v32 = vadd.f32 %v1235_v29, %v246_v22  ;;  %v1237_v33 = vpop.f32.mrb[1].mxu1  ;;  %v4493_v16 = vld [vmem:[#allocation5 + $0x14c] ss:$16 sps:$4 sm:$0xff]  }
 0x17a   :  { %v4038_v28 = vadd.f32 %v1155_v27, %v242_v17  ;;  %v1331_v34 = vmax.f32 %v4036_v23, 0.0  ;;  %v4040_v36 = vadd.f32 %v1237_v33, %v250_v25  ;;  %v1239_v37 = vpop.f32.mrb[2].mxu1  ;;  %v4518_v17 = vld [vmem:[#allocation7 + $0x30] ss:$8 sps:$4 sm:$0xff]   ;;  %v4526_v23 = vld [vmem:[#allocation7 + $0x54] ss:$8 sps:$4 sm:$0xff]  }
 0x17b   :  { %v1336_v31 = vmax.f32 %v4037_v26, 0.0  ;;  %v1332_v39 = vmax.f32 %v4039_v32, 0.0  ;;  %v4041_v40 = vadd.f32 %v1239_v37, %v246_v22  ;;  %v1241_v41 = vpop.f32.mrb[3].mxu1  ;;  %v4491_v20 = vld [vmem:[#allocation5 + $0x148] ss:$16 sps:$4 sm:$0xff]   ;;  %2440 = vmatpush1.bf16.msra.mxu0 %v4518_v17 }
 0x17c   :  { %v1337_v35 = vmax.f32 %v4038_v28, 0.0  ;;  %v1333_v43 = vmax.f32 %v4040_v36, 0.0  ;;  %v4042_v44 = vadd.f32 %v1241_v41, %v250_v25  ;;  %v4521_v22 = vld [vmem:[#allocation7 + $0x40] ss:$8 sps:$4 sm:$0xff]   ;;  %2441 = vmatprep.subr.bf16.mxu0 %v4523_v19  ;;  %v4499_v25 = vld [vmem:[#allocation5 + $0x18c] ss:$16 sps:$4 sm:$0xff]  }
 0x17d   :  { %v4851_v38 = vpack.c.bf16 %v1336_v31, %v1330_v30  ;;  %v1338_v47 = vmax.f32 %v4041_v40, 0.0  ;;  %v4494_v24 = vld [vmem:[#allocation5 + $0x168] ss:$16 sps:$4 sm:$0xff]   ;;  %v4529_v27 = vld [vmem:[#allocation7 + $0x64] ss:$8 sps:$4 sm:$0xff]  }
 0x17e   :  { %v4853_v42 = vpack.c.bf16 %v1337_v35, %v1331_v34  ;;  %v1339_v50 = vmax.f32 %v4042_v44, 0.0  ;;  %v4524_v26 = vld [vmem:[#allocation7 + $0x50] ss:$8 sps:$4 sm:$0xff]   ;;  %v4502_v29 = vld [vmem:[#allocation5 + $0x1ac] ss:$16 sps:$4 sm:$0xff]  }
 0x17f   :  { %v4856_v51 = vpack.c.bf16 %v1338_v47, %v1332_v39  ;;  %2442 = vmatpush1.bf16.msra.mxu0 %v4521_v22  ;;  %v4497_v28 = vld [vmem:[#allocation5 + $0x188] ss:$16 sps:$4 sm:$0xff]   ;;  %v4532_v31 = vld [vmem:[#allocation7 + $0x74] ss:$8 sps:$4 sm:$0xff]   ;;  %v4535_v35 = vld [vmem:[#allocation7 + $0x84] ss:$8 sps:$4 sm:$0xff]  }
 0x180   :  { %1786 = vmatprep.mubr.bf16.mxu1 %v4853_v42  ;;  %v4859_v52 = vpack.c.bf16 %v1339_v50, %v1333_v43  ;;  %2443 = vmatprep.subr.bf16.mxu0 %v4526_v23  ;;  %v4527_v30 = vld [vmem:[#allocation7 + $0x60] ss:$8 sps:$4 sm:$0xff]   ;;  %v4505_v33 = vld [vmem:[#allocation5 + $0x1cc] ss:$16 sps:$4 sm:$0xff]   ;;  %v4530_v34 = vld [vmem:[#allocation7 + $0x70] ss:$8 sps:$4 sm:$0xff]  }
 0x181   :  { %1787 = vmatmul.mubr.bf16.vlgmr.msra.gmra.mrb[4].mxu1 %v4851_v38  ;;  %v4500_v32 = vld [vmem:[#allocation5 + $0x1a8] ss:$16 sps:$4 sm:$0xff]   ;;  %v4508_v37 = vld [vmem:[#allocation5 + $0x1ec] ss:$16 sps:$4 sm:$0xff]  }
 0x182   :  { %1836 = vmatpush1.bf16.msra.mxu1 %v4461_v46  ;;  %1796 = vmatprep.mubr.bf16.mxu1 %v4856_v51  ;;  %v4503_v36 = vld [vmem:[#allocation5 + $0x1c8] ss:$16 sps:$4 sm:$0xff]   ;;  %v4538_v40 = vld [vmem:[#allocation7 + $0x94] ss:$8 sps:$4 sm:$0xff]   ;;  %v4541_v44 = vld [vmem:[#allocation7 + $0xa4] ss:$8 sps:$4 sm:$0xff]  }
 0x183   :  { %1837 = vmatprep.subr.bf16.mxu1 %v4466_v48  ;;  %2444 = vmatpush1.bf16.msra.mxu0 %v4524_v26  ;;  %v4533_v39 = vld [vmem:[#allocation7 + $0x80] ss:$8 sps:$4 sm:$0xff]   ;;  %v4536_v43 = vld [vmem:[#allocation7 + $0x90] ss:$8 sps:$4 sm:$0xff]   ;;  %v4544_v47 = vld [vmem:[#allocation7 + $0xb4] ss:$8 sps:$4 sm:$0xff]  }
 0x184   :  { %2445 = vmatprep.subr.bf16.mxu0 %v4529_v27  ;;  %v4506_v41 = vld [vmem:[#allocation5 + $0x1e8] ss:$16 sps:$4 sm:$0xff]   ;;  %v4547_v50 = vld [vmem:[#allocation7 + $0xc4] ss:$8 sps:$4 sm:$0xff]  }
 0x185   :  { %v4539_v46 = vld [vmem:[#allocation7 + $0xa0] ss:$8 sps:$4 sm:$0xff]   ;;  %v4542_v48 = vld [vmem:[#allocation7 + $0xb0] ss:$8 sps:$4 sm:$0xff]  }
 0x186   :  { %1838 = vmatpush1.bf16.msra.mxu1 %v4464_v53  ;;  %v4545_v53 = vld [vmem:[#allocation7 + $0xc0] ss:$8 sps:$4 sm:$0xff]  }
 0x187   :  { %1839 = vmatprep.subr.bf16.mxu1 %v4469_v54  ;;  %2446 = vmatpush1.bf16.msra.mxu0 %v4527_v30  ;;  %v4550_v54 = vld [vmem:[#allocation7 + $0xd4] ss:$8 sps:$4 sm:$0xff]  }
 0x188   :  { %2447 = vmatprep.subr.bf16.mxu0 %v4532_v31 }
 0x189   :  { %1797 = vmatmul.mubr.bf16.gmra.mrb[8].mxu1 %v4853_v42 }
 0x18a   :  { %1806 = vmatprep.mubr.bf16.mxu1 %v4859_v52  ;;  %1840 = vmatpush1.bf16.msra.mxu1 %v4467_v55  ;;  %v4548_v55 = vld [vmem:[#allocation7 + $0xd0] ss:$8 sps:$4 sm:$0xff]  }
 0x18b   :  { %1841 = vmatprep.subr.bf16.mxu1 %v4472_v56  ;;  %2448 = vmatpush1.bf16.msra.mxu0 %v4530_v34  ;;  %v4553_v56 = vld [vmem:[#allocation7 + $0xe4] ss:$8 sps:$4 sm:$0xff]  }
 0x18c   :  { %2449 = vmatprep.subr.bf16.mxu0 %v4535_v35 }
 0x18e   :  { %1842 = vmatpush1.bf16.msra.mxu1 %v4470_v57  ;;  %v4551_v57 = vld [vmem:[#allocation7 + $0xe0] ss:$8 sps:$4 sm:$0xff]  }
 0x18f   :  { %1843 = vmatprep.subr.bf16.mxu1 %v4475_v58  ;;  %2450 = vmatpush1.bf16.msra.mxu0 %v4533_v39  ;;  %v4866_v58 = vsub.s32 4, %v4824_v12 }
 0x190   :  { %2451 = vmatprep.subr.bf16.mxu0 %v4538_v40 }
 0x191   :  { %1807 = vmatmul.mubr.bf16.gmra.mrb[12].mxu1 %v4856_v51 }
 0x192   :  { %1844 = vmatpush1.bf16.msra.mxu1 %v4473_v59  ;;  %v4869_v59 = vsub.s32 5, %v4824_v12 }
 0x193   :  { %1845 = vmatprep.subr.bf16.mxu1 %v4478_v3  ;;  %2452 = vmatpush1.bf16.msra.mxu0 %v4536_v43  ;;  %v4556_v3 = vld [vmem:[#allocation7 + $0xf4] ss:$8 sps:$4 sm:$0xff]  }
 0x194   :  { %2453 = vmatprep.subr.bf16.mxu0 %v4541_v44 }
 0x196   :  { %1846 = vmatpush1.bf16.msra.mxu1 %v4476_v60  ;;  %v4554_v60 = vld [vmem:[#allocation7 + $0xf0] ss:$8 sps:$4 sm:$0xff]  }
 0x197   :  { %1847 = vmatprep.subr.bf16.mxu1 %v4481_v61  ;;  %2454 = vmatpush1.bf16.msra.mxu0 %v4539_v46  ;;  %v254_v61 = vrot.slane %v4832_v14, %v4866_v58 }
 0x198   :  { %2455 = vmatprep.subr.bf16.mxu0 %v4544_v47 }
 0x19a   :  { %1848 = vmatpush1.bf16.msra.mxu1 %v4479_v10  ;;  %v258_v10 = vrot.slane %v4832_v14, %v4869_v59  ;;  %v4886_v14 = vld [vmem:[%s6075_s4] sm:$0xf]  ;;  %s4692_s4 = smov 64  }
 0x19b   :  { %1849 = vmatprep.subr.bf16.mxu1 %v4484_v62  ;;  %2456 = vmatpush1.bf16.msra.mxu0 %v4542_v48 }
 0x19c   :  { %2457 = vmatprep.subr.bf16.mxu0 %v4547_v50 }
 0x19e   :  { %1850 = vmatpush1.bf16.msra.mxu1 %v4482_v1 }
 0x19f   :  { %1851 = vmatprep.subr.bf16.mxu1 %v4487_v2  ;;  %2458 = vmatpush1.bf16.msra.mxu0 %v4545_v53 }
 0x1a0   :  { %2459 = vmatprep.subr.bf16.mxu0 %v4550_v54 }
 0x1a2   :  { %1852 = vmatpush1.bf16.msra.mxu1 %v4485_v6 }
 0x1a3   :  { %1853 = vmatprep.subr.bf16.mxu1 %v4490_v7  ;;  %2460 = vmatpush1.bf16.msra.mxu0 %v4548_v55 }
 0x1a4   :  { %2461 = vmatprep.subr.bf16.mxu0 %v4553_v56 }
 0x1a6   :  { %1854 = vmatpush1.bf16.msra.mxu1 %v4488_v11 }
 0x1a7   :  { %1855 = vmatprep.subr.bf16.mxu1 %v4493_v16  ;;  %2462 = vmatpush1.bf16.msra.mxu0 %v4551_v57 }
 0x1a8   :  { %2463 = vmatprep.subr.bf16.mxu0 %v4556_v3 }
 0x1aa   :  { %1856 = vmatpush1.bf16.msra.mxu1 %v4491_v20 }
 0x1ab   :  { %1857 = vmatprep.subr.bf16.mxu1 %v4496_v21  ;;  %2464 = vmatpush1.bf16.msra.mxu0 %v4554_v60 }
 0x1ae   :  { %1858 = vmatpush1.bf16.msra.mxu1 %v4494_v24 }
 0x1af   :  { %1859 = vmatprep.subr.bf16.mxu1 %v4499_v25 }
 0x1b2   :  { %1860 = vmatpush1.bf16.msra.mxu1 %v4497_v28 }
 0x1b3   :  { %1861 = vmatprep.subr.bf16.mxu1 %v4502_v29 }
 0x1b6   :  { %1862 = vmatpush1.bf16.msra.mxu1 %v4500_v32 }
 0x1b7   :  { %1863 = vmatprep.subr.bf16.mxu1 %v4505_v33 }
 0x1ba   :  { %1864 = vmatpush1.bf16.msra.mxu1 %v4503_v36 }
 0x1bb   :  { %1865 = vmatprep.subr.bf16.mxu1 %v4508_v37 }
 0x1be   :  { %1866 = vmatpush1.bf16.msra.mxu1 %v4506_v41 }
 0x1de   :  { %v1321_v62 = vpop.f32.mrb[4].mxu0 }
 0x1df   :  { %v4043_v63 = vadd.f32 %v1321_v62, %v254_v61  ;;  %v1323_v0 = vpop.f32.mrb[5].mxu0 }
 0x1e0   :  { %v4044_v45 = vadd.f32 %v1323_v0, %v258_v10  ;;  %v1325_v1 = vpop.f32.mrb[6].mxu0  ;;  %v4557_v0 = vld [vmem:[#allocation7 + $0x100] ss:$8 sps:$4 sm:$0xff]  }
 0x1e1   :  { %v4045_v2 = vadd.f32 %v1325_v1, %v254_v61  ;;  %v1327_v4 = vpop.f32.mrb[7].mxu0  ;;  %v1334_v6 = vmax.f32 %v4043_v63, 0.0  ;;  %v4562_v1 = vld [vmem:[#allocation7 + $0x114] ss:$8 sps:$4 sm:$0xff]  }
 0x1e2   :  { %v4046_v5 = vadd.f32 %v1327_v4, %v258_v10  ;;  %v1335_v8 = vmax.f32 %v4044_v45, 0.0  ;;  %v4559_v45 = vld [vmem:[#allocation7 + $0x104] ss:$8 sps:$4 sm:$0xff]  }
 0x1e3   :  { %v1340_v7 = vmax.f32 %v4045_v2, 0.0  ;;  %4003 = vmatprep.subr.bf16.mxu1 %v4559_v45  ;;  %2726 = vmatprep.subr.bf16.mxu0 %v4559_v45  ;;  %v4560_v2 = vld [vmem:[#allocation7 + $0x110] ss:$8 sps:$4 sm:$0xff]   ;;  %v4565_v4 = vld [vmem:[#allocation7 + $0x124] ss:$8 sps:$4 sm:$0xff]  }
 0x1e4   :  { %v1341_v9 = vmax.f32 %v4046_v5, 0.0  ;;  %v4563_v5 = vld [vmem:[#allocation7 + $0x120] ss:$8 sps:$4 sm:$0xff]   ;;  %v4604_v45 = vld [vmem:[#allocation7 + $0x1f4] ss:$8 sps:$4 sm:$0xff]  }
 0x1e5   :  { %v1346_v11 = vpack.c.bf16 %v1340_v7, %v1334_v6  ;;  %v4568_v6 = vld [vmem:[#allocation7 + $0x134] ss:$8 sps:$4 sm:$0xff]   ;;  %v4566_v7 = vld [vmem:[#allocation7 + $0x130] ss:$8 sps:$4 sm:$0xff]  }
 0x1e6   :  { %v1347_v16 = vpack.c.bf16 %v1341_v9, %v1335_v8  ;;  %v4571_v8 = vld [vmem:[#allocation7 + $0x144] ss:$8 sps:$4 sm:$0xff]   ;;  %v4569_v9 = vld [vmem:[#allocation7 + $0x140] ss:$8 sps:$4 sm:$0xff]  }
 0x1e7   :  { %1816 = vmatprep.mubr.bf16.mxu1 %v1346_v11 }
 0x1e8   :  { %1817 = vmatmul.mubr.bf16.gmra.mrb[16].mxu1 %v4859_v52 }
 0x1e9   :  { %1826 = vmatprep.mubr.bf16.mxu1 %v1347_v16 }
 0x1f0   :  { %1827 = vmatmul.mubr.bf16.gmra.mrb[20].mxu1 %v1346_v11 }
 0x1f1   :  { %1867 = vmatprep.mubr.bf16.mxu1 %v4853_v42 }
 0x1f8   :  { %1868 = vmatmul.mubr.bf16.vlgmr.msra.gmra.mrb[24].mxu1 %v4851_v38  ;;  %v4890_v38 = vrot.slane %v4886_v14, %v4827_v13 }
 0x1f9   :  { %1877 = vmatprep.mubr.bf16.mxu1 %v4856_v51  ;;  %4019 = vmatpush1.bf16.msra.mxu1 %v4557_v0 }
 0x1fa   :  { %4004 = vmatprep.subr.bf16.mxu1 %v4562_v1 }
 0x1fd   :  { %4020 = vmatpush1.bf16.msra.mxu1 %v4560_v2 }
 0x1fe   :  { %4005 = vmatprep.subr.bf16.mxu1 %v4565_v4 }
 0x200   :  { %1878 = vmatmul.mubr.bf16.gmra.mrb[28].mxu1 %v4853_v42  ;;  %v4894_v42 = vrot.slane %v4886_v14, %v4835_v15 }
 0x201   :  { %1887 = vmatprep.mubr.bf16.mxu1 %v4859_v52  ;;  %4021 = vmatpush1.bf16.msra.mxu1 %v4563_v5 }
 0x202   :  { %4006 = vmatprep.subr.bf16.mxu1 %v4568_v6 }
 0x205   :  { %4022 = vmatpush1.bf16.msra.mxu1 %v4566_v7 }
 0x206   :  { %4007 = vmatprep.subr.bf16.mxu1 %v4571_v8 }
 0x208   :  { %1888 = vmatmul.mubr.bf16.gmra.mrb[32].mxu1 %v4856_v51 }
 0x209   :  { %1897 = vmatprep.mubr.bf16.mxu1 %v1346_v11  ;;  %4023 = vmatpush1.bf16.msra.mxu1 %v4569_v9 }
 0x210   :  { %1898 = vmatmul.mubr.bf16.gmra.mrb[36].mxu1 %v4859_v52 }
 0x211   :  { %1907 = vmatprep.mubr.bf16.mxu1 %v1347_v16  ;;  %v4572_v16 = vld [vmem:[#allocation7 + $0x150] ss:$8 sps:$4 sm:$0xff]  }
 0x218   :  { %1908 = vmatmul.mubr.bf16.gmra.mrb[40].mxu1 %v1346_v11  ;;  %v4574_v11 = vld [vmem:[#allocation7 + $0x154] ss:$8 sps:$4 sm:$0xff]  }
 0x219   :  { %4008 = vmatprep.subr.bf16.mxu1 %v4574_v11 }
 0x21a   :  { %4024 = vmatpush1.bf16.msra.mxu1 %v4572_v16 }
 0x254   :  { %v1788_v17 = vpop.f32.mrb[4].mxu1 }
 0x255   :  { %v1789_v51 = vadd.f32 %v1788_v17, %v4890_v38  ;;  %v1790_v19 = vpop.f32.mrb[5].mxu1  ;;  %v4577_v17 = vld [vmem:[#allocation7 + $0x164] ss:$8 sps:$4 sm:$0xff]  }
 0x256   :  { %v1791_v52 = vadd.f32 %v1790_v19, %v4894_v42  ;;  %v1792_v20 = vpop.f32.mrb[6].mxu1  ;;  %4009 = vmatprep.subr.bf16.mxu1 %v4577_v17  ;;  %v4580_v19 = vld [vmem:[#allocation7 + $0x174] ss:$8 sps:$4 sm:$0xff]  }
 0x257   :  { %v1793_v21 = vadd.f32 %v1792_v20, %v4890_v38  ;;  %v1794_v22 = vpop.f32.mrb[7].mxu1  ;;  %v1914_v24 = vmax.f32 %v1789_v51, 0.0  ;;  %v4575_v51 = vld [vmem:[#allocation7 + $0x160] ss:$8 sps:$4 sm:$0xff]   ;;  %v4583_v20 = vld [vmem:[#allocation7 + $0x184] ss:$8 sps:$4 sm:$0xff]  }
 0x258   :  { %v1795_v23 = vadd.f32 %v1794_v22, %v4894_v42  ;;  %v1915_v26 = vmax.f32 %v1791_v52, 0.0  ;;  %4025 = vmatpush1.bf16.msra.mxu1 %v4575_v51  ;;  %v4578_v52 = vld [vmem:[#allocation7 + $0x170] ss:$8 sps:$4 sm:$0xff]   ;;  %v4586_v22 = vld [vmem:[#allocation7 + $0x194] ss:$8 sps:$4 sm:$0xff]  }
 0x259   :  { %v1918_v25 = vmax.f32 %v1793_v21, 0.0  ;;  %4010 = vmatprep.subr.bf16.mxu1 %v4580_v19  ;;  %v4581_v21 = vld [vmem:[#allocation7 + $0x180] ss:$8 sps:$4 sm:$0xff]  }
 0x25a   :  { %v1919_v27 = vmax.f32 %v1795_v23, 0.0  ;;  %v4584_v23 = vld [vmem:[#allocation7 + $0x190] ss:$8 sps:$4 sm:$0xff]  }
 0x25b   :  { %v1948_v28 = vpack.c.bf16 %v1918_v25, %v1914_v24  ;;  %v4589_v24 = vld [vmem:[#allocation7 + $0x1a4] ss:$8 sps:$4 sm:$0xff]   ;;  %v4587_v25 = vld [vmem:[#allocation7 + $0x1a0] ss:$8 sps:$4 sm:$0xff]  }
 0x25c   :  { %v4900_v29 = vpack.c.bf16 %v1919_v27, %v1915_v26  ;;  %v1798_v30 = vpop.f32.mrb[8].mxu1  ;;  %4026 = vmatpush1.bf16.msra.mxu1 %v4578_v52  ;;  %v4592_v26 = vld [vmem:[#allocation7 + $0x1b4] ss:$8 sps:$4 sm:$0xff]   ;;  %v4590_v27 = vld [vmem:[#allocation7 + $0x1b0] ss:$8 sps:$4 sm:$0xff]  }
 0x25d   :  { %v1799_v31 = vadd.f32 %v1798_v30, %v4890_v38  ;;  %v1800_v32 = vpop.f32.mrb[9].mxu1  ;;  %1970 = vrot.lane.b32.xlu1 %v1948_v28, %s4692_s4  ;;  %4011 = vmatprep.subr.bf16.mxu1 %v4583_v20  ;;  %v4593_v30 = vld [vmem:[#allocation7 + $0x1c0] ss:$8 sps:$4 sm:$0xff]  }
 0x25e   :  { %v1801_v33 = vadd.f32 %v1800_v32, %v4894_v42  ;;  %v1802_v34 = vpop.f32.mrb[10].mxu1  ;;  %1972 = vrot.lane.b32.xlu0 %v4900_v29, %s4692_s4  ;;  %2465 = vmatprep.mubr.bf16.mxu0 %v4900_v29  ;;  %v4596_v32 = vld [vmem:[#allocation7 + $0x1d0] ss:$8 sps:$4 sm:$0xff]  }
 0x25f   :  { %v1803_v35 = vadd.f32 %v1802_v34, %v4890_v38  ;;  %v1804_v36 = vpop.f32.mrb[11].mxu1  ;;  %2466 = vmatmul.mubr.bf16.vlgmr.msra.gmra.mrb[8].mxu0 %v1948_v28  ;;  %v1922_v39 = vmax.f32 %v1799_v31, 0.0  ;;  %v4595_v28 = vld [vmem:[#allocation7 + $0x1c4] ss:$8 sps:$4 sm:$0xff]   ;;  %v4598_v31 = vld [vmem:[#allocation7 + $0x1d4] ss:$8 sps:$4 sm:$0xff]  }
 0x260   :  { %v1805_v37 = vadd.f32 %v1804_v36, %v4894_v42  ;;  %v1923_v41 = vmax.f32 %v1801_v33, 0.0  ;;  %2727 = vmatpush1.bf16.msra.mxu0 %v4557_v0  ;;  %4027 = vmatpush1.bf16.msra.mxu1 %v4581_v21  ;;  %v4601_v33 = vld [vmem:[#allocation7 + $0x1e4] ss:$8 sps:$4 sm:$0xff]   ;;  %v4599_v34 = vld [vmem:[#allocation7 + $0x1e0] ss:$8 sps:$4 sm:$0xff]  }
 0x261   :  { %v1926_v40 = vmax.f32 %v1803_v35, 0.0  ;;  %2728 = vmatprep.subr.bf16.mxu0 %v4562_v1  ;;  %4012 = vmatprep.subr.bf16.mxu1 %v4586_v22 }
 0x262   :  { %v1927_v43 = vmax.f32 %v1805_v37, 0.0 }
 0x263   :  { %v4910_v44 = vpack.c.bf16 %v1926_v40, %v1922_v39 }
 0x264   :  { %v4912_v46 = vpack.c.bf16 %v1927_v43, %v1923_v41  ;;  %v1808_v47 = vpop.f32.mrb[12].mxu1  ;;  %2729 = vmatpush1.bf16.msra.mxu0 %v4560_v2  ;;  %4028 = vmatpush1.bf16.msra.mxu1 %v4584_v23 }
 0x265   :  { %v1809_v48 = vadd.f32 %v1808_v47, %v4890_v38  ;;  %v1810_v50 = vpop.f32.mrb[13].mxu1  ;;  %2730 = vmatprep.subr.bf16.mxu0 %v4565_v4  ;;  %4013 = vmatprep.subr.bf16.mxu1 %v4589_v24  ;;  %v4602_v4 = vld [vmem:[#allocation7 + $0x1f0] ss:$8 sps:$4 sm:$0xff]  }
 0x266   :  { %v1811_v53 = vadd.f32 %v1810_v50, %v4894_v42  ;;  %v1812_v54 = vpop.f32.mrb[14].mxu1 }
 0x267   :  { %v1930_v55 = vmax.f32 %v1809_v48, 0.0  ;;  %v1813_v56 = vadd.f32 %v1812_v54, %v4890_v38  ;;  %v1814_v57 = vpop.f32.mrb[15].mxu1 }
 0x268   :  { %v1931_v3 = vmax.f32 %v1811_v53, 0.0  ;;  %v1815_v60 = vadd.f32 %v1814_v57, %v4894_v42  ;;  %2731 = vmatpush1.bf16.msra.mxu0 %v4563_v5  ;;  %4029 = vmatpush1.bf16.msra.mxu1 %v4587_v25  ;;  %v4938_v5 = vrot.slane %v4886_v14, %v4845_v18 }
 0x269   :  { %v1934_v61 = vmax.f32 %v1813_v56, 0.0  ;;  %2732 = vmatprep.subr.bf16.mxu0 %v4568_v6  ;;  %4014 = vmatprep.subr.bf16.mxu1 %v4592_v26 }
 0x26a   :  { %v1935_v10 = vmax.f32 %v1815_v60, 0.0 }
 0x26b   :  { %v4918_v62 = vpack.c.bf16 %v1934_v61, %v1930_v55 }
 0x26c   :  { %v4920_v63 = vpack.c.bf16 %v1935_v10, %v1931_v3  ;;  %2733 = vmatpush1.bf16.msra.mxu0 %v4566_v7  ;;  %4030 = vmatpush1.bf16.msra.mxu1 %v4590_v27 }
 0x26d   :  { %2734 = vmatprep.subr.bf16.mxu0 %v4571_v8  ;;  %4015 = vmatprep.subr.bf16.mxu1 %v4595_v28 }
 0x270   :  { %2735 = vmatpush1.bf16.msra.mxu0 %v4569_v9  ;;  %4031 = vmatpush1.bf16.msra.mxu1 %v4593_v30 }
 0x271   :  { %2736 = vmatprep.subr.bf16.mxu0 %v4574_v11  ;;  %4016 = vmatprep.subr.bf16.mxu1 %v4598_v31 }
 0x274   :  { %2737 = vmatpush1.bf16.msra.mxu0 %v4572_v16  ;;  %4032 = vmatpush1.bf16.msra.mxu1 %v4596_v32 }
 0x275   :  { %2738 = vmatprep.subr.bf16.mxu0 %v4577_v17  ;;  %4017 = vmatprep.subr.bf16.mxu1 %v4601_v33 }
 0x278   :  { %2739 = vmatpush1.bf16.msra.mxu0 %v4575_v51  ;;  %4033 = vmatpush1.bf16.msra.mxu1 %v4599_v34 }
 0x279   :  { %2740 = vmatprep.subr.bf16.mxu0 %v4580_v19  ;;  %4018 = vmatprep.subr.bf16.mxu1 %v4604_v45 }
 0x27c   :  { %2741 = vmatpush1.bf16.msra.mxu0 %v4578_v52  ;;  %4034 = vmatpush1.bf16.msra.mxu1 %v4602_v4 }
 0x27d   :  { %2742 = vmatprep.subr.bf16.mxu0 %v4583_v20 }
 0x280   :  { %2743 = vmatpush1.bf16.msra.mxu0 %v4581_v21 }
 0x281   :  { %2744 = vmatprep.subr.bf16.mxu0 %v4586_v22 }
 0x284   :  { %2745 = vmatpush1.bf16.msra.mxu0 %v4584_v23 }
 0x285   :  { %2746 = vmatprep.subr.bf16.mxu0 %v4589_v24 }
 0x288   :  { %2747 = vmatpush1.bf16.msra.mxu0 %v4587_v25 }
 0x289   :  { %2748 = vmatprep.subr.bf16.mxu0 %v4592_v26 }
 0x28c   :  { %2749 = vmatpush1.bf16.msra.mxu0 %v4590_v27 }
 0x28d   :  { %2750 = vmatprep.subr.bf16.mxu0 %v4595_v28 }
 0x290   :  { %2751 = vmatpush1.bf16.msra.mxu0 %v4593_v30 }
 0x291   :  { %2752 = vmatprep.subr.bf16.mxu0 %v4598_v31 }
 0x294   :  { %2753 = vmatpush1.bf16.msra.mxu0 %v4596_v32 }
 0x295   :  { %2754 = vmatprep.subr.bf16.mxu0 %v4601_v33 }
 0x298   :  { %2755 = vmatpush1.bf16.msra.mxu0 %v4599_v34 }
 0x299   :  { %2756 = vmatprep.subr.bf16.mxu0 %v4604_v45 }
 0x29c   :  { %2757 = vmatpush1.bf16.msra.mxu0 %v4602_v4 }
 0x2bb   :  { %v1818_v35 = vpop.f32.mrb[16].mxu1 }
 0x2bc   :  { %v1819_v36 = vadd.f32 %v1818_v35, %v4890_v38  ;;  %v1820_v37 = vpop.f32.mrb[17].mxu1 }
 0x2bd   :  { %v1821_v39 = vadd.f32 %v1820_v37, %v4894_v42  ;;  %v1822_v40 = vpop.f32.mrb[18].mxu1 }
 0x2be   :  { %v1823_v41 = vadd.f32 %v1822_v40, %v4890_v38  ;;  %v1824_v43 = vpop.f32.mrb[19].mxu1  ;;  %v1938_v48 = vmax.f32 %v1819_v36, 0.0 }
 0x2bf   :  { %v1825_v47 = vadd.f32 %v1824_v43, %v4894_v42  ;;  %v1939_v53 = vmax.f32 %v1821_v39, 0.0  ;;  %v4934_v42 = vrot.slane %v4886_v14, %v4840_v49 }
 0x2c0   :  { %v1942_v50 = vmax.f32 %v1823_v41, 0.0 }
 0x2c1   :  { %v1943_v54 = vmax.f32 %v1825_v47, 0.0 }
 0x2c2   :  { %v4926_v55 = vpack.c.bf16 %v1942_v50, %v1938_v48 }
 0x2c3   :  { %v4928_v56 = vpack.c.bf16 %v1943_v54, %v1939_v53  ;;  %v1828_v57 = vpop.f32.mrb[20].mxu1 }
 0x2c4   :  { %v1829_v3 = vadd.f32 %v1828_v57, %v4890_v38  ;;  %v1830_v60 = vpop.f32.mrb[21].mxu1 }
 0x2c5   :  { %v1831_v61 = vpop.f32.mrb[22].mxu1 }
 0x2c6   :  { %v1832_v10 = vadd.f32 %v1831_v61, %v4890_v38  ;;  %v1833_v0 = vpop.f32.mrb[23].mxu1  ;;  %v1946_v1 = vmax.f32 %v1829_v3, 0.0 }
 0x2c8   :  { %v1947_v2 = vmax.f32 %v1832_v10, 0.0 }
 0x2ca   :  { %v4940_v6 = vpack.c.bf16 %v1947_v2, %v1946_v1 }
 0x2cb   :  { %v1869_v38 = vpop.f32.mrb[24].mxu1 }
 0x2cc   :  { %v1870_v7 = vadd.f32 %v1869_v38, %v4934_v42  ;;  %v1871_v8 = vpop.f32.mrb[25].mxu1 }
 0x2cd   :  { %v1872_v9 = vadd.f32 %v1871_v8, %v4938_v5  ;;  %v1873_v11 = vpop.f32.mrb[26].mxu1 }
 0x2ce   :  { %v1874_v16 = vadd.f32 %v1873_v11, %v4934_v42  ;;  %v1875_v17 = vpop.f32.mrb[27].mxu1  ;;  %v1916_v14 = vmax.f32 %v1870_v7, 0.0 }
 0x2cf   :  { %v1876_v51 = vadd.f32 %v1875_v17, %v4938_v5  ;;  %v1917_v52 = vmax.f32 %v1872_v9, 0.0 }
 0x2d0   :  { %v1920_v19 = vmax.f32 %v1874_v16, 0.0 }
 0x2d1   :  { %v1921_v20 = vmax.f32 %v1876_v51, 0.0 }
 0x2d2   :  { %v4946_v21 = vpack.c.bf16 %v1920_v19, %v1916_v14 }
 0x2d3   :  { %v4948_v22 = vpack.c.bf16 %v1921_v20, %v1917_v52  ;;  %v1879_v23 = vpop.f32.mrb[28].mxu1  ;;  %v1973_v20 = vpop.permute.xlu0 %1972 }
 0x2d4   :  { %v1880_v24 = vadd.f32 %v1879_v23, %v4934_v42  ;;  %v1881_v25 = vpop.f32.mrb[29].mxu1  ;;  %1974 = vrot.lane.b32.xlu0 %v4946_v21, %s4692_s4  ;;  %v1971_v23 = vpop.permute.xlu1 %1970 }
 0x2d5   :  { %v1882_v26 = vadd.f32 %v1881_v25, %v4938_v5  ;;  %v1883_v27 = vpop.f32.mrb[30].mxu1  ;;  %1976 = vrot.lane.b32.xlu1 %v4948_v22, %s4692_s4 }
 0x2d6   :  { %v1884_v28 = vadd.f32 %v1883_v27, %v4934_v42  ;;  %v1885_v30 = vpop.f32.mrb[31].mxu1  ;;  %v1924_v32 = vmax.f32 %v1880_v24, 0.0 }
 0x2d7   :  { %v1886_v31 = vadd.f32 %v1885_v30, %v4938_v5  ;;  %v1925_v34 = vmax.f32 %v1882_v26, 0.0  ;;  %v1981_v26 = vsel %vm1980_vm2, %v1971_v23, %v1973_v20 }
 0x2d8   :  { %v1928_v33 = vmax.f32 %v1884_v28, 0.0  ;;  %1978 = vrot.lane.b32.xlu0 %v4910_v44, %s4692_s4 }
 0x2d9   :  { %v1929_v35 = vmax.f32 %v1886_v31, 0.0  ;;  %1990 = vrot.lane.b32.xlu1 %v4912_v46, %s4692_s4 }
 0x2da   :  { %v4962_v36 = vpack.c.bf16 %v1928_v33, %v1924_v32 }
 0x2db   :  { %v4964_v37 = vpack.c.bf16 %v1929_v35, %v1925_v34  ;;  %v1889_v39 = vpop.f32.mrb[32].mxu1 }
 0x2dc   :  { %v1890_v40 = vadd.f32 %v1889_v39, %v4934_v42  ;;  %v1891_v41 = vpop.f32.mrb[33].mxu1  ;;  %1995 = vrot.lane.b32.xlu0 %v4962_v36, %s4692_s4 }
 0x2dd   :  { %v1892_v43 = vadd.f32 %v1891_v41, %v4938_v5  ;;  %v1893_v47 = vpop.f32.mrb[34].mxu1  ;;  %2000 = vrot.lane.b32.xlu1 %v4964_v37, %s4692_s4 }
 0x2de   :  { %v1894_v48 = vadd.f32 %v1893_v47, %v4934_v42  ;;  %v1895_v50 = vpop.f32.mrb[35].mxu1  ;;  %v1932_v54 = vmax.f32 %v1890_v40, 0.0 }
 0x2df   :  { %v1896_v53 = vadd.f32 %v1895_v50, %v4938_v5  ;;  %v1933_v3 = vmax.f32 %v1892_v43, 0.0 }
 0x2e0   :  { %v1936_v57 = vmax.f32 %v1894_v48, 0.0  ;;  %2005 = vrot.lane.b32.xlu0 %v4918_v62, %s4692_s4 }
 0x2e1   :  { %v1937_v60 = vmax.f32 %v1896_v53, 0.0  ;;  %2010 = vrot.lane.b32.xlu1 %v4920_v63, %s4692_s4 }
 0x2e2   :  { %v4978_v61 = vpack.c.bf16 %v1936_v57, %v1932_v54 }
 0x2e3   :  { %v4980_v10 = vpack.c.bf16 %v1937_v60, %v1933_v3  ;;  %v1899_v0 = vpop.f32.mrb[36].mxu1 }
 0x2e4   :  { %v1900_v45 = vadd.f32 %v1899_v0, %v4934_v42  ;;  %v1901_v1 = vpop.f32.mrb[37].mxu1  ;;  %2015 = vrot.lane.b32.xlu0 %v4978_v61, %s4692_s4 }
 0x2e5   :  { %v1902_v2 = vadd.f32 %v1901_v1, %v4938_v5  ;;  %v1903_v4 = vpop.f32.mrb[38].mxu1  ;;  %2020 = vrot.lane.b32.xlu1 %v4980_v10, %s4692_s4 }
 0x2e6   :  { %v1904_v38 = vadd.f32 %v1903_v4, %v4934_v42  ;;  %v1905_v7 = vpop.f32.mrb[39].mxu1  ;;  %v1940_v9 = vmax.f32 %v1900_v45, 0.0 }
 0x2e7   :  { %v1906_v8 = vadd.f32 %v1905_v7, %v4938_v5  ;;  %v1941_v16 = vmax.f32 %v1902_v2, 0.0 }
 0x2e8   :  { %v1944_v11 = vmax.f32 %v1904_v38, 0.0  ;;  %2025 = vrot.lane.b32.xlu0 %v4926_v55, %s4692_s4 }
 0x2e9   :  { %v1945_v17 = vmax.f32 %v1906_v8, 0.0  ;;  %2030 = vrot.lane.b32.xlu1 %v4928_v56, %s4692_s4 }
 0x2ea   :  { %v4994_v51 = vpack.c.bf16 %v1944_v11, %v1940_v9 }
 0x2eb   :  { %v4996_v14 = vpack.c.bf16 %v1945_v17, %v1941_v16  ;;  %v1909_v19 = vpop.f32.mrb[40].mxu1 }
 0x2ec   :  { %v1910_v52 = vpop.f32.mrb[41].mxu1  ;;  %2035 = vrot.lane.b32.xlu0 %v4994_v51, %s4692_s4 }
 0x2ed   :  { %v1911_v42 = vpop.f32.mrb[42].mxu1  ;;  %2040 = vrot.lane.b32.xlu1 %v4996_v14, %s4692_s4 }
 0x2ee   :  { %v1912_v5 = vpop.f32.mrb[43].mxu1 }
 0x2f0   :  { %2045 = vrot.lane.b32.xlu0 %v4940_v6, %s4692_s4 }
 0x346   :  { %v1975_v24 = vpop.permute.xlu0 %1974 }
 0x347   :  { %v1982_v25 = vsel %vm1980_vm2, %v1973_v20, %v1975_v24  ;;  %v1977_v27 = vpop.permute.xlu1 %1976 }
 0x348   :  { %2475 = vmatprep.mubr.bf16.mxu0 %v1982_v25  ;;  %v1983_v31 = vsel %vm1980_vm2, %v1975_v24, %v1977_v27 }
 0x349   :  { %2476 = vmatmul.mubr.bf16.gmra.mrb[12].mxu0 %v1981_v26 }
 0x34a   :  { %v1979_v28 = vpop.permute.xlu0 %1978  ;;  %2485 = vmatprep.mubr.bf16.mxu0 %v4946_v21 }
 0x34b   :  { %v1984_v30 = vsel %vm1980_vm2, %v1977_v27, %v1979_v28  ;;  %v1991_v6 = vpop.permute.xlu1 %1990 }
 0x34c   :  { %2768 = vmatprep.mubr.bf16.mxu1 %v1984_v30  ;;  %v1992_v32 = vsel %vm1980_vm2, %v1979_v28, %v1991_v6 }
 0x34d   :  { %2769 = vmatmul.mubr.bf16.vlgmr.msra.gmra.mrb[44].mxu1 %v1983_v31 }
 0x34e   :  { %2778 = vmatprep.mubr.bf16.mxu1 %v4910_v44  ;;  %v1996_v33 = vpop.permute.xlu0 %1995 }
 0x34f   :  { %v1997_v34 = vsel %vm1980_vm2, %v1991_v6, %v1996_v33 }
 0x351   :  { %2486 = vmatmul.mubr.bf16.gmra.mrb[16].mxu0 %v4900_v29  ;;  %v2001_v29 = vpop.permute.xlu1 %2000 }
 0x352   :  { %2495 = vmatprep.mubr.bf16.mxu0 %v1983_v31  ;;  %v2002_v35 = vsel %vm1980_vm2, %v1996_v33, %v2001_v29  ;;  %v2006_v39 = vpop.permute.xlu0 %2005 }
 0x353   :  { %v2007_v40 = vsel %vm1980_vm2, %v2001_v29, %v2006_v39 }
 0x355   :  { %2779 = vmatmul.mubr.bf16.gmra.mrb[48].mxu1 %v4948_v22  ;;  %v2011_v41 = vpop.permute.xlu1 %2010 }
 0x356   :  { %2788 = vmatprep.mubr.bf16.mxu1 %v1992_v32  ;;  %v2012_v43 = vsel %vm1980_vm2, %v2006_v39, %v2011_v41 }
 0x359   :  { %2496 = vmatmul.mubr.bf16.gmra.mrb[20].mxu0 %v1982_v25 }
 0x35a   :  { %2505 = vmatprep.mubr.bf16.mxu0 %v4948_v22 }
 0x35d   :  { %2789 = vmatmul.mubr.bf16.gmra.mrb[52].mxu1 %v1984_v30 }
 0x35e   :  { %2798 = vmatprep.mubr.bf16.mxu1 %v4912_v46 }
 0x361   :  { %2506 = vmatmul.mubr.bf16.gmra.mrb[24].mxu0 %v4946_v21 }
 0x362   :  { %2515 = vmatprep.mubr.bf16.mxu0 %v1984_v30 }
 0x365   :  { %2799 = vmatmul.mubr.bf16.gmra.mrb[56].mxu1 %v4910_v44 }
 0x366   :  { %2808 = vmatprep.mubr.bf16.mxu1 %v1997_v34 }
 0x369   :  { %2516 = vmatmul.mubr.bf16.gmra.mrb[28].mxu0 %v1983_v31 }
 0x36a   :  { %2525 = vmatprep.mubr.bf16.mxu0 %v4910_v44 }
 0x36d   :  { %2809 = vmatmul.mubr.bf16.gmra.mrb[60].mxu1 %v1992_v32 }
 0x36e   :  { %2818 = vmatprep.mubr.bf16.mxu1 %v4962_v36 }
 0x371   :  { %2526 = vmatmul.mubr.bf16.gmra.mrb[32].mxu0 %v4948_v22 }
 0x372   :  { %2535 = vmatprep.mubr.bf16.mxu0 %v1992_v32 }
 0x375   :  { %2819 = vmatmul.mubr.bf16.gmra.mrb[64].mxu1 %v4912_v46 }
 0x376   :  { %2828 = vmatprep.mubr.bf16.mxu1 %v2002_v35 }
 0x379   :  { %2536 = vmatmul.mubr.bf16.gmra.mrb[36].mxu0 %v1984_v30 }
 0x37a   :  { %2545 = vmatprep.mubr.bf16.mxu0 %v4912_v46 }
 0x37d   :  { %2829 = vmatmul.mubr.bf16.gmra.mrb[68].mxu1 %v1997_v34 }
 0x37e   :  { %2838 = vmatprep.mubr.bf16.mxu1 %v4964_v37 }
 0x381   :  { %2546 = vmatmul.mubr.bf16.gmra.mrb[40].mxu0 %v4910_v44  ;;  %v2016_v44 = vpop.permute.xlu0 %2015 }
 0x382   :  { %2555 = vmatprep.mubr.bf16.mxu0 %v1997_v34  ;;  %v2017_v47 = vsel %vm1980_vm2, %v2011_v41, %v2016_v44 }
 0x385   :  { %2839 = vmatmul.mubr.bf16.gmra.mrb[72].mxu1 %v4962_v36 }
 0x386   :  { %2848 = vmatprep.mubr.bf16.mxu1 %v2007_v40 }
 0x389   :  { %2556 = vmatmul.mubr.bf16.gmra.mrb[44].mxu0 %v1992_v32 }
 0x38a   :  { %2565 = vmatprep.mubr.bf16.mxu0 %v4962_v36 }
 0x38d   :  { %2849 = vmatmul.mubr.bf16.gmra.mrb[76].mxu1 %v2002_v35 }
 0x38e   :  { %2858 = vmatprep.mubr.bf16.mxu1 %v4918_v62 }
 0x391   :  { %2566 = vmatmul.mubr.bf16.gmra.mrb[48].mxu0 %v4912_v46  ;;  %v2021_v46 = vpop.permute.xlu1 %2020 }
 0x392   :  { %2575 = vmatprep.mubr.bf16.mxu0 %v2002_v35  ;;  %v2022_v48 = vsel %vm1980_vm2, %v2016_v44, %v2021_v46 }
 0x395   :  { %2859 = vmatmul.mubr.bf16.gmra.mrb[80].mxu1 %v4964_v37 }
 0x396   :  { %2868 = vmatprep.mubr.bf16.mxu1 %v2012_v43 }
 0x399   :  { %2576 = vmatmul.mubr.bf16.gmra.mrb[52].mxu0 %v1997_v34 }
 0x39a   :  { %2585 = vmatprep.mubr.bf16.mxu0 %v4964_v37 }
 0x39d   :  { %2869 = vmatmul.mubr.bf16.gmra.mrb[84].mxu1 %v2007_v40 }
 0x39e   :  { %2878 = vmatprep.mubr.bf16.mxu1 %v4920_v63 }
 0x3a1   :  { %2586 = vmatmul.mubr.bf16.gmra.mrb[56].mxu0 %v4962_v36  ;;  %v2026_v36 = vpop.permute.xlu0 %2025 }
 0x3a2   :  { %2595 = vmatprep.mubr.bf16.mxu0 %v2007_v40  ;;  %v2027_v50 = vsel %vm1980_vm2, %v2021_v46, %v2026_v36 }
 0x3a5   :  { %2879 = vmatmul.mubr.bf16.gmra.mrb[88].mxu1 %v4918_v62 }
 0x3a6   :  { %2888 = vmatprep.mubr.bf16.mxu1 %v2017_v47 }
 0x3a9   :  { %2596 = vmatmul.mubr.bf16.gmra.mrb[60].mxu0 %v2002_v35 }
 0x3aa   :  { %2605 = vmatprep.mubr.bf16.mxu0 %v4918_v62 }
 0x3ad   :  { %2889 = vmatmul.mubr.bf16.gmra.mrb[92].mxu1 %v2012_v43 }
 0x3ae   :  { %2898 = vmatprep.mubr.bf16.mxu1 %v4978_v61 }
 0x3b1   :  { %2606 = vmatmul.mubr.bf16.gmra.mrb[64].mxu0 %v4964_v37  ;;  %v2031_v37 = vpop.permute.xlu1 %2030 }
 0x3b2   :  { %2615 = vmatprep.mubr.bf16.mxu0 %v2012_v43  ;;  %v2032_v53 = vsel %vm1980_vm2, %v2026_v36, %v2031_v37 }
 0x3b5   :  { %2899 = vmatmul.mubr.bf16.gmra.mrb[96].mxu1 %v4920_v63  ;;  %v2041_v54 = vpop.permute.xlu1 %2040 }
 0x3b6   :  { %2908 = vmatprep.mubr.bf16.mxu1 %v2022_v48 }
 0x3b9   :  { %2616 = vmatmul.mubr.bf16.gmra.mrb[68].mxu0 %v2007_v40 }
 0x3ba   :  { %2625 = vmatprep.mubr.bf16.mxu0 %v4920_v63 }
 0x3bd   :  { %2909 = vmatmul.mubr.bf16.gmra.mrb[100].mxu1 %v2017_v47 }
 0x3be   :  { %2918 = vmatprep.mubr.bf16.mxu1 %v4980_v10 }
 0x3c1   :  { %2626 = vmatmul.mubr.bf16.gmra.mrb[72].mxu0 %v4918_v62  ;;  %v2036_v62 = vpop.permute.xlu0 %2035 }
 0x3c2   :  { %2635 = vmatprep.mubr.bf16.mxu0 %v2017_v47  ;;  %v2042_v57 = vsel %vm1980_vm2, %v2036_v62, %v2041_v54 }
 0x3c5   :  { %2919 = vmatmul.mubr.bf16.gmra.mrb[104].mxu1 %v4978_v61  ;;  %v2046_v3 = vpop.permute.xlu0 %2045 }
 0x3c6   :  { %2928 = vmatprep.mubr.bf16.mxu1 %v2027_v50  ;;  %v2047_v60 = vsel %vm1980_vm2, %v2041_v54, %v2046_v3 }
 0x3c9   :  { %2636 = vmatmul.mubr.bf16.gmra.mrb[76].mxu0 %v2012_v43 }
 0x3ca   :  { %2645 = vmatprep.mubr.bf16.mxu0 %v4978_v61 }
 0x3cd   :  { %2929 = vmatmul.mubr.bf16.gmra.mrb[108].mxu1 %v2022_v48 }
 0x3ce   :  { %2938 = vmatprep.mubr.bf16.mxu1 %v4926_v55 }
 0x3d1   :  { %2646 = vmatmul.mubr.bf16.gmra.mrb[80].mxu0 %v4920_v63  ;;  %v2037_v63 = vsel %vm1980_vm2, %v2031_v37, %v2036_v62 }
 0x3d2   :  { %2655 = vmatprep.mubr.bf16.mxu0 %v2022_v48 }
 0x3d5   :  { %2939 = vmatmul.mubr.bf16.gmra.mrb[112].mxu1 %v4980_v10 }
 0x3d6   :  { %2948 = vmatprep.mubr.bf16.mxu1 %v2032_v53 }
 0x3d9   :  { %2656 = vmatmul.mubr.bf16.gmra.mrb[84].mxu0 %v2017_v47 }
 0x3da   :  { %2665 = vmatprep.mubr.bf16.mxu0 %v4980_v10 }
 0x3dd   :  { %2949 = vmatmul.mubr.bf16.gmra.mrb[116].mxu1 %v2027_v50 }
 0x3de   :  { %2958 = vmatprep.mubr.bf16.mxu1 %v4928_v56 }
 0x3e1   :  { %2666 = vmatmul.mubr.bf16.gmra.mrb[88].mxu0 %v4978_v61 }
 0x3e2   :  { %2675 = vmatprep.mubr.bf16.mxu0 %v2027_v50 }
 0x3e5   :  { %2959 = vmatmul.mubr.bf16.gmra.mrb[120].mxu1 %v4926_v55 }
 0x3e6   :  { %2968 = vmatprep.mubr.bf16.mxu1 %v2037_v63 }
 0x3e9   :  { %2676 = vmatmul.mubr.bf16.gmra.mrb[92].mxu0 %v2022_v48 }
 0x3ea   :  { %2685 = vmatprep.mubr.bf16.mxu0 %v4926_v55 }
 0x3ed   :  { %2969 = vmatmul.mubr.bf16.gmra.mrb[124].mxu1 %v2032_v53 }
 0x3ee   :  { %2978 = vmatprep.mubr.bf16.mxu1 %v4994_v51 }
 0x3f1   :  { %2686 = vmatmul.mubr.bf16.gmra.mrb[96].mxu0 %v4980_v10 }
 0x3f2   :  { %2695 = vmatprep.mubr.bf16.mxu0 %v2032_v53 }
 0x3f5   :  { %2979 = vmatmul.mubr.bf16.gmra.mrb[128].mxu1 %v4928_v56 }
 0x3f6   :  { %2988 = vmatprep.mubr.bf16.mxu1 %v2042_v57 }
 0x3f9   :  { %2696 = vmatmul.mubr.bf16.gmra.mrb[100].mxu0 %v2027_v50 }
 0x3fa   :  { %2705 = vmatprep.mubr.bf16.mxu0 %v4928_v56 }
 0x3fd   :  { %2989 = vmatmul.mubr.bf16.gmra.mrb[132].mxu1 %v2037_v63 }
 0x3fe   :  { %2998 = vmatprep.mubr.bf16.mxu1 %v4996_v14 }
 0x401   :  { %2706 = vmatmul.mubr.bf16.gmra.mrb[104].mxu0 %v4926_v55 }
 0x402   :  { %2715 = vmatprep.mubr.bf16.mxu0 %v2037_v63 }
 0x405   :  { %2999 = vmatmul.mubr.bf16.gmra.mrb[136].mxu1 %v4994_v51 }
 0x406   :  { %3008 = vmatprep.mubr.bf16.mxu1 %v2047_v60 }
 0x409   :  { %2716 = vmatmul.mubr.bf16.gmra.mrb[108].mxu0 %v2032_v53 }
 0x40a   :  { %2758 = vmatprep.mubr.bf16.mxu0 %v4948_v22 }
 0x40d   :  { %3009 = vmatmul.mubr.bf16.gmra.mrb[140].mxu1 %v2042_v57 }
 0x411   :  { %2759 = vmatmul.mubr.bf16.vlgmr.msra.gmra.mrb[8].mxu0 %v4946_v21 }
 0x41c   :  { %v2477_v61 = vpop.f32.mrb[12].mxu0 }
 0x41d   :  { %v2479_v56 = vpop.f32.mrb[13].mxu0 }
 0x41e   :  { %v2481_v10 = vpop.f32.mrb[14].mxu0 }
 0x41f   :  { %v2483_v0 = vpop.f32.mrb[15].mxu0 }
 0x420   :  { %v2770_v45 = vpop.f32.mrb[44].mxu1 }
 0x421   :  { %v5070_v1 = vadd.f32 %v2770_v45, %v2477_v61  ;;  %v2772_v55 = vpop.f32.mrb[45].mxu1 }
 0x422   :  { %v5072_v2 = vadd.f32 %v2772_v55, %v2479_v56  ;;  %v2774_v4 = vpop.f32.mrb[46].mxu1 }
 0x423   :  { %v5074_v38 = vadd.f32 %v2774_v4, %v2481_v10  ;;  %v2776_v7 = vpop.f32.mrb[47].mxu1 }
 0x424   :  { %v5076_v8 = vadd.f32 %v2776_v7, %v2483_v0  ;;  %v2487_v22 = vpop.f32.mrb[16].mxu0 }
 0x425   :  { %v2489_v9 = vpop.f32.mrb[17].mxu0 }
 0x426   :  { %v2491_v11 = vpop.f32.mrb[18].mxu0 }
 0x427   :  { %v2493_v21 = vpop.f32.mrb[19].mxu0 }
 0x428   :  { %v2780_v16 = vpop.f32.mrb[48].mxu1 }
 0x429   :  { %v5078_v17 = vadd.f32 %v2780_v16, %v2487_v22  ;;  %v2782_v51 = vpop.f32.mrb[49].mxu1 }
 0x42a   :  { %v5080_v14 = vadd.f32 %v2782_v51, %v2489_v9  ;;  %v2784_v19 = vpop.f32.mrb[50].mxu1 }
 0x42b   :  { %v5082_v52 = vadd.f32 %v2784_v19, %v2491_v11  ;;  %v2786_v42 = vpop.f32.mrb[51].mxu1 }
 0x42c   :  { %v5084_v5 = vadd.f32 %v2786_v42, %v2493_v21  ;;  %v2497_v20 = vpop.f32.mrb[20].mxu0 }
 0x42d   :  { %v2499_v23 = vpop.f32.mrb[21].mxu0 }
 0x42e   :  { %v2501_v24 = vpop.f32.mrb[22].mxu0 }
 0x42f   :  { %v2503_v25 = vpop.f32.mrb[23].mxu0 }
 0x430   :  { %v2790_v26 = vpop.f32.mrb[52].mxu1 }
 0x431   :  { %v5086_v27 = vadd.f32 %v2790_v26, %v2497_v20  ;;  %v2792_v28 = vpop.f32.mrb[53].mxu1 }
 0x432   :  { %v5088_v30 = vadd.f32 %v2792_v28, %v2499_v23  ;;  %v2794_v31 = vpop.f32.mrb[54].mxu1 }
 0x433   :  { %v5090_v6 = vadd.f32 %v2794_v31, %v2501_v24  ;;  %v2796_v32 = vpop.f32.mrb[55].mxu1 }
 0x434   :  { %v5092_v33 = vadd.f32 %v2796_v32, %v2503_v25  ;;  %v2507_v34 = vpop.f32.mrb[24].mxu0 }
 0x435   :  { %v2509_v29 = vpop.f32.mrb[25].mxu0 }
 0x436   :  { %v2511_v35 = vpop.f32.mrb[26].mxu0 }
 0x437   :  { %v2513_v39 = vpop.f32.mrb[27].mxu0 }
 0x438   :  { %v2800_v40 = vpop.f32.mrb[56].mxu1 }
 0x439   :  { %v5094_v41 = vadd.f32 %v2800_v40, %v2507_v34  ;;  %v2802_v43 = vpop.f32.mrb[57].mxu1 }
 0x43a   :  { %v5096_v44 = vadd.f32 %v2802_v43, %v2509_v29  ;;  %v2804_v47 = vpop.f32.mrb[58].mxu1 }
 0x43b   :  { %v5098_v46 = vadd.f32 %v2804_v47, %v2511_v35  ;;  %v2806_v48 = vpop.f32.mrb[59].mxu1 }
 0x43c   :  { %v5100_v36 = vadd.f32 %v2806_v48, %v2513_v39  ;;  %v2517_v50 = vpop.f32.mrb[28].mxu0 }
 0x43d   :  { %v2519_v37 = vpop.f32.mrb[29].mxu0 }
 0x43e   :  { %v2521_v53 = vpop.f32.mrb[30].mxu0 }
 0x43f   :  { %v2523_v62 = vpop.f32.mrb[31].mxu0 }
 0x440   :  { %v2810_v63 = vpop.f32.mrb[60].mxu1 }
 0x441   :  { %v5102_v54 = vadd.f32 %v2810_v63, %v2517_v50  ;;  %v2812_v57 = vpop.f32.mrb[61].mxu1 }
 0x442   :  { %v5104_v3 = vadd.f32 %v2812_v57, %v2519_v37  ;;  %v2814_v60 = vpop.f32.mrb[62].mxu1 }
 0x443   :  { %v5106_v61 = vadd.f32 %v2814_v60, %v2521_v53  ;;  %v2816_v56 = vpop.f32.mrb[63].mxu1 }
 0x444   :  { %v5108_v10 = vadd.f32 %v2816_v56, %v2523_v62  ;;  %v2527_v0 = vpop.f32.mrb[32].mxu0 }
 0x445   :  { %v2529_v45 = vpop.f32.mrb[33].mxu0 }
 0x446   :  { %v2531_v55 = vpop.f32.mrb[34].mxu0 }
 0x447   :  { %v2533_v4 = vpop.f32.mrb[35].mxu0 }
 0x448   :  { %v2820_v7 = vpop.f32.mrb[64].mxu1 }
 0x449   :  { %v5110_v22 = vadd.f32 %v2820_v7, %v2527_v0  ;;  %v2822_v9 = vpop.f32.mrb[65].mxu1 }
 0x44a   :  { %v5112_v11 = vadd.f32 %v2822_v9, %v2529_v45  ;;  %v2824_v21 = vpop.f32.mrb[66].mxu1 }
 0x44b   :  { %v5114_v16 = vadd.f32 %v2824_v21, %v2531_v55  ;;  %v2826_v51 = vpop.f32.mrb[67].mxu1 }
 0x44c   :  { %v5116_v19 = vadd.f32 %v2826_v51, %v2533_v4  ;;  %v2537_v42 = vpop.f32.mrb[36].mxu0 }
 0x44d   :  { %v2539_v20 = vpop.f32.mrb[37].mxu0 }
 0x44e   :  { %v2541_v23 = vpop.f32.mrb[38].mxu0 }
 0x44f   :  { %v2543_v24 = vpop.f32.mrb[39].mxu0 }
 0x450   :  { %v2830_v25 = vpop.f32.mrb[68].mxu1 }
 0x451   :  { %v5118_v26 = vadd.f32 %v2830_v25, %v2537_v42  ;;  %v2832_v28 = vpop.f32.mrb[69].mxu1 }
 0x452   :  { %v5120_v31 = vadd.f32 %v2832_v28, %v2539_v20  ;;  %v2834_v32 = vpop.f32.mrb[70].mxu1 }
 0x453   :  { %v5122_v34 = vadd.f32 %v2834_v32, %v2541_v23  ;;  %v2836_v29 = vpop.f32.mrb[71].mxu1 }
 0x454   :  { %6120 = vst [vmem:[#allocation10_spill] sm:$0xff] %v5120_v31  ;;  %v5124_v35 = vadd.f32 %v2836_v29, %v2543_v24  ;;  %v2547_v39 = vpop.f32.mrb[40].mxu0 }
 0x455   :  { %6121 = vst [vmem:[#allocation11_spill] sm:$0xff] %v5122_v34  ;;  %v2549_v40 = vpop.f32.mrb[41].mxu0 }
 0x456   :  { %6122 = vst [vmem:[#allocation12_spill] sm:$0xff] %v5124_v35  ;;  %v2551_v43 = vpop.f32.mrb[42].mxu0 }
 0x457   :  { %v2553_v47 = vpop.f32.mrb[43].mxu0 }
 0x458   :  { %v2840_v48 = vpop.f32.mrb[72].mxu1 }
 0x459   :  { %v5126_v50 = vadd.f32 %v2840_v48, %v2547_v39  ;;  %v2842_v37 = vpop.f32.mrb[73].mxu1 }
 0x45a   :  { %v5128_v53 = vadd.f32 %v2842_v37, %v2549_v40  ;;  %v2844_v62 = vpop.f32.mrb[74].mxu1 }
 0x45b   :  { %6123 = vst [vmem:[#allocation13_spill] sm:$0xff] %v5126_v50  ;;  %v5130_v63 = vadd.f32 %v2844_v62, %v2551_v43  ;;  %v2846_v57 = vpop.f32.mrb[75].mxu1 }
 0x45c   :  { %6124 = vst [vmem:[#allocation14_spill] sm:$0xff] %v5128_v53  ;;  %v5132_v60 = vadd.f32 %v2846_v57, %v2553_v47  ;;  %v2557_v56 = vpop.f32.mrb[44].mxu0 }
 0x45d   :  { %6125 = vst [vmem:[#allocation15_spill] sm:$0xff] %v5130_v63  ;;  %v2559_v0 = vpop.f32.mrb[45].mxu0 }
 0x45e   :  { %6126 = vst [vmem:[#allocation16_spill] sm:$0xff] %v5132_v60  ;;  %v2561_v45 = vpop.f32.mrb[46].mxu0 }
 0x45f   :  { %v2563_v55 = vpop.f32.mrb[47].mxu0 }
 0x460   :  { %v2850_v4 = vpop.f32.mrb[76].mxu1 }
 0x461   :  { %v5134_v7 = vadd.f32 %v2850_v4, %v2557_v56  ;;  %v2852_v9 = vpop.f32.mrb[77].mxu1 }
 0x462   :  { %v5136_v21 = vadd.f32 %v2852_v9, %v2559_v0  ;;  %v2854_v51 = vpop.f32.mrb[78].mxu1 }
 0x463   :  { %6127 = vst [vmem:[#allocation17_spill] sm:$0xff] %v5134_v7  ;;  %v5138_v42 = vadd.f32 %v2854_v51, %v2561_v45  ;;  %v2856_v20 = vpop.f32.mrb[79].mxu1 }
 0x464   :  { %6128 = vst [vmem:[#allocation18_spill] sm:$0xff] %v5136_v21  ;;  %v5140_v23 = vadd.f32 %v2856_v20, %v2563_v55  ;;  %v2567_v24 = vpop.f32.mrb[48].mxu0 }
 0x465   :  { %6129 = vst [vmem:[#allocation19_spill] sm:$0xff] %v5138_v42  ;;  %v2569_v25 = vpop.f32.mrb[49].mxu0 }
 0x466   :  { %6130 = vst [vmem:[#allocation20_spill] sm:$0xff] %v5140_v23  ;;  %v2571_v28 = vpop.f32.mrb[50].mxu0 }
 0x467   :  { %v2573_v32 = vpop.f32.mrb[51].mxu0 }
 0x468   :  { %v2860_v29 = vpop.f32.mrb[80].mxu1 }
 0x469   :  { %v5142_v39 = vadd.f32 %v2860_v29, %v2567_v24  ;;  %v2862_v40 = vpop.f32.mrb[81].mxu1 }
 0x46a   :  { %v5144_v43 = vadd.f32 %v2862_v40, %v2569_v25  ;;  %v2864_v47 = vpop.f32.mrb[82].mxu1 }
 0x46b   :  { %6131 = vst [vmem:[#allocation21_spill] sm:$0xff] %v5142_v39  ;;  %v5146_v48 = vadd.f32 %v2864_v47, %v2571_v28  ;;  %v2866_v37 = vpop.f32.mrb[83].mxu1 }
 0x46c   :  { %6132 = vst [vmem:[#allocation22_spill] sm:$0xff] %v5144_v43  ;;  %v5148_v62 = vadd.f32 %v2866_v37, %v2573_v32  ;;  %v2577_v57 = vpop.f32.mrb[52].mxu0 }
 0x46d   :  { %6133 = vst [vmem:[#allocation23_spill] sm:$0xff] %v5146_v48  ;;  %v2579_v56 = vpop.f32.mrb[53].mxu0 }
 0x46e   :  { %6134 = vst [vmem:[#allocation24_spill] sm:$0xff] %v5148_v62  ;;  %v2581_v0 = vpop.f32.mrb[54].mxu0 }
 0x46f   :  { %v2583_v45 = vpop.f32.mrb[55].mxu0 }
 0x470   :  { %v2870_v55 = vpop.f32.mrb[84].mxu1 }
 0x471   :  { %v5150_v4 = vadd.f32 %v2870_v55, %v2577_v57  ;;  %v2872_v9 = vpop.f32.mrb[85].mxu1 }
 0x472   :  { %v5152_v51 = vadd.f32 %v2872_v9, %v2579_v56  ;;  %v2874_v20 = vpop.f32.mrb[86].mxu1 }
 0x473   :  { %6135 = vst [vmem:[#allocation25_spill] sm:$0xff] %v5150_v4  ;;  %v5154_v24 = vadd.f32 %v2874_v20, %v2581_v0  ;;  %v2876_v25 = vpop.f32.mrb[87].mxu1 }
 0x474   :  { %6136 = vst [vmem:[#allocation26_spill] sm:$0xff] %v5152_v51  ;;  %v5156_v29 = vadd.f32 %v2876_v25, %v2583_v45  ;;  %v2587_v28 = vpop.f32.mrb[56].mxu0 }
 0x475   :  { %6137 = vst [vmem:[#allocation27_spill] sm:$0xff] %v5154_v24  ;;  %v2589_v40 = vpop.f32.mrb[57].mxu0 }
 0x476   :  { %6138 = vst [vmem:[#allocation28_spill] sm:$0xff] %v5156_v29  ;;  %v2591_v32 = vpop.f32.mrb[58].mxu0 }
 0x477   :  { %v2593_v47 = vpop.f32.mrb[59].mxu0 }
 0x478   :  { %v2880_v37 = vpop.f32.mrb[88].mxu1 }
 0x479   :  { %v5158_v62 = vadd.f32 %v2880_v37, %v2587_v28  ;;  %v2882_v48 = vpop.f32.mrb[89].mxu1 }
 0x47a   :  { %v5160_v43 = vadd.f32 %v2882_v48, %v2589_v40  ;;  %v2884_v57 = vpop.f32.mrb[90].mxu1 }
 0x47b   :  { %6139 = vst [vmem:[#allocation29_spill] sm:$0xff] %v5158_v62  ;;  %v5162_v55 = vadd.f32 %v2884_v57, %v2591_v32  ;;  %v2886_v56 = vpop.f32.mrb[91].mxu1 }
 0x47c   :  { %6140 = vst [vmem:[#allocation30_spill] sm:$0xff] %v5160_v43  ;;  %v5164_v9 = vadd.f32 %v2886_v56, %v2593_v47  ;;  %v2597_v0 = vpop.f32.mrb[60].mxu0 }
 0x47d   :  { %6141 = vst [vmem:[#allocation31_spill] sm:$0xff] %v5162_v55  ;;  %v2599_v20 = vpop.f32.mrb[61].mxu0 }
 0x47e   :  { %6142 = vst [vmem:[#allocation32_spill] sm:$0xff] %v5164_v9  ;;  %v2601_v45 = vpop.f32.mrb[62].mxu0 }
 0x47f   :  { %v2603_v25 = vpop.f32.mrb[63].mxu0 }
 0x480   :  { %v2890_v29 = vpop.f32.mrb[92].mxu1 }
 0x481   :  { %v5166_v24 = vadd.f32 %v2890_v29, %v2597_v0  ;;  %v2892_v51 = vpop.f32.mrb[93].mxu1 }
 0x482   :  { %v5168_v4 = vadd.f32 %v2892_v51, %v2599_v20  ;;  %v2894_v28 = vpop.f32.mrb[94].mxu1 }
 0x483   :  { %6143 = vst [vmem:[#allocation33_spill] sm:$0xff] %v5166_v24  ;;  %v5170_v37 = vadd.f32 %v2894_v28, %v2601_v45  ;;  %v2896_v48 = vpop.f32.mrb[95].mxu1 }
 0x484   :  { %6144 = vst [vmem:[#allocation34_spill] sm:$0xff] %v5168_v4  ;;  %v5172_v40 = vadd.f32 %v2896_v48, %v2603_v25  ;;  %v2607_v32 = vpop.f32.mrb[64].mxu0 }
 0x485   :  { %6145 = vst [vmem:[#allocation35_spill] sm:$0xff] %v5170_v37  ;;  %v2609_v57 = vpop.f32.mrb[65].mxu0 }
 0x486   :  { %6146 = vst [vmem:[#allocation36_spill] sm:$0xff] %v5172_v40  ;;  %v2611_v47 = vpop.f32.mrb[66].mxu0 }
 0x487   :  { %v2613_v56 = vpop.f32.mrb[67].mxu0 }
 0x488   :  { %v2900_v9 = vpop.f32.mrb[96].mxu1 }
 0x489   :  { %v5174_v55 = vadd.f32 %v2900_v9, %v2607_v32  ;;  %v2902_v43 = vpop.f32.mrb[97].mxu1 }
 0x48a   :  { %v5176_v62 = vadd.f32 %v2902_v43, %v2609_v57  ;;  %v2904_v29 = vpop.f32.mrb[98].mxu1 }
 0x48b   :  { %6147 = vst [vmem:[#allocation37_spill] sm:$0xff] %v5174_v55  ;;  %v5178_v0 = vadd.f32 %v2904_v29, %v2611_v47  ;;  %v2906_v51 = vpop.f32.mrb[99].mxu1 }
 0x48c   :  { %6148 = vst [vmem:[#allocation38_spill] sm:$0xff] %v5176_v62  ;;  %v5180_v20 = vadd.f32 %v2906_v51, %v2613_v56  ;;  %v2617_v45 = vpop.f32.mrb[68].mxu0 }
 0x48d   :  { %6149 = vst [vmem:[#allocation39_spill] sm:$0xff] %v5178_v0  ;;  %v2619_v28 = vpop.f32.mrb[69].mxu0 }
 0x48e   :  { %6150 = vst [vmem:[#allocation40_spill] sm:$0xff] %v5180_v20  ;;  %v2621_v25 = vpop.f32.mrb[70].mxu0 }
 0x48f   :  { %v2623_v48 = vpop.f32.mrb[71].mxu0 }
 0x490   :  { %v2910_v40 = vpop.f32.mrb[100].mxu1 }
 0x491   :  { %v5182_v37 = vadd.f32 %v2910_v40, %v2617_v45  ;;  %v2912_v4 = vpop.f32.mrb[101].mxu1 }
 0x492   :  { %v5184_v24 = vadd.f32 %v2912_v4, %v2619_v28  ;;  %v2914_v9 = vpop.f32.mrb[102].mxu1  ;;  %v3019_v28 = vld [vmem:[%s6077_s6] sm:$0x3] }
 0x493   :  { %6151 = vst [vmem:[#allocation41_spill] sm:$0xff] %v5182_v37  ;;  %v5186_v32 = vadd.f32 %v2914_v9, %v2621_v25  ;;  %v2916_v43 = vpop.f32.mrb[103].mxu1  ;;  %v5204_v9 = vld [vmem:[%s6078_s7] sm:$0xff] }
 0x494   :  { %6152 = vst [vmem:[#allocation42_spill] sm:$0xff] %v5184_v24  ;;  %v5188_v57 = vadd.f32 %v2916_v43, %v2623_v48  ;;  %v2627_v47 = vpop.f32.mrb[72].mxu0  ;;  %6159 = vst [vmem:[#allocation49_spill] sm:$0xff] %v5204_v9  ;;  %v3034_v24 = vld [vmem:[%s6078_s7 + $0x18] sm:$0xff]  ;;  %v5265_v42 = vrot.slane %v5204_v9, %v4869_v59 }
 0x495   :  { %6153 = vst [vmem:[#allocation43_spill] sm:$0xff] %v5186_v32  ;;  %v2629_v29 = vpop.f32.mrb[73].mxu0  ;;  %v3033_v32 = vld [vmem:[%s6078_s7 + $0x10] sm:$0xff] }
 0x496   :  { %6154 = vst [vmem:[#allocation44_spill] sm:$0xff] %v5188_v57  ;;  %v2631_v56 = vpop.f32.mrb[74].mxu0  ;;  %v5249_v57 = vrot.slane %v5204_v9, %v4866_v58  ;;  %v5300_v50 = vrot.slane %v3033_v32, %v4835_v15 }
 0x497   :  { %v2633_v51 = vpop.f32.mrb[75].mxu0 }
 0x498   :  { %v2920_v20 = vpop.f32.mrb[104].mxu1  ;;  %6172 = vst [vmem:[#allocation62_spill] sm:$0xff] %v5300_v50  ;;  %v5326_v50 = vrot.slane %v3033_v32, %v4866_v58 }
 0x499   :  { %v5190_v0 = vadd.f32 %v2920_v20, %v2627_v47  ;;  %v2922_v62 = vpop.f32.mrb[105].mxu1  ;;  %v5212_v47 = vrot.slane %v3019_v28, %v4827_v13 }
 0x49a   :  { %v5192_v55 = vadd.f32 %v2922_v62, %v2629_v29  ;;  %v2924_v40 = vpop.f32.mrb[106].mxu1  ;;  %v5209_v62 = vld [vmem:[%s6078_s7 + $0x8] sm:$0xff]  ;;  %v5215_v29 = vrot.slane %v3019_v28, %v4835_v15  ;;  %6178 = vst [vmem:[#allocation68_spill] sm:$0xff] %v5326_v50 }
 0x49b   :  { %6155 = vst [vmem:[#allocation45_spill] sm:$0xff] %v5190_v0  ;;  %v5194_v45 = vadd.f32 %v2924_v40, %v2631_v56  ;;  %v2926_v4 = vpop.f32.mrb[107].mxu1  ;;  %6160 = vst [vmem:[#allocation50_spill] sm:$0xff] %v5209_v62  ;;  %v5218_v56 = vsub.s32 6, %v4824_v12  ;;  %v5237_v28 = vrot.slane %v5209_v62, %v4840_v49  ;;  %v5245_v0 = vrot.slane %v5209_v62, %v4845_v18 }
 0x49c   :  { %6156 = vst [vmem:[#allocation46_spill] sm:$0xff] %v5192_v55  ;;  %v5199_v25 = vadd.f32 %v2926_v4, %v2633_v51  ;;  %v2637_v48 = vpop.f32.mrb[76].mxu0  ;;  %v5221_v51 = vsub.s32 7, %v4824_v12  ;;  %v5225_v4 = vrot.slane %v5204_v9, %v4835_v15  ;;  %v5241_v12 = vrot.slane %v5204_v9, %v4845_v18 }
 0x49d   :  { %6157 = vst [vmem:[#allocation47_spill] sm:$0xff] %v5194_v45  ;;  %v2639_v20 = vpop.f32.mrb[77].mxu0  ;;  %6161 = vst [vmem:[#allocation51_spill] sm:$0xff] %v5218_v56  ;;  %v5233_v45 = vrot.slane %v5204_v9, %v4840_v49  ;;  %v5261_v23 = vrot.slane %v5209_v62, %v4866_v58  ;;  %v5269_v21 = vrot.slane %v5209_v62, %v4869_v59 }
 0x49e   :  { %6158 = vst [vmem:[#allocation48_spill] sm:$0xff] %v5199_v25  ;;  %v2641_v43 = vpop.f32.mrb[78].mxu0  ;;  %v5229_v25 = vrot.slane %v5209_v62, %v4835_v15  ;;  %v3087_v50 = vadd.f32 %v5212_v47, %v5078_v17  ;;  %v5367_v35 = vrot.slane %v3034_v24, %v5221_v51 }
 0x49f   :  { %v2643_v40 = vpop.f32.mrb[79].mxu0 }
 0x4a0   :  { %v2930_v55 = vpop.f32.mrb[108].mxu1 }
 0x4a1   :  { %v5257_v37 = vadd.f32 %v2930_v55, %v2637_v48  ;;  %v2932_v39 = vpop.f32.mrb[109].mxu1  ;;  %v5275_v55 = vrot.slane %v5204_v9, %v5218_v56  ;;  %v5279_v48 = vrot.slane %v5209_v62, %v5218_v56 }
 0x4a2   :  { %v5271_v7 = vadd.f32 %v2932_v39, %v2639_v20  ;;  %v2934_v60 = vpop.f32.mrb[110].mxu1  ;;  %v5289_v39 = vrot.slane %v5209_v62, %v5221_v51  ;;  %v5292_v20 = vrot.slane %v3033_v32, %v4827_v13 }
 0x4a3   :  { %6162 = vst [vmem:[#allocation52_spill] sm:$0xff] %v5257_v37  ;;  %6164 = vst [vmem:[#allocation54_spill] sm:$0xff] %v5275_v55  ;;  %v5283_v37 = vrot.slane %v5204_v9, %v5221_v51  ;;  %v5285_v63 = vadd.f32 %v2934_v60, %v2641_v43  ;;  %v2936_v53 = vpop.f32.mrb[111].mxu1  ;;  %v5303_v60 = vrot.slane %v3034_v24, %v4835_v15 }
 0x4a4   :  { %6163 = vst [vmem:[#allocation53_spill] sm:$0xff] %v5271_v7  ;;  %6165 = vst [vmem:[#allocation55_spill] sm:$0xff] %v5279_v48  ;;  %v5295_v7 = vrot.slane %v3034_v24, %v4827_v13  ;;  %v5297_v55 = vadd.f32 %v2936_v53, %v2643_v40  ;;  %v2647_v48 = vpop.f32.mrb[80].mxu0  ;;  %v5306_v43 = vrot.slane %v3033_v32, %v4840_v49 }
 0x4a5   :  { %6166 = vst [vmem:[#allocation56_spill] sm:$0xff] %v5283_v37  ;;  %6167 = vst [vmem:[#allocation57_spill] sm:$0xff] %v5285_v63  ;;  %v5309_v63 = vrot.slane %v3034_v24, %v4840_v49  ;;  %v2649_v62 = vpop.f32.mrb[81].mxu0  ;;  %v3063_v9 = vadd.f32 %v5212_v47, %v5070_v1  ;;  %v3064_v53 = vadd.f32 %v5215_v29, %v5072_v2 }
 0x4a6   :  { %6168 = vst [vmem:[#allocation58_spill] sm:$0xff] %v5289_v39  ;;  %6169 = vst [vmem:[#allocation59_spill] sm:$0xff] %v5292_v20  ;;  %v5316_v40 = vrot.slane %v3033_v32, %v4845_v18  ;;  %v5329_v1 = vrot.slane %v3034_v24, %v4866_v58  ;;  %v5348_v20 = vrot.slane %v3033_v32, %v5221_v51 }
 0x4a7   :  { %6170 = vst [vmem:[#allocation60_spill] sm:$0xff] %v5295_v7  ;;  %6171 = vst [vmem:[#allocation61_spill] sm:$0xff] %v5297_v55  ;;  %v5319_v55 = vrot.slane %v3034_v24, %v4845_v18  ;;  %v5332_v7 = vrot.slane %v3033_v32, %v4869_v59  ;;  %v3067_v17 = vmax.f32 %v3063_v9, 0.0  ;;  %v3068_v39 = vmax.f32 %v3064_v53, 0.0 }
 0x4a8   :  { %6173 = vst [vmem:[#allocation63_spill] sm:$0xff] %v5303_v60  ;;  %6174 = vst [vmem:[#allocation64_spill] sm:$0xff] %v5306_v43  ;;  %v2651_v60 = vpop.f32.mrb[82].mxu0  ;;  %v3065_v43 = vadd.f32 %v5212_v47, %v5074_v38  ;;  %v5341_v38 = vrot.slane %v3034_v24, %v5218_v56 }
 0x4a9   :  { %6175 = vst [vmem:[#allocation65_spill] sm:$0xff] %v5309_v63  ;;  %6176 = vst [vmem:[#allocation66_spill] sm:$0xff] %v5316_v40  ;;  %v3066_v63 = vadd.f32 %v5215_v29, %v5076_v8  ;;  %v2653_v2 = vpop.f32.mrb[83].mxu0  ;;  %v5335_v40 = vrot.slane %v3034_v24, %v4869_v59  ;;  %v2940_v8 = vpop.f32.mrb[112].mxu1  ;;  %v5395_v53 = vmul.f32 %v5229_v25, %v3068_v39 }
 0x4aa   :  { %6177 = vst [vmem:[#allocation67_spill] sm:$0xff] %v5319_v55  ;;  %6179 = vst [vmem:[#allocation69_spill] sm:$0xff] %v5329_v1  ;;  %v5338_v55 = vrot.slane %v3033_v32, %v5218_v56  ;;  %v3088_v1 = vadd.f32 %v5215_v29, %v5080_v14  ;;  %v3089_v14 = vadd.f32 %v5212_v47, %v5082_v52  ;;  %v3069_v37 = vmax.f32 %v3065_v43, 0.0 }
 0x4ab   :  { %6180 = vst [vmem:[#allocation70_spill] sm:$0xff] %v5332_v7  ;;  %6181 = vst [vmem:[#allocation71_spill] sm:$0xff] %v5335_v40  ;;  %v5353_v40 = vld [vmem:[%s6078_s7 + $0x20] sm:$0xff]  ;;  %v2942_v7 = vpop.f32.mrb[113].mxu1  ;;  %v3070_v56 = vmax.f32 %v3066_v63, 0.0  ;;  %v5392_v43 = vmul.f32 %v5225_v4, %v3067_v17 }
 0x4ac   :  { %6182 = vst [vmem:[#allocation72_spill] sm:$0xff] %v5338_v55  ;;  %6183 = vst [vmem:[#allocation73_spill] sm:$0xff] %v5341_v38  ;;  %v5358_v55 = vld [vmem:[%s6078_s7 + $0x28] sm:$0xff]  ;;  %v5360_v38 = vadd.f32 %v2940_v8, %v2647_v48  ;;  %v5364_v32 = vadd.f32 %v2942_v7, %v2649_v62  ;;  %v3090_v48 = vadd.f32 %v5215_v29, %v5084_v5  ;;  %v2657_v63 = vpop.f32.mrb[84].mxu0  ;;  %v3091_v62 = vmax.f32 %v3087_v50, 0.0 }
 0x4ad   :  { %6184 = vst [vmem:[#allocation74_spill] sm:$0xff] %v5348_v20  ;;  %v2944_v20 = vpop.f32.mrb[114].mxu1  ;;  %v5375_v9 = vrot.slane %v5353_v40, %v4827_v13  ;;  %v5379_v52 = vrot.slane %v5358_v55, %v4827_v13  ;;  %v3092_v24 = vmax.f32 %v3088_v1, 0.0  ;;  %v5389_v5 = vrot.slane %v5358_v55, %v4835_v15 }
 0x4ae   :  { %v5369_v34 = vadd.f32 %v2944_v20, %v2651_v60  ;;  %v2946_v31 = vpop.f32.mrb[115].mxu1  ;;  %v5385_v20 = vrot.slane %v5353_v40, %v4835_v15  ;;  %v2659_v60 = vpop.f32.mrb[85].mxu0  ;;  %v3111_v50 = vadd.f32 %v5212_v47, %v5086_v27  ;;  %v5403_v8 = vmul.f32 %v5229_v25, %v3070_v56 }
 0x4af   :  { %v5381_v7 = vadd.f32 %v2946_v31, %v2653_v2  ;;  %v3093_v31 = vmax.f32 %v3089_v14, 0.0  ;;  %v2661_v1 = vpop.f32.mrb[86].mxu0  ;;  %v5400_v2 = vmul.f32 %v5225_v4, %v3069_v37  ;;  %v5409_v17 = vrot.slane %v5353_v40, %v4840_v49 }
 0x4b0   :  { %6185 = vst [vmem:[#allocation75_spill] sm:$0xff] %v5369_v34  ;;  %6187 = vst [vmem:[#allocation77_spill] sm:$0xff] %v5403_v8  ;;  %v2663_v39 = vpop.f32.mrb[87].mxu0  ;;  %v3094_v34 = vmax.f32 %v3090_v48, 0.0  ;;  %v3113_v14 = vadd.f32 %v5212_v47, %v5090_v6  ;;  %v3114_v27 = vadd.f32 %v5215_v29, %v5092_v33  ;;  %v5417_v37 = vrot.slane %v5358_v55, %v4840_v49  ;;  %v2950_v25 = vpop.f32.mrb[116].mxu1 }
 0x4b1   :  { %6186 = vst [vmem:[#allocation76_spill] sm:$0xff] %v5381_v7  ;;  %v3112_v7 = vadd.f32 %v5215_v29, %v5088_v30  ;;  %6188 = vst [vmem:[#allocation78_spill] sm:$0xff] %v5409_v17  ;;  %v5420_v56 = vmul.f32 %v5233_v45, %v3091_v62  ;;  %v5423_v30 = vmul.f32 %v5237_v28, %v3092_v24  ;;  %v2952_v6 = vpop.f32.mrb[117].mxu1  ;;  %v3115_v33 = vmax.f32 %v3111_v50, 0.0 }
 0x4b2   :  { %6189 = vst [vmem:[#allocation79_spill] sm:$0xff] %v5417_v37  ;;  %v3135_v4 = vadd.f32 %v5212_v47, %v5094_v41  ;;  %v5427_v48 = vadd.f32 %v2950_v25, %v2657_v63  ;;  %v5430_v17 = vmul.f32 %v5233_v45, %v3093_v31  ;;  %v3136_v49 = vadd.f32 %v5215_v29, %v5096_v44  ;;  %v2954_v62 = vpop.f32.mrb[118].mxu1 }
 0x4b3   :  { %v5434_v37 = vadd.f32 %v2952_v6, %v2659_v60  ;;  %v3116_v8 = vmax.f32 %v3112_v7, 0.0  ;;  %v3137_v24 = vadd.f32 %v5212_v47, %v5098_v46  ;;  %v3138_v41 = vadd.f32 %v5215_v29, %v5100_v36  ;;  %v2956_v25 = vpop.f32.mrb[119].mxu1 }
 0x4b4   :  { %6190 = vst [vmem:[#allocation80_spill] sm:$0xff] %v5430_v17  ;;  %v5440_v63 = vadd.f32 %v2954_v62, %v2661_v1  ;;  %v5443_v45 = vmul.f32 %v5237_v28, %v3094_v34  ;;  %v3117_v31 = vmax.f32 %v3113_v14, 0.0  ;;  %v3118_v50 = vmax.f32 %v3114_v27, 0.0  ;;  %v2667_v44 = vpop.f32.mrb[88].mxu0 }
 0x4b5   :  { %v5445_v17 = vadd.f32 %v2956_v25, %v2663_v39  ;;  %v3139_v60 = vmax.f32 %v3135_v4, 0.0  ;;  %v3159_v7 = vadd.f32 %v5212_v47, %v5102_v54  ;;  %v5451_v46 = vrot.slane %v5353_v40, %v4845_v18  ;;  %v2669_v1 = vpop.f32.mrb[89].mxu0 }
 0x4b6   :  { %v5455_v36 = vrot.slane %v5358_v55, %v4845_v18  ;;  %v5458_v34 = vmul.f32 %v5241_v12, %v3115_v33  ;;  %v3140_v28 = vmax.f32 %v3136_v49, 0.0  ;;  %v3160_v39 = vadd.f32 %v5215_v29, %v5104_v3  ;;  %v2671_v54 = vpop.f32.mrb[90].mxu0 }
 0x4b7   :  { %6191 = vst [vmem:[#allocation81_spill] sm:$0xff] %v5451_v46  ;;  %v3161_v14 = vadd.f32 %v5212_v47, %v5106_v61  ;;  %v5465_v27 = vmul.f32 %v5245_v0, %v3116_v8  ;;  %v3141_v4 = vmax.f32 %v3137_v24, 0.0  ;;  %v3142_v6 = vmax.f32 %v3138_v41, 0.0  ;;  %v2673_v62 = vpop.f32.mrb[91].mxu0 }
 0x4b8   :  { %6192 = vst [vmem:[#allocation82_spill] sm:$0xff] %v5455_v36  ;;  %v3162_v18 = vadd.f32 %v5215_v29, %v5108_v10  ;;  %v5470_v33 = vmul.f32 %v5241_v12, %v3117_v31  ;;  %v5473_v49 = vmul.f32 %v5245_v0, %v3118_v50  ;;  %v2960_v3 = vpop.f32.mrb[120].mxu1  ;;  %v5477_v61 = vrot.slane %v5353_v40, %v4866_v58 }
 0x4b9   :  { %v5481_v8 = vrot.slane %v5358_v55, %v4866_v58  ;;  %v5484_v24 = vmul.f32 %v5249_v57, %v3139_v60  ;;  %v3163_v10 = vmax.f32 %v3159_v7, 0.0  ;;  %v3183_v12 = vadd.f32 %v5212_v47, %v5110_v22  ;;  %v2962_v0 = vpop.f32.mrb[121].mxu1 }
 0x4ba   :  { %6193 = vst [vmem:[#allocation83_spill] sm:$0xff] %v5477_v61  ;;  %v5488_v41 = vadd.f32 %v2960_v3, %v2667_v44  ;;  %v5491_v25 = vmul.f32 %v5261_v23, %v3140_v28  ;;  %v3164_v31 = vmax.f32 %v3160_v39, 0.0  ;;  %v3165_v50 = vmax.f32 %v3161_v14, 0.0  ;;  %v2964_v36 = vpop.f32.mrb[122].mxu1 }
 0x4bb   :  { %6194 = vst [vmem:[#allocation84_spill] sm:$0xff] %v5481_v8  ;;  %v5493_v61 = vadd.f32 %v2962_v0, %v2669_v1  ;;  %v5496_v58 = vmul.f32 %v5249_v57, %v3141_v4  ;;  %v5499_v60 = vmul.f32 %v5261_v23, %v3142_v6  ;;  %v3166_v7 = vmax.f32 %v3162_v18, 0.0  ;;  %v2966_v22 = vpop.f32.mrb[123].mxu1  ;;  %v6202_v18 = vld [vmem:[#allocation10_spill] sm:$0xff] }
 0x4bc   :  { %6195 = vst [vmem:[#allocation85_spill] sm:$0xff] %v5488_v41  ;;  %v5501_v8 = vadd.f32 %v2964_v36, %v2671_v54  ;;  %v3184_v44 = vadd.f32 %v5215_v29, %v5112_v11  ;;  %v3185_v28 = vadd.f32 %v5212_v47, %v5114_v16  ;;  %v5507_v39 = vadd.f32 %v2966_v22, %v2673_v62  ;;  %v2677_v1 = vpop.f32.mrb[92].mxu0  ;;  %v6206_v22 = vld [vmem:[#allocation51_spill] sm:$0xff] }
 0x4bd   :  { %6196 = vst [vmem:[#allocation86_spill] sm:$0xff] %v5493_v61  ;;  %v5511_v57 = vrot.slane %v5353_v40, %v4869_v59  ;;  %v5514_v23 = vmul.f32 %v5265_v42, %v3163_v10  ;;  %v3187_v14 = vmax.f32 %v3183_v12, 0.0  ;;  %v3186_v36 = vadd.f32 %v5215_v29, %v5116_v19  ;;  %v2679_v54 = vpop.f32.mrb[93].mxu0  ;;  %v6204_v10 = vld [vmem:[#allocation11_spill] sm:$0xff]  ;;  %v6205_v12 = vld [vmem:[#allocation12_spill] sm:$0xff] }
 0x4be   :  { %6197 = vst [vmem:[#allocation87_spill] sm:$0xff] %v5501_v8  ;;  %6198 = vst [vmem:[#allocation88_spill] sm:$0xff] %v5507_v39  ;;  %v5520_v11 = vrot.slane %v5358_v55, %v4869_v59  ;;  %v5523_v16 = vmul.f32 %v5269_v21, %v3164_v31  ;;  %v5526_v4 = vmul.f32 %v5265_v42, %v3165_v50  ;;  %v2681_v3 = vpop.f32.mrb[94].mxu0  ;;  %v3188_v50 = vmax.f32 %v3184_v44, 0.0  ;;  %v6214_v41 = vld [vmem:[#allocation15_spill] sm:$0xff] }
 0x4bf   :  { %6199 = vst [vmem:[#allocation89_spill] sm:$0xff] %v5511_v57  ;;  %v3207_v6 = vadd.f32 %v5212_v47, %v5118_v26  ;;  %v3208_v62 = vadd.f32 %v5215_v29, %v6202_v18  ;;  %v5533_v19 = vmul.f32 %v5269_v21, %v3166_v7  ;;  %v3209_v59 = vadd.f32 %v5212_v47, %v6204_v10  ;;  %v2683_v31 = vpop.f32.mrb[95].mxu0  ;;  %v6210_v7 = vld [vmem:[#allocation54_spill] sm:$0xff] }
 0x4c0   :  { %6200 = vst [vmem:[#allocation90_spill] sm:$0xff] %v5520_v11  ;;  %6201 = vst [vmem:[#allocation91_spill] sm:$0xff] %v5526_v4  ;;  %v3210_v0 = vadd.f32 %v5215_v29, %v6205_v12  ;;  %v5541_v42 = vrot.slane %v5353_v40, %v6206_v22  ;;  %v3189_v26 = vmax.f32 %v3185_v28, 0.0  ;;  %v6208_v11 = vld [vmem:[#allocation13_spill] sm:$0xff]  ;;  %v2970_v57 = vpop.f32.mrb[124].mxu1  ;;  %v5547_v21 = vrot.slane %v5358_v55, %v6206_v22  ;;  %v6212_v12 = vld [vmem:[#allocation14_spill] sm:$0xff] }
 0x4c1   :  { %6203 = vst [vmem:[#allocation10_spill] sm:$0xff] %v5533_v19  ;;  %v3231_v18 = vadd.f32 %v5212_v47, %v6208_v11  ;;  %v5550_v10 = vmul.f32 %v6210_v7, %v3187_v14  ;;  %v3190_v39 = vmax.f32 %v3186_v36, 0.0  ;;  %v3232_v8 = vadd.f32 %v5215_v29, %v6212_v12  ;;  %v6216_v4 = vld [vmem:[#allocation16_spill] sm:$0xff]  ;;  %v6218_v12 = vld [vmem:[#allocation55_spill] sm:$0xff] }
 0x4c2   :  { %6207 = vst [vmem:[#allocation11_spill] sm:$0xff] %v5541_v42  ;;  %6209 = vst [vmem:[#allocation12_spill] sm:$0xff] %v5547_v21  ;;  %v5554_v61 = vadd.f32 %v2970_v57, %v2677_v1  ;;  %v2972_v42 = vpop.f32.mrb[125].mxu1  ;;  %v3211_v44 = vmax.f32 %v3207_v6, 0.0  ;;  %v3212_v28 = vmax.f32 %v3208_v62, 0.0  ;;  %v3233_v11 = vadd.f32 %v5212_v47, %v6214_v41 }
 0x4c3   :  { %6211 = vst [vmem:[#allocation51_spill] sm:$0xff] %v5550_v10  ;;  %v5558_v19 = vadd.f32 %v2972_v42, %v2679_v54  ;;  %v2974_v46 = vpop.f32.mrb[126].mxu1  ;;  %v3213_v22 = vmax.f32 %v3209_v59, 0.0  ;;  %v3214_v21 = vmax.f32 %v3210_v0, 0.0  ;;  %v3234_v14 = vadd.f32 %v5215_v29, %v6216_v4  ;;  %v6223_v0 = vld [vmem:[#allocation17_spill] sm:$0xff] }
 0x4c4   :  { %6213 = vst [vmem:[#allocation13_spill] sm:$0xff] %v5554_v61  ;;  %v5562_v36 = vadd.f32 %v2974_v46, %v2681_v3  ;;  %v2976_v10 = vpop.f32.mrb[127].mxu1  ;;  %v5565_v1 = vmul.f32 %v6218_v12, %v3188_v50  ;;  %v5568_v57 = vmul.f32 %v6210_v7, %v3189_v26  ;;  %v3235_v6 = vmax.f32 %v3231_v18, 0.0  ;;  %v2687_v41 = vpop.f32.mrb[96].mxu0  ;;  %v3037_v42 = vld [vmem:[%s6078_s7 + $0x30] sm:$0x3] }
 0x4c5   :  { %6215 = vst [vmem:[#allocation54_spill] sm:$0xff] %v5558_v19  ;;  %v5570_v62 = vadd.f32 %v2976_v10, %v2683_v31  ;;  %v5573_v54 = vmul.f32 %v6218_v12, %v3190_v39  ;;  %v3236_v59 = vmax.f32 %v3232_v8, 0.0  ;;  %v3255_v4 = vadd.f32 %v5212_v47, %v6223_v0  ;;  %v2689_v46 = vpop.f32.mrb[97].mxu0  ;;  %v3038_v31 = vld [vmem:[%s6078_s7 + $0x38] sm:$0x3]  ;;  %v6227_v8 = vld [vmem:[#allocation58_spill] sm:$0xff] }
 0x4c6   :  { %6217 = vst [vmem:[#allocation14_spill] sm:$0xff] %v5562_v36  ;;  %6219 = vst [vmem:[#allocation15_spill] sm:$0xff] %v5565_v1  ;;  %v5579_v3 = vrot.slane %v5353_v40, %v5221_v51  ;;  %v6225_v50 = vld [vmem:[#allocation56_spill] sm:$0xff]  ;;  %v5591_v26 = vmul.f32 %v6227_v8, %v3212_v28  ;;  %v3237_v18 = vmax.f32 %v3233_v11, 0.0  ;;  %v2691_v7 = vpop.f32.mrb[98].mxu0  ;;  %v5595_v40 = vrot.slane %v5358_v55, %v5221_v51  ;;  %v6233_v36 = vld [vmem:[#allocation59_spill] sm:$0xff] }
 0x4c7   :  { %6220 = vst [vmem:[#allocation16_spill] sm:$0xff] %v5568_v57  ;;  %6221 = vst [vmem:[#allocation55_spill] sm:$0xff] %v5570_v62  ;;  %v5588_v39 = vmul.f32 %v6225_v50, %v3211_v44  ;;  %v5598_v10 = vmul.f32 %v6225_v50, %v3213_v22  ;;  %v5601_v12 = vmul.f32 %v6227_v8, %v3214_v21  ;;  %v3238_v0 = vmax.f32 %v3234_v14, 0.0  ;;  %v2693_v62 = vpop.f32.mrb[99].mxu0  ;;  %v6235_v11 = vld [vmem:[#allocation19_spill] sm:$0xff]  ;;  %v6238_v21 = vld [vmem:[#allocation60_spill] sm:$0xff] }
 0x4c8   :  { %6222 = vst [vmem:[#allocation92_spill] sm:$0xff] %v5573_v54  ;;  %6224 = vst [vmem:[#allocation17_spill] sm:$0xff] %v5579_v3  ;;  %v6232_v3 = vld [vmem:[#allocation18_spill] sm:$0xff]  ;;  %v5606_v28 = vmul.f32 %v6233_v36, %v3235_v6  ;;  %v3257_v19 = vadd.f32 %v5212_v47, %v6235_v11  ;;  %v2980_v61 = vpop.f32.mrb[128].mxu1  ;;  %v5611_v51 = vrot.slane %v3037_v42, %v4827_v13  ;;  %v3259_v14 = vmax.f32 %v3255_v4, 0.0  ;;  %v6240_v50 = vld [vmem:[#allocation20_spill] sm:$0xff] }
 0x4c9   :  { %6226 = vst [vmem:[#allocation56_spill] sm:$0xff] %v5588_v39  ;;  %6228 = vst [vmem:[#allocation58_spill] sm:$0xff] %v5591_v26  ;;  %v3256_v44 = vadd.f32 %v5215_v29, %v6232_v3  ;;  %v5614_v55 = vrot.slane %v3038_v31, %v4827_v13  ;;  %v5617_v22 = vmul.f32 %v6238_v21, %v3236_v59  ;;  %v2982_v6 = vpop.f32.mrb[129].mxu1  ;;  %v6243_v11 = vld [vmem:[#allocation21_spill] sm:$0xff] }
 0x4ca   :  { %6229 = vst [vmem:[#allocation93_spill] sm:$0xff] %v5595_v40  ;;  %6230 = vst [vmem:[#allocation94_spill] sm:$0xff] %v5598_v10  ;;  %v3258_v3 = vadd.f32 %v5215_v29, %v6240_v50  ;;  %v5621_v8 = vadd.f32 %v2980_v61, %v2687_v41  ;;  %v5624_v40 = vmul.f32 %v6233_v36, %v3237_v18  ;;  %v2984_v59 = vpop.f32.mrb[130].mxu1  ;;  %v6247_v50 = vld [vmem:[#allocation23_spill] sm:$0xff]  ;;  %v3261_v18 = vmax.f32 %v3257_v19, 0.0  ;;  %v6299_v39 = vld [vmem:[#allocation41_spill] sm:$0xff] }
 0x4cb   :  { %6231 = vst [vmem:[#allocation95_spill] sm:$0xff] %v5601_v12  ;;  %6234 = vst [vmem:[#allocation18_spill] sm:$0xff] %v5606_v28  ;;  %v3279_v12 = vadd.f32 %v5212_v47, %v6243_v11  ;;  %v5633_v4 = vmul.f32 %v6238_v21, %v3238_v0  ;;  %v3281_v61 = vadd.f32 %v5212_v47, %v6247_v50  ;;  %v2986_v36 = vpop.f32.mrb[131].mxu1  ;;  %v6254_v21 = vld [vmem:[#allocation25_spill] sm:$0xff] }
 0x4cc   :  { %6236 = vst [vmem:[#allocation59_spill] sm:$0xff] %v5611_v51  ;;  %6237 = vst [vmem:[#allocation19_spill] sm:$0xff] %v5614_v55  ;;  %v6244_v51 = vld [vmem:[#allocation22_spill] sm:$0xff]  ;;  %v5630_v55 = vadd.f32 %v2982_v6, %v2689_v46  ;;  %v5637_v41 = vadd.f32 %v2984_v59, %v2691_v7  ;;  %v5644_v46 = vrot.slane %v3037_v42, %v4835_v15  ;;  %v6257_v42 = vld [vmem:[#allocation49_spill] sm:$0xff] }
 0x4cd   :  { %6239 = vst [vmem:[#allocation60_spill] sm:$0xff] %v5617_v22  ;;  %6241 = vst [vmem:[#allocation20_spill] sm:$0xff] %v5621_v8  ;;  %v3280_v10 = vadd.f32 %v5215_v29, %v6244_v51  ;;  %v3260_v22 = vmax.f32 %v3256_v44, 0.0  ;;  %v6249_v8 = vld [vmem:[#allocation24_spill] sm:$0xff]  ;;  %v2697_v51 = vpop.f32.mrb[100].mxu0  ;;  %v6252_v6 = vld [vmem:[#allocation62_spill] sm:$0xff]  ;;  %v3303_v50 = vadd.f32 %v5212_v47, %v6254_v21  ;;  %v5652_v59 = vrot.slane %v3038_v31, %v4835_v15 }
 0x4ce   :  { %6242 = vst [vmem:[#allocation96_spill] sm:$0xff] %v5624_v40  ;;  %6245 = vst [vmem:[#allocation21_spill] sm:$0xff] %v5630_v55  ;;  %v3282_v11 = vadd.f32 %v5215_v29, %v6249_v8  ;;  %v5641_v40 = vadd.f32 %v2986_v36, %v2693_v62  ;;  %v5647_v0 = vmul.f32 %v6252_v6, %v3259_v14  ;;  %v3262_v44 = vmax.f32 %v3258_v3, 0.0  ;;  %v2699_v7 = vpop.f32.mrb[101].mxu0  ;;  %v6256_v8 = vld [vmem:[#allocation26_spill] sm:$0xff]  ;;  %v6258_v14 = vld [vmem:[#allocation63_spill] sm:$0xff] }
 0x4cf   :  { %6246 = vst [vmem:[#allocation22_spill] sm:$0xff] %v5633_v4  ;;  %6248 = vst [vmem:[#allocation23_spill] sm:$0xff] %v5637_v41  ;;  %v3283_v19 = vmax.f32 %v3279_v12, 0.0  ;;  %v3284_v41 = vmax.f32 %v3280_v10, 0.0  ;;  %v3304_v62 = vadd.f32 %v5215_v29, %v6256_v8  ;;  %v2701_v36 = vpop.f32.mrb[102].mxu0  ;;  %v3285_v3 = vmax.f32 %v3281_v61, 0.0 }
 0x4d0   :  { %6250 = vst [vmem:[#allocation24_spill] sm:$0xff] %v5641_v40  ;;  %6251 = vst [vmem:[#allocation97_spill] sm:$0xff] %v5644_v46  ;;  %v5658_v46 = vrot.slane %v6257_v42, %v4827_v13  ;;  %v5661_v40 = vmul.f32 %v6258_v14, %v3260_v22  ;;  %v6260_v55 = vld [vmem:[#allocation27_spill] sm:$0xff]  ;;  %v6261_v4 = vld [vmem:[#allocation28_spill] sm:$0xff]  ;;  %v2703_v31 = vpop.f32.mrb[103].mxu0  ;;  %v5668_v10 = vmul.f32 %v6252_v6, %v3261_v18  ;;  %v3286_v12 = vmax.f32 %v3282_v11, 0.0 }
 0x4d1   :  { %6253 = vst [vmem:[#allocation62_spill] sm:$0xff] %v5647_v0  ;;  %6255 = vst [vmem:[#allocation25_spill] sm:$0xff] %v5652_v59  ;;  %v3305_v21 = vadd.f32 %v5212_v47, %v6260_v55  ;;  %v3306_v15 = vadd.f32 %v5215_v29, %v6261_v4  ;;  %v6263_v8 = vld [vmem:[#allocation29_spill] sm:$0xff]  ;;  %v2990_v42 = vpop.f32.mrb[132].mxu1  ;;  %v6264_v0 = vld [vmem:[#allocation50_spill] sm:$0xff]  ;;  %v5677_v61 = vmul.f32 %v6258_v14, %v3262_v44  ;;  %v3307_v55 = vmax.f32 %v3303_v50, 0.0 }
 0x4d2   :  { %6259 = vst [vmem:[#allocation26_spill] sm:$0xff] %v5661_v40  ;;  %6262 = vst [vmem:[#allocation49_spill] sm:$0xff] %v5668_v10  ;;  %v3327_v59 = vadd.f32 %v5212_v47, %v6263_v8  ;;  %v5674_v22 = vrot.slane %v6264_v0, %v4827_v13  ;;  %v6266_v40 = vld [vmem:[#allocation30_spill] sm:$0xff]  ;;  %v5681_v28 = vadd.f32 %v2990_v42, %v2697_v51  ;;  %v2992_v18 = vpop.f32.mrb[133].mxu1  ;;  %v6268_v6 = vld [vmem:[#allocation64_spill] sm:$0xff]  ;;  %v3308_v54 = vmax.f32 %v3304_v62, 0.0 }
 0x4d3   :  { %6265 = vst [vmem:[#allocation63_spill] sm:$0xff] %v5677_v61  ;;  %v3328_v4 = vadd.f32 %v5215_v29, %v6266_v40  ;;  %v5684_v11 = vmul.f32 %v6268_v6, %v3283_v19  ;;  %v6270_v10 = vld [vmem:[#allocation65_spill] sm:$0xff]  ;;  %v5689_v26 = vadd.f32 %v2992_v18, %v2699_v7  ;;  %v2994_v13 = vpop.f32.mrb[134].mxu1  ;;  %v5692_v0 = vmul.f32 %v6268_v6, %v3285_v3  ;;  %v6276_v42 = vld [vmem:[#allocation31_spill] sm:$0xff]  ;;  %v6278_v62 = vld [vmem:[#allocation66_spill] sm:$0xff] }
 0x4d4   :  { %6267 = vst [vmem:[#allocation27_spill] sm:$0xff] %v5681_v28  ;;  %v5687_v8 = vmul.f32 %v6270_v10, %v3284_v41  ;;  %v3309_v44 = vmax.f32 %v3305_v21, 0.0  ;;  %v3310_v50 = vmax.f32 %v3306_v15, 0.0  ;;  %v5694_v14 = vadd.f32 %v2994_v13, %v2701_v36  ;;  %v2996_v40 = vpop.f32.mrb[135].mxu1  ;;  %v2707_v7 = vpop.f32.mrb[104].mxu0  ;;  %v6280_v6 = vld [vmem:[#allocation32_spill] sm:$0xff] }
 0x4d5   :  { %6269 = vst [vmem:[#allocation28_spill] sm:$0xff] %v5684_v11  ;;  %6272 = vst [vmem:[#allocation50_spill] sm:$0xff] %v5689_v26  ;;  %v5697_v51 = vmul.f32 %v6270_v10, %v3286_v12  ;;  %v3331_v19 = vmax.f32 %v3327_v59, 0.0  ;;  %v3329_v41 = vadd.f32 %v5212_v47, %v6276_v42  ;;  %v5701_v28 = vadd.f32 %v2996_v40, %v2703_v31  ;;  %v6281_v36 = vld [vmem:[#allocation33_spill] sm:$0xff]  ;;  %v2709_v13 = vpop.f32.mrb[105].mxu0  ;;  %v6282_v10 = vld [vmem:[#allocation67_spill] sm:$0xff] }
 0x4d6   :  { %6271 = vst [vmem:[#allocation29_spill] sm:$0xff] %v5687_v8  ;;  %6273 = vst [vmem:[#allocation30_spill] sm:$0xff] %v5692_v0  ;;  %v5704_v18 = vmul.f32 %v6278_v62, %v3307_v55  ;;  %v3332_v3 = vmax.f32 %v3328_v4, 0.0  ;;  %v3330_v21 = vadd.f32 %v5215_v29, %v6280_v6  ;;  %v3351_v15 = vadd.f32 %v5212_v47, %v6281_v36  ;;  %v6284_v59 = vld [vmem:[#allocation34_spill] sm:$0xff]  ;;  %v6285_v31 = vld [vmem:[#allocation35_spill] sm:$0xff]  ;;  %v2711_v4 = vpop.f32.mrb[106].mxu0 }
 0x4d7   :  { %6274 = vst [vmem:[#allocation64_spill] sm:$0xff] %v5694_v14  ;;  %6275 = vst [vmem:[#allocation65_spill] sm:$0xff] %v5697_v51  ;;  %v5711_v12 = vmul.f32 %v6282_v10, %v3308_v54  ;;  %v3352_v42 = vadd.f32 %v5215_v29, %v6284_v59  ;;  %v3353_v40 = vadd.f32 %v5212_v47, %v6285_v31  ;;  %v6289_v36 = vld [vmem:[#allocation37_spill] sm:$0xff]  ;;  %v6290_v26 = vld [vmem:[#allocation38_spill] sm:$0xff]  ;;  %v2713_v59 = vpop.f32.mrb[107].mxu0  ;;  %v3333_v31 = vmax.f32 %v3329_v41, 0.0 }
 0x4d8   :  { %6277 = vst [vmem:[#allocation31_spill] sm:$0xff] %v5701_v28  ;;  %6279 = vst [vmem:[#allocation66_spill] sm:$0xff] %v5704_v18  ;;  %v6286_v28 = vld [vmem:[#allocation36_spill] sm:$0xff]  ;;  %v5720_v14 = vmul.f32 %v6278_v62, %v3309_v44  ;;  %v5723_v6 = vmul.f32 %v6282_v10, %v3310_v50  ;;  %v3375_v54 = vadd.f32 %v5212_v47, %v6289_v36  ;;  %v6293_v18 = vld [vmem:[#allocation39_spill] sm:$0xff]  ;;  %v3000_v62 = vpop.f32.mrb[136].mxu1  ;;  %v3355_v36 = vmax.f32 %v3351_v15, 0.0 }
 0x4d9   :  { %6283 = vst [vmem:[#allocation32_spill] sm:$0xff] %v5711_v12  ;;  %v3354_v55 = vadd.f32 %v5215_v29, %v6286_v28  ;;  %v3376_v51 = vadd.f32 %v5215_v29, %v6290_v26  ;;  %v6291_v12 = vld [vmem:[#allocation68_spill] sm:$0xff]  ;;  %v3377_v28 = vadd.f32 %v5212_v47, %v6293_v18  ;;  %v6295_v50 = vld [vmem:[#allocation69_spill] sm:$0xff]  ;;  %v3002_v26 = vpop.f32.mrb[137].mxu1  ;;  %v3356_v8 = vmax.f32 %v3352_v42, 0.0  ;;  %v6301_v15 = vld [vmem:[#allocation42_spill] sm:$0xff] }
 0x4da   :  { %6287 = vst [vmem:[#allocation33_spill] sm:$0xff] %v5720_v14  ;;  %6288 = vst [vmem:[#allocation67_spill] sm:$0xff] %v5723_v6  ;;  %v5730_v0 = vmul.f32 %v6291_v12, %v3331_v19  ;;  %v6294_v61 = vld [vmem:[#allocation40_spill] sm:$0xff]  ;;  %v5737_v10 = vmul.f32 %v6295_v50, %v3332_v3  ;;  %v3334_v6 = vmax.f32 %v3330_v21, 0.0  ;;  %v5739_v14 = vadd.f32 %v3000_v62, %v2707_v7  ;;  %v3004_v41 = vpop.f32.mrb[138].mxu1 }
 0x4db   :  { %v3378_v44 = vadd.f32 %v5215_v29, %v6294_v61  ;;  %v3357_v11 = vmax.f32 %v3353_v40, 0.0  ;;  %v3358_v19 = vmax.f32 %v3354_v55, 0.0  ;;  %v3379_v57 = vmax.f32 %v3375_v54, 0.0  ;;  %v3006_v3 = vpop.f32.mrb[139].mxu1 }
 0x4dc   :  { %6292 = vst [vmem:[#allocation34_spill] sm:$0xff] %v5730_v0  ;;  %6296 = vst [vmem:[#allocation35_spill] sm:$0xff] %v5737_v10  ;;  %v5741_v0 = vadd.f32 %v3002_v26, %v2709_v13  ;;  %v3380_v18 = vmax.f32 %v3376_v51, 0.0  ;;  %v3399_v61 = vadd.f32 %v5212_v47, %v6299_v39  ;;  %v5745_v1 = vadd.f32 %v3004_v41, %v2711_v4  ;;  %v2717_v42 = vpop.f32.mrb[108].mxu0  ;;  %v6303_v51 = vld [vmem:[#allocation70_spill] sm:$0xff]  ;;  %v6304_v39 = vld [vmem:[#allocation43_spill] sm:$0xff] }
 0x4dd   :  { %6297 = vst [vmem:[#allocation36_spill] sm:$0xff] %v5739_v14  ;;  %v3381_v10 = vmax.f32 %v3377_v28, 0.0  ;;  %v3382_v21 = vmax.f32 %v3378_v44, 0.0  ;;  %v3400_v7 = vadd.f32 %v5215_v29, %v6301_v15  ;;  %v5749_v62 = vadd.f32 %v3006_v3, %v2713_v59  ;;  %v2719_v54 = vpop.f32.mrb[109].mxu0  ;;  %v6305_v28 = vld [vmem:[#allocation71_spill] sm:$0xff]  ;;  %v6309_v41 = vld [vmem:[#allocation73_spill] sm:$0xff] }
 0x4de   :  { %6298 = vst [vmem:[#allocation37_spill] sm:$0xff] %v5741_v0  ;;  %6300 = vst [vmem:[#allocation38_spill] sm:$0xff] %v5745_v1  ;;  %v5752_v13 = vmul.f32 %v6291_v12, %v3333_v31  ;;  %v5755_v40 = vmul.f32 %v6295_v50, %v3334_v6  ;;  %v5758_v55 = vmul.f32 %v6303_v51, %v3355_v36  ;;  %v6307_v12 = vld [vmem:[#allocation44_spill] sm:$0xff]  ;;  %v2721_v31 = vpop.f32.mrb[110].mxu0  ;;  %v3403_v15 = vmax.f32 %v3399_v61, 0.0  ;;  %v6315_v0 = vld [vmem:[#allocation47_spill] sm:$0xff] }
 0x4df   :  { %6302 = vst [vmem:[#allocation68_spill] sm:$0xff] %v5749_v62  ;;  %v3401_v4 = vadd.f32 %v5212_v47, %v6304_v39  ;;  %v5763_v44 = vmul.f32 %v6305_v28, %v3356_v8  ;;  %v5766_v59 = vmul.f32 %v6303_v51, %v3357_v11  ;;  %v5769_v26 = vmul.f32 %v6305_v28, %v3358_v19  ;;  %v6308_v50 = vld [vmem:[#allocation72_spill] sm:$0xff]  ;;  %v6311_v39 = vld [vmem:[#allocation45_spill] sm:$0xff]  ;;  %v2723_v62 = vpop.f32.mrb[111].mxu0  ;;  %v6314_v28 = vld [vmem:[#allocation46_spill] sm:$0xff] }
 0x4e0   :  { %v3402_v6 = vadd.f32 %v5215_v29, %v6307_v12  ;;  %v5774_v36 = vmul.f32 %v6308_v50, %v3379_v57  ;;  %v5777_v3 = vmul.f32 %v6309_v41, %v3380_v18  ;;  %v3423_v8 = vadd.f32 %v5212_v47, %v6311_v39  ;;  %v3010_v57 = vpop.f32.mrb[140].mxu1  ;;  %v6316_v61 = vld [vmem:[#allocation48_spill] sm:$0xff] }
 0x4e1   :  { %6306 = vst [vmem:[#allocation39_spill] sm:$0xff] %v5769_v26  ;;  %v5782_v11 = vmul.f32 %v6308_v50, %v3381_v10  ;;  %v5785_v19 = vmul.f32 %v6309_v41, %v3382_v21  ;;  %v3404_v51 = vmax.f32 %v3400_v7, 0.0  ;;  %v3424_v12 = vadd.f32 %v5215_v29, %v6314_v28  ;;  %v3012_v26 = vpop.f32.mrb[141].mxu1  ;;  %v6318_v50 = vld [vmem:[#allocation52_spill] sm:$0xff]  ;;  %v6319_v41 = vld [vmem:[#allocation53_spill] sm:$0xff] }
 0x4e2   :  { %6310 = vst [vmem:[#allocation40_spill] sm:$0xff] %v5777_v3  ;;  %v3405_v1 = vmax.f32 %v3401_v4, 0.0  ;;  %v3425_v18 = vadd.f32 %v5212_v47, %v6315_v0  ;;  %v3426_v14 = vadd.f32 %v5215_v29, %v6316_v61  ;;  %v5793_v39 = vadd.f32 %v3010_v57, %v2717_v42  ;;  %v3014_v28 = vpop.f32.mrb[142].mxu1  ;;  %v6321_v4 = vld [vmem:[#allocation74_spill] sm:$0xff]  ;;  %v6322_v3 = vld [vmem:[#allocation57_spill] sm:$0xff] }
 0x4e3   :  { %6312 = vst [vmem:[#allocation69_spill] sm:$0xff] %v5782_v11  ;;  %6313 = vst [vmem:[#allocation41_spill] sm:$0xff] %v5785_v19  ;;  %v3406_v10 = vmax.f32 %v3402_v6, 0.0  ;;  %v3447_v21 = vadd.f32 %v5212_v47, %v6318_v50  ;;  %v3448_v7 = vadd.f32 %v5215_v29, %v6319_v41  ;;  %v5799_v19 = vadd.f32 %v3012_v26, %v2719_v54  ;;  %v3016_v57 = vpop.f32.mrb[143].mxu1 }
 0x4e4   :  { %6317 = vst [vmem:[#allocation42_spill] sm:$0xff] %v5793_v39  ;;  %v5802_v11 = vmul.f32 %v6321_v4, %v3403_v15  ;;  %v3427_v0 = vmax.f32 %v3423_v8, 0.0  ;;  %v3449_v61 = vadd.f32 %v5212_v47, %v6322_v3  ;;  %v5806_v42 = vadd.f32 %v3014_v28, %v2721_v31  ;;  %v6325_v39 = vld [vmem:[#allocation61_spill] sm:$0xff]  ;;  %v2760_v26 = vpop.f32.mrb[8].mxu0 }
 0x4e5   :  { %6320 = vst [vmem:[#allocation70_spill] sm:$0xff] %v5799_v19  ;;  %v5809_v6 = vmul.f32 %v5367_v35, %v3404_v51  ;;  %v3428_v50 = vmax.f32 %v3424_v12, 0.0  ;;  %v3450_v41 = vadd.f32 %v5215_v29, %v6325_v39  ;;  %v5813_v54 = vadd.f32 %v3016_v57, %v2723_v62  ;;  %v2762_v31 = vpop.f32.mrb[9].mxu0 }
 0x4e6   :  { %6323 = vst [vmem:[#allocation43_spill] sm:$0xff] %v5806_v42  ;;  %v5816_v15 = vmul.f32 %v6321_v4, %v3405_v1  ;;  %v3429_v8 = vmax.f32 %v3425_v18, 0.0  ;;  %v3430_v19 = vmax.f32 %v3426_v14, 0.0  ;;  %v3039_v3 = vadd.f32 %v5212_v47, %v2760_v26 }
 0x4e7   :  { %6324 = vst [vmem:[#allocation71_spill] sm:$0xff] %v5809_v6  ;;  %v5820_v28 = vmul.f32 %v5367_v35, %v3406_v10  ;;  %v3451_v51 = vmax.f32 %v3447_v21, 0.0  ;;  %v3452_v42 = vmax.f32 %v3448_v7, 0.0  ;;  %v3040_v12 = vadd.f32 %v5215_v29, %v2762_v31  ;;  %v2764_v6 = vpop.f32.mrb[10].mxu0 }
 0x4e8   :  { %v5824_v62 = vmul.f32 %v5375_v9, %v3427_v0  ;;  %v3453_v39 = vmax.f32 %v3449_v61, 0.0  ;;  %v3043_v57 = vmax.f32 %v3039_v3, 0.0  ;;  %v3041_v1 = vadd.f32 %v5212_v47, %v2764_v6  ;;  %v2766_v18 = vpop.f32.mrb[11].mxu0 }
 0x4e9   :  { %v5828_v14 = vmul.f32 %v5379_v52, %v3428_v50  ;;  %v3454_v4 = vmax.f32 %v3450_v41, 0.0  ;;  %v3044_v26 = vmax.f32 %v3040_v12, 0.0  ;;  %v3042_v35 = vadd.f32 %v5215_v29, %v2766_v18  ;;  %v6326_v12 = vld [vmem:[#allocation75_spill] sm:$0xff] }
 0x4ea   :  { %v5832_v10 = vmul.f32 %v5375_v9, %v3429_v8  ;;  %v5835_v21 = vmul.f32 %v5379_v52, %v3430_v19  ;;  %v3055_v7 = vmul.f32 %v5658_v46, %v3043_v57  ;;  %v3045_v0 = vmax.f32 %v3041_v1, 0.0  ;;  %v6328_v57 = vld [vmem:[#allocation77_spill] sm:$0xff] }
 0x4eb   :  { %v5839_v61 = vmul.f32 %v5385_v20, %v3451_v51  ;;  %v5842_v6 = vmul.f32 %v5389_v5, %v3452_v42  ;;  %v3056_v50 = vmul.f32 %v5674_v22, %v3044_v26  ;;  %v3046_v41 = vmax.f32 %v3042_v35, 0.0  ;;  %v6329_v26 = vld [vmem:[#allocation80_spill] sm:$0xff] }
 0x4ec   :  { %v5846_v3 = vmul.f32 %v5385_v20, %v3453_v39  ;;  %v3471_v9 = vadd.f32 %v5212_v47, %v5360_v38  ;;  %v3083_v52 = vadd.f32 %v5392_v43, %v3055_v7  ;;  %v3057_v19 = vmul.f32 %v5658_v46, %v3045_v0  ;;  %v6327_v39 = vld [vmem:[#allocation76_spill] sm:$0xff] }
 0x4ed   :  { %v5853_v8 = vmul.f32 %v5389_v5, %v3454_v4  ;;  %v3472_v42 = vadd.f32 %v5215_v29, %v5364_v32  ;;  %v3084_v31 = vadd.f32 %v5395_v53, %v3056_v50  ;;  %v3058_v51 = vmul.f32 %v5674_v22, %v3046_v41 }
 0x4ee   :  { %v3473_v20 = vadd.f32 %v5212_v47, %v6326_v12  ;;  %v3474_v38 = vadd.f32 %v5215_v29, %v6327_v39  ;;  %v3107_v43 = vadd.f32 %v5420_v56, %v3083_v52  ;;  %v3085_v46 = vadd.f32 %v5400_v2, %v3057_v19  ;;  %v6330_v52 = vld [vmem:[#allocation78_spill] sm:$0xff]  ;;  %v6332_v12 = vld [vmem:[#allocation51_spill] sm:$0xff] }
 0x4ef   :  { %v3495_v5 = vadd.f32 %v5212_v47, %v5427_v48  ;;  %v3496_v32 = vadd.f32 %v5215_v29, %v5434_v37  ;;  %v3108_v53 = vadd.f32 %v5423_v30, %v3084_v31  ;;  %v3086_v22 = vadd.f32 %v6328_v57, %v3058_v51  ;;  %v6333_v39 = vld [vmem:[#allocation91_spill] sm:$0xff]  ;;  %v6338_v57 = vld [vmem:[#allocation85_spill] sm:$0xff] }
 0x4f0   :  { %v3475_v1 = vmax.f32 %v3471_v9, 0.0  ;;  %v3497_v18 = vadd.f32 %v5212_v47, %v5440_v63  ;;  %v3131_v4 = vadd.f32 %v5458_v34, %v3107_v43  ;;  %v3109_v56 = vadd.f32 %v6329_v26, %v3085_v46  ;;  %v6335_v43 = vld [vmem:[#allocation82_spill] sm:$0xff] }
 0x4f1   :  { %v3476_v35 = vmax.f32 %v3472_v42, 0.0  ;;  %v3498_v2 = vadd.f32 %v5215_v29, %v5445_v17  ;;  %v3132_v48 = vadd.f32 %v5465_v27, %v3108_v53  ;;  %v3110_v37 = vadd.f32 %v5443_v45, %v3086_v22  ;;  %v6331_v42 = vld [vmem:[#allocation79_spill] sm:$0xff] }
 0x4f2   :  { %v3477_v7 = vmax.f32 %v3473_v20, 0.0  ;;  %v3478_v30 = vmax.f32 %v3474_v38, 0.0  ;;  %v3155_v0 = vadd.f32 %v5484_v24, %v3131_v4  ;;  %v3133_v50 = vadd.f32 %v5470_v33, %v3109_v56  ;;  %v6334_v38 = vld [vmem:[#allocation81_spill] sm:$0xff]  ;;  %v6340_v4 = vld [vmem:[#allocation16_spill] sm:$0xff] }
 0x4f3   :  { %v3499_v41 = vmax.f32 %v3495_v5, 0.0  ;;  %v3500_v63 = vmax.f32 %v3496_v32, 0.0  ;;  %v3156_v34 = vadd.f32 %v5491_v25, %v3132_v48  ;;  %v3134_v9 = vadd.f32 %v5473_v49, %v3110_v37  ;;  %v6336_v5 = vld [vmem:[#allocation15_spill] sm:$0xff]  ;;  %v6337_v32 = vld [vmem:[#allocation10_spill] sm:$0xff] }
 0x4f4   :  { %v5884_v19 = vmul.f32 %v6330_v52, %v3475_v1  ;;  %v3501_v17 = vmax.f32 %v3497_v18, 0.0  ;;  %v3179_v27 = vadd.f32 %v5514_v23, %v3155_v0  ;;  %v3157_v45 = vadd.f32 %v5496_v58, %v3133_v50  ;;  %v6339_v1 = vld [vmem:[#allocation56_spill] sm:$0xff]  ;;  %v6342_v48 = vld [vmem:[#allocation58_spill] sm:$0xff]  ;;  %v6344_v0 = vld [vmem:[#allocation87_spill] sm:$0xff] }
 0x4f5   :  { %v5889_v31 = vmul.f32 %v6331_v42, %v3476_v35  ;;  %v3502_v24 = vmax.f32 %v3498_v2, 0.0  ;;  %v3180_v33 = vadd.f32 %v5523_v16, %v3156_v34  ;;  %v3158_v51 = vadd.f32 %v5499_v60, %v3134_v9  ;;  %v6341_v35 = vld [vmem:[#allocation86_spill] sm:$0xff] }
 0x4f6   :  { %v5894_v25 = vmul.f32 %v6330_v52, %v3477_v7  ;;  %v5897_v49 = vmul.f32 %v6331_v42, %v3478_v30  ;;  %v3203_v20 = vadd.f32 %v6332_v12, %v3179_v27  ;;  %v3181_v23 = vadd.f32 %v6333_v39, %v3157_v45  ;;  %v6343_v7 = vld [vmem:[#allocation92_spill] sm:$0xff]  ;;  %v6346_v34 = vld [vmem:[#allocation18_spill] sm:$0xff]  ;;  %v6348_v27 = vld [vmem:[#allocation13_spill] sm:$0xff] }
 0x4f7   :  { %v5902_v58 = vmul.f32 %v6334_v38, %v3499_v41  ;;  %v5905_v46 = vmul.f32 %v6335_v43, %v3500_v63  ;;  %v3204_v16 = vadd.f32 %v6336_v5, %v3180_v33  ;;  %v3182_v60 = vadd.f32 %v6337_v32, %v3158_v51  ;;  %v6345_v41 = vld [vmem:[#allocation88_spill] sm:$0xff]  ;;  %v6347_v52 = vld [vmem:[#allocation94_spill] sm:$0xff]  ;;  %v6351_v12 = vld [vmem:[#allocation95_spill] sm:$0xff] }
 0x4f8   :  { %v5910_v53 = vmul.f32 %v6334_v38, %v3501_v17  ;;  %v3519_v22 = vadd.f32 %v5212_v47, %v6338_v57  ;;  %v3227_v18 = vadd.f32 %v6339_v1, %v3203_v20  ;;  %v3205_v26 = vadd.f32 %v6340_v4, %v3181_v23  ;;  %v6349_v42 = vld [vmem:[#allocation54_spill] sm:$0xff]  ;;  %v6350_v33 = vld [vmem:[#allocation60_spill] sm:$0xff]  ;;  %v6355_v57 = vld [vmem:[#allocation55_spill] sm:$0xff] }
 0x4f9   :  { %v5917_v56 = vmul.f32 %v6335_v43, %v3502_v24  ;;  %v3520_v2 = vadd.f32 %v5215_v29, %v6341_v35  ;;  %v3228_v37 = vadd.f32 %v6342_v48, %v3204_v16  ;;  %v3206_v30 = vadd.f32 %v6343_v7, %v3182_v60  ;;  %v6352_v23 = vld [vmem:[#allocation14_spill] sm:$0xff]  ;;  %v6354_v16 = vld [vmem:[#allocation96_spill] sm:$0xff] }
 0x4fa   :  { %v3521_v50 = vadd.f32 %v5212_v47, %v6344_v0  ;;  %v3522_v63 = vadd.f32 %v5215_v29, %v6345_v41  ;;  %v3251_v9 = vadd.f32 %v6346_v34, %v3227_v18  ;;  %v3229_v17 = vadd.f32 %v6347_v52, %v3205_v26  ;;  %v6353_v43 = vld [vmem:[#allocation62_spill] sm:$0xff]  ;;  %v6358_v7 = vld [vmem:[#allocation28_spill] sm:$0xff]  ;;  %v6360_v52 = vld [vmem:[#allocation29_spill] sm:$0xff] }
 0x4fb   :  { %v3543_v45 = vadd.f32 %v5212_v47, %v6348_v27  ;;  %v3544_v24 = vadd.f32 %v5215_v29, %v6349_v42  ;;  %v3252_v51 = vadd.f32 %v6350_v33, %v3228_v37  ;;  %v3230_v20 = vadd.f32 %v6351_v12, %v3206_v30  ;;  %v6356_v18 = vld [vmem:[#allocation26_spill] sm:$0xff]  ;;  %v6361_v27 = vld [vmem:[#allocation63_spill] sm:$0xff] }
 0x4fc   :  { %v3523_v39 = vmax.f32 %v3519_v22, 0.0  ;;  %v3545_v38 = vadd.f32 %v5212_v47, %v6352_v23  ;;  %v3275_v5 = vadd.f32 %v6353_v43, %v3251_v9  ;;  %v3253_v32 = vadd.f32 %v6354_v16, %v3229_v17  ;;  %v6357_v26 = vld [vmem:[#allocation22_spill] sm:$0xff]  ;;  %v6359_v22 = vld [vmem:[#allocation49_spill] sm:$0xff] }
 0x4fd   :  { %v3524_v60 = vmax.f32 %v3520_v2, 0.0  ;;  %v3546_v1 = vadd.f32 %v5215_v29, %v6355_v57  ;;  %v3276_v4 = vadd.f32 %v6356_v18, %v3252_v51  ;;  %v3254_v35 = vadd.f32 %v6357_v26, %v3230_v20  ;;  %v6362_v2 = vld [vmem:[#allocation83_spill] sm:$0xff]  ;;  %v6363_v12 = vld [vmem:[#allocation66_spill] sm:$0xff]  ;;  %v6369_v18 = vld [vmem:[#allocation33_spill] sm:$0xff] }
 0x4fe   :  { %v3525_v48 = vmax.f32 %v3521_v50, 0.0  ;;  %v3526_v37 = vmax.f32 %v3522_v63, 0.0  ;;  %v3299_v30 = vadd.f32 %v6358_v7, %v3275_v5  ;;  %v3277_v0 = vadd.f32 %v6359_v22, %v3253_v32  ;;  %v6364_v23 = vld [vmem:[#allocation30_spill] sm:$0xff]  ;;  %v6365_v50 = vld [vmem:[#allocation84_spill] sm:$0xff]  ;;  %v6370_v26 = vld [vmem:[#allocation89_spill] sm:$0xff] }
 0x4ff   :  { %v3547_v41 = vmax.f32 %v3543_v45, 0.0  ;;  %v3548_v34 = vmax.f32 %v3544_v24, 0.0  ;;  %v3300_v9 = vadd.f32 %v6360_v52, %v3276_v4  ;;  %v3278_v17 = vadd.f32 %v6361_v27, %v3254_v35  ;;  %v6366_v5 = vld [vmem:[#allocation32_spill] sm:$0xff]  ;;  %v6367_v45 = vld [vmem:[#allocation65_spill] sm:$0xff]  ;;  %v6373_v22 = vld [vmem:[#allocation67_spill] sm:$0xff] }
 0x500   :  { %v5948_v42 = vmul.f32 %v6362_v2, %v3523_v39  ;;  %v3549_v33 = vmax.f32 %v3545_v38, 0.0  ;;  %v3323_v51 = vadd.f32 %v6363_v12, %v3299_v30  ;;  %v3301_v20 = vadd.f32 %v6364_v23, %v3277_v0  ;;  %v6368_v39 = vld [vmem:[#allocation34_spill] sm:$0xff]  ;;  %v6374_v52 = vld [vmem:[#allocation20_spill] sm:$0xff] }
 0x501   :  { %v5953_v63 = vmul.f32 %v6365_v50, %v3524_v60  ;;  %v3550_v43 = vmax.f32 %v3546_v1, 0.0  ;;  %v3324_v16 = vadd.f32 %v6366_v5, %v3300_v9  ;;  %v3302_v24 = vadd.f32 %v6367_v45, %v3278_v17  ;;  %v6371_v60 = vld [vmem:[#allocation90_spill] sm:$0xff]  ;;  %v6372_v1 = vld [vmem:[#allocation35_spill] sm:$0xff]  ;;  %v6375_v17 = vld [vmem:[#allocation21_spill] sm:$0xff] }
 0x502   :  { %v5958_v32 = vmul.f32 %v6362_v2, %v3525_v48  ;;  %v5961_v57 = vmul.f32 %v6365_v50, %v3526_v37  ;;  %v3347_v38 = vadd.f32 %v6368_v39, %v3323_v51  ;;  %v3325_v4 = vadd.f32 %v6369_v18, %v3301_v20  ;;  %v6376_v51 = vld [vmem:[#allocation23_spill] sm:$0xff]  ;;  %v6377_v23 = vld [vmem:[#allocation24_spill] sm:$0xff]  ;;  %v6379_v5 = vld [vmem:[#allocation50_spill] sm:$0xff] }
 0x503   :  { %v5966_v35 = vmul.f32 %v6370_v26, %v3547_v41  ;;  %v5969_v7 = vmul.f32 %v6371_v60, %v3548_v34  ;;  %v3348_v30 = vadd.f32 %v6372_v1, %v3324_v16  ;;  %v3326_v0 = vadd.f32 %v6373_v22, %v3302_v24  ;;  %v6378_v50 = vld [vmem:[#allocation27_spill] sm:$0xff]  ;;  %v6380_v45 = vld [vmem:[#allocation40_spill] sm:$0xff] }
 0x504   :  { %v5974_v48 = vmul.f32 %v6370_v26, %v3549_v33  ;;  %v3567_v37 = vadd.f32 %v5212_v47, %v6374_v52  ;;  %v3349_v9 = vadd.f32 %v5752_v13, %v3325_v4  ;;  %v3371_v27 = vadd.f32 %v5758_v55, %v3347_v38  ;;  %v6381_v24 = vld [vmem:[#allocation39_spill] sm:$0xff]  ;;  %v6382_v38 = vld [vmem:[#allocation64_spill] sm:$0xff]  ;;  %v6383_v26 = vld [vmem:[#allocation69_spill] sm:$0xff] }
 0x505   :  { %v5981_v41 = vmul.f32 %v6371_v60, %v3550_v43  ;;  %v3568_v34 = vadd.f32 %v5215_v29, %v6375_v17  ;;  %v3350_v2 = vadd.f32 %v5755_v40, %v3326_v0  ;;  %v3372_v12 = vadd.f32 %v5763_v44, %v3348_v30  ;;  %v6385_v30 = vld [vmem:[#allocation71_spill] sm:$0xff]  ;;  %v6386_v0 = vld [vmem:[#allocation41_spill] sm:$0xff] }
 0x506   :  { %v3569_v33 = vadd.f32 %v5212_v47, %v6376_v51  ;;  %v3570_v20 = vadd.f32 %v5215_v29, %v6377_v23  ;;  %v3395_v13 = vadd.f32 %v5774_v36, %v3371_v27  ;;  %v3373_v55 = vadd.f32 %v5766_v59, %v3349_v9  ;;  %v6384_v59 = vld [vmem:[#allocation31_spill] sm:$0xff] }
 0x507   :  { %v3591_v43 = vadd.f32 %v5212_v47, %v6378_v50  ;;  %v3592_v16 = vadd.f32 %v5215_v29, %v6379_v5  ;;  %v3396_v40 = vadd.f32 %v6380_v45, %v3372_v12  ;;  %v3374_v44 = vadd.f32 %v6381_v24, %v3350_v2  ;;  %v6388_v5 = vld [vmem:[#allocation12_spill] sm:$0xff]  ;;  %v6389_v45 = vld [vmem:[#allocation17_spill] sm:$0xff] }
 0x508   :  { %v3571_v39 = vmax.f32 %v3567_v37, 0.0  ;;  %v3593_v18 = vadd.f32 %v5212_v47, %v6382_v38  ;;  %v3419_v4 = vadd.f32 %v5802_v11, %v3395_v13  ;;  %v3397_v36 = vadd.f32 %v6383_v26, %v3373_v55 }
 0x509   :  { %v3572_v60 = vmax.f32 %v3568_v34, 0.0  ;;  %v3594_v1 = vadd.f32 %v5215_v29, %v6384_v59  ;;  %v3420_v22 = vadd.f32 %v6385_v30, %v3396_v40  ;;  %v3398_v52 = vadd.f32 %v6386_v0, %v3374_v44  ;;  %v6387_v34 = vld [vmem:[#allocation11_spill] sm:$0xff] }
 0x50a   :  { %v3573_v9 = vmax.f32 %v3569_v33, 0.0  ;;  %v3574_v27 = vmax.f32 %v3570_v20, 0.0  ;;  %v3443_v17 = vadd.f32 %v5824_v62, %v3419_v4  ;;  %v3421_v37 = vadd.f32 %v5816_v15, %v3397_v36  ;;  %v6393_v36 = vld [vmem:[#allocation38_spill] sm:$0xff] }
 0x50b   :  { %v3595_v2 = vmax.f32 %v3591_v43, 0.0  ;;  %v3596_v12 = vmax.f32 %v3592_v16, 0.0  ;;  %v3444_v11 = vadd.f32 %v5828_v14, %v3420_v22  ;;  %v3422_v51 = vadd.f32 %v5820_v28, %v3398_v52  ;;  %v6396_v22 = vld [vmem:[#allocation70_spill] sm:$0xff] }
 0x50c   :  { %v3583_v23 = vmul.f32 %v6387_v34, %v3571_v39  ;;  %v3597_v13 = vmax.f32 %v3593_v18, 0.0  ;;  %v3467_v55 = vadd.f32 %v5839_v61, %v3443_v17  ;;  %v3445_v50 = vadd.f32 %v5832_v10, %v3421_v37  ;;  %v6390_v61 = vld [vmem:[#allocation93_spill] sm:$0xff]  ;;  %v6391_v39 = vld [vmem:[#allocation36_spill] sm:$0xff] }
 0x50d   :  { %v3584_v33 = vmul.f32 %v6388_v5, %v3572_v60  ;;  %v3598_v20 = vmax.f32 %v3594_v1, 0.0  ;;  %v3468_v62 = vadd.f32 %v5842_v6, %v3444_v11  ;;  %v3446_v15 = vadd.f32 %v5835_v21, %v3422_v51  ;;  %v6394_v60 = vld [vmem:[#allocation42_spill] sm:$0xff] }
 0x50e   :  { %v3585_v43 = vmul.f32 %v6387_v34, %v3573_v9  ;;  %v3586_v14 = vmul.f32 %v6388_v5, %v3574_v27  ;;  %v3491_v28 = vadd.f32 %v5884_v19, %v3467_v55  ;;  %v3469_v16 = vadd.f32 %v5846_v3, %v3445_v50  ;;  %v6392_v3 = vld [vmem:[#allocation37_spill] sm:$0xff]  ;;  %v6397_v9 = vld [vmem:[#allocation43_spill] sm:$0xff] }
 0x50f   :  { %v3607_v40 = vmul.f32 %v6389_v45, %v3595_v2  ;;  %v3608_v24 = vmul.f32 %v6390_v61, %v3596_v12  ;;  %v3492_v10 = vadd.f32 %v5889_v31, %v3468_v62  ;;  %v3470_v44 = vadd.f32 %v5853_v8, %v3446_v15  ;;  %v6398_v55 = vld [vmem:[#allocation59_spill] sm:$0xff] }
 0x510   :  { %v3609_v6 = vmul.f32 %v6389_v45, %v3597_v13  ;;  %v3615_v21 = vadd.f32 %v5212_v47, %v6391_v39  ;;  %v3515_v38 = vadd.f32 %v5902_v58, %v3491_v28  ;;  %v3493_v18 = vadd.f32 %v5894_v25, %v3469_v16  ;;  %v6395_v25 = vld [vmem:[#allocation68_spill] sm:$0xff]  ;;  %v6401_v45 = vld [vmem:[#allocation25_spill] sm:$0xff] }
 0x511   :  { %v3610_v19 = vmul.f32 %v6390_v61, %v3598_v20  ;;  %v3616_v4 = vadd.f32 %v5215_v29, %v6392_v3  ;;  %v3516_v26 = vadd.f32 %v5905_v46, %v3492_v10  ;;  %v3494_v31 = vadd.f32 %v5897_v49, %v3470_v44 }
 0x512   :  { %v3617_v8 = vadd.f32 %v5212_v47, %v6393_v36  ;;  %v3639_v59 = vadd.f32 %v5212_v47, %v6394_v60  ;;  %v3539_v1 = vadd.f32 %v5948_v42, %v3515_v38  ;;  %v3517_v58 = vadd.f32 %v5910_v53, %v3493_v18 }
 0x513   :  { %v3618_v30 = vadd.f32 %v5215_v29, %v6395_v25  ;;  %v3640_v0 = vadd.f32 %v5215_v29, %v6396_v22  ;;  %v3540_v46 = vadd.f32 %v5953_v63, %v3516_v26  ;;  %v3518_v49 = vadd.f32 %v5917_v56, %v3494_v31 }
 0x514   :  { %v3619_v52 = vmax.f32 %v3615_v21, 0.0  ;;  %v3641_v27 = vadd.f32 %v5212_v47, %v6397_v9  ;;  %v3563_v17 = vadd.f32 %v5966_v35, %v3539_v1  ;;  %v3541_v42 = vadd.f32 %v5958_v32, %v3517_v58 }
 0x515   :  { %v3620_v37 = vmax.f32 %v3616_v4, 0.0  ;;  %v3642_v53 = vadd.f32 %v5215_v29, %v5813_v54  ;;  %v3564_v2 = vadd.f32 %v5969_v7, %v3540_v46  ;;  %v3542_v12 = vadd.f32 %v5961_v57, %v3518_v49  ;;  %v6399_v29 = vld [vmem:[#allocation19_spill] sm:$0xff]  ;;  %v4002_v4 = vld [vmem:[#allocation2] ss:$0 sm:$0xff] }
 0x516   :  { %v3621_v11 = vmax.f32 %v3617_v8, 0.0  ;;  %v3643_v63 = vmax.f32 %v3639_v59, 0.0  ;;  %v3587_v51 = vadd.f32 %v3583_v23, %v3563_v17  ;;  %v3565_v56 = vadd.f32 %v5974_v48, %v3541_v42  ;;  %v6400_v23 = vld [vmem:[#allocation97_spill] sm:$0xff] }
 0x517   :  { %v3622_v34 = vmax.f32 %v3618_v30, 0.0  ;;  %v3644_v13 = vmax.f32 %v3640_v0, 0.0  ;;  %v3588_v47 = vadd.f32 %v3584_v33, %v3564_v2  ;;  %v3566_v35 = vadd.f32 %v5981_v41, %v3542_v12 }
 0x518   :  { %v3631_v32 = vmul.f32 %v6398_v55, %v3619_v52  ;;  %v3645_v50 = vmax.f32 %v3641_v27, 0.0  ;;  %v3611_v5 = vadd.f32 %v3607_v40, %v3587_v51  ;;  %v3589_v20 = vadd.f32 %v3585_v43, %v3565_v56 }
 0x519   :  { %v3632_v54 = vmul.f32 %v6399_v29, %v3620_v37  ;;  %v3646_v7 = vmax.f32 %v3642_v53, 0.0  ;;  %v3612_v62 = vadd.f32 %v3608_v24, %v3588_v47  ;;  %v3590_v57 = vadd.f32 %v3586_v14, %v3566_v35 }
 0x51a   :  { %v3633_v15 = vmul.f32 %v6398_v55, %v3621_v11  ;;  %v3655_v28 = vmul.f32 %v6400_v23, %v3643_v63  ;;  %v3635_v48 = vadd.f32 %v3631_v32, %v3611_v5  ;;  %v3613_v16 = vadd.f32 %v3609_v6, %v3589_v20 }
 0x51b   :  { %v3634_v33 = vmul.f32 %v6399_v29, %v3622_v34  ;;  %v3656_v41 = vmul.f32 %v6401_v45, %v3644_v13  ;;  %v3636_v61 = vadd.f32 %v3632_v54, %v3612_v62  ;;  %v3614_v10 = vadd.f32 %v3610_v19, %v3590_v57 }
 0x51c   :  { %v3657_v40 = vmul.f32 %v6400_v23, %v3645_v50  ;;  %v3659_v43 = vadd.f32 %v3655_v28, %v3635_v48  ;;  %v3637_v44 = vadd.f32 %v3633_v15, %v3613_v16  ;;  %v3658_v39 = vmul.f32 %v6401_v45, %v3646_v7 }
 0x51d   :  { %v3660_v24 = vadd.f32 %v3656_v41, %v3636_v61  ;;  %v3638_v14 = vadd.f32 %v3634_v33, %v3614_v10  ;;  %v4693_v6 = vmov 0  }
 0x51e   :  { %v3661_v21 = vadd.f32 %v3657_v40, %v3637_v44  ;;  %4174 = vset.pattern.permute.xlu0 %v4693_v6  ;;  %4175 = vset.pattern.permute.xlu1 %v4693_v6 }
 0x51f   :  { %v3663_v38 = vadd.f32 %v3660_v24, %v3659_v43  ;;  %v3662_v18 = vadd.f32 %v3658_v39, %v3638_v14 }
 0x521   :  { %3664 = vadd.xlane.f32.xlu1 %v3663_v38  ;;  %v3666_v3 = vadd.f32 %v3662_v18, %v3661_v21 }
 0x523   :  { %3667 = vadd.xlane.f32.xlu0 %v3666_v3 }
 0x5ae   :  { %v3665_v26 = vpop.xlane.xlu1 %3664 }
 0x5af   :  { %v3676_v19 = vadd.f32 %v4002_v4, %v3665_v26 }
 0x5b0   :  { %v3668_v31 = vpop.xlane.xlu0 %3667 }
 0x5b1   :  { %v3678_v36 = vsub.f32 0.0, %v3676_v19  ;;  %v3677_v8 = vadd.f32 %v4002_v4, %v3668_v31 }
 0x5b3   :  { %v3680_v60 = vmul.f32 1.442695, %v3678_v36  ;;  %v3679_v59 = vsub.f32 0.0, %v3677_v8 }
 0x5b5   :  { %4605 = vpow2.f32 %v3680_v60  ;;  %v3682_v1 = vmul.f32 1.442695, %v3679_v59 }
 0x5b7   :  { %4607 = vpow2.f32 %v3682_v1 }
 0x5bf   :  { %v4606_v58 = vpop.eup %4605 }
 0x5c0   :  { %v3684_v25 = vadd.f32 1.0, %v4606_v58 }
 0x5c1   :  { %v4608_v30 = vpop.eup %4607 }
 0x5c2   :  { %4609 = vrcp.f32 %v3684_v25  ;;  %v3685_v22 = vadd.f32 1.0, %v4608_v30 }
 0x5c4   :  { %4611 = vrcp.f32 %v3685_v22 }
 0x5cc   :  { %v4610_v0 = vpop.eup %4609 }
 0x5cd   :  { %3692 = vperm.xlu0 %4174, %v4610_v0  }
 0x5ce   :  { %v4612_v46 = vpop.eup %4611 }
 0x5cf   :  { %3697 = vperm.xlu1 %4175, %v4612_v46  }
 0x64c   :  { %v3693_v49 = vpop.permute.xlu0 %3692 }
 0x64d   :  { %3700 = vst [vmem:[%s6080_s9] sm:$0xff] %v3693_v49 }
 0x64e   :  { %v3698_v52 = vpop.permute.xlu1 %3697 }
 0x64f   :  { %3701 = vst [vmem:[%s6080_s9 + $0x8] sm:$0xff] %v3698_v52 }
 0x650   :  { %3706 = vsyncpa [#allocation4], 1 }
 0x651   :  { %3707 = vsyncpa [#allocation6], 1 }

</bundles_post_ra>
